<compile_context>
chip_gen: v6e
topology: v6e:2x2x1
jax: 0.10.0
libtpu: 0.0.40
codegen_flags: <defaults>
</compile_context>

<pallas_src>
import functools
import math

import numpy as np
import jax
import jax.numpy as jnp
from jax import lax
from jax.experimental import pallas as pl
from jax.experimental.pallas import tpu as pltpu


# ------------------- fused Conv1d + BatchNorm(eval) + ReLU ------------------

def conv_bn_relu(x, w, shift, *, t_tile):
    """x: (T, N, Cin) bf16 (time-major); w: (K, Cin, Cout) bf16 with the BN
    scale already folded in; shift: (Cout,) f32 (BN shift + conv bias).
    Returns (Tp, N, Cout) bf16 with rows >= T zeroed (Tp = ceil(T/t_tile)*t_tile)."""
    T, N, Cin = x.shape
    K, _, Cout = w.shape
    pad = (K - 1) // 2
    halo = K - 1
    nt = -(-T // t_tile)
    Tp = nt * t_tile
    rows_in = (t_tile + halo) * N          # halo'd rows DMA'd per tile
    rows_out = t_tile * N                  # rows produced per tile (MXU M dim)

    # TODO(synk): fold the zero halo into the in-kernel DMA (clamped copies +
    # edge masking) to remove this extra HBM round trip of the activation.
    xp = jnp.pad(x, ((pad, Tp - T + pad), (0, 0), (0, 0)))
    xflat = xp.reshape((Tp + halo) * N, Cin)          # free reshape (row-major)
    shift2 = shift.reshape(1, Cout).astype(jnp.float32)
    valid_rows_last = (T - (nt - 1) * t_tile) * N     # valid rows in last tile

    def kernel(x_hbm, w_ref, sh_ref, o_ref, xbuf, sem):
        i = pl.program_id(0)
        slot = i % 2

        def fetch(tile_idx, s):
            pltpu.make_async_copy(
                x_hbm.at[pl.ds(tile_idx * rows_out, rows_in)],
                xbuf.at[s], sem.at[s]).start()

        @pl.when(i == 0)
        def _():
            fetch(0, 0)                    # prime the manual pipeline

        @pl.when(i + 1 < nt)
        def _():
            fetch(i + 1, 1 - slot)         # prefetch BEFORE waiting: 2 DMAs in flight

        pltpu.make_async_copy(             # wait for the current tile (same desc as start)
            x_hbm.at[pl.ds(i * rows_out, rows_in)],
            xbuf.at[slot], sem.at[slot]).wait()

        # Per-tap matmuls on the flattened (rows_out, Cin) slab; register accumulation.
        acc = jnp.dot(xbuf[slot, 0:rows_out, :], w_ref[0],
                      preferred_element_type=jnp.float32)
        for k in range(1, K):
            acc = acc + jnp.dot(xbuf[slot, k * N:k * N + rows_out, :], w_ref[k],
                                preferred_element_type=jnp.float32)
        y = jnp.maximum(acc + sh_ref[...], 0.0)

        if Tp != T:
            # Only the last tile has rows beyond the true length; zero them so
            # the next conv's halo (and the LSTM gate masking) see real zeros.
            @pl.when(i == nt - 1)
            def _():
                r = lax.broadcasted_iota(jnp.int32, y.shape, 0)
                o_ref[...] = jnp.where(r < valid_rows_last, y, 0.0).astype(o_ref.dtype)

            @pl.when(i != nt - 1)
            def _():
                o_ref[...] = y.astype(o_ref.dtype)
        else:
            o_ref[...] = y.astype(o_ref.dtype)

    out = pl.pallas_call(
        kernel,
        grid=(nt,),
        in_specs=[
            pl.BlockSpec(memory_space=pl.ANY),               # activation in HBM
            pl.BlockSpec((K, Cin, Cout), lambda i: (0, 0, 0)),
            pl.BlockSpec((1, Cout), lambda i: (0, 0)),
        ],
        out_specs=pl.BlockSpec((rows_out, Cout), lambda i: (i, 0)),
        out_shape=jax.ShapeDtypeStruct((Tp * N, Cout), jnp.bfloat16),
        scratch_shapes=[
            pltpu.VMEM((2, rows_in, Cin), jnp.bfloat16),     # double-buffered tile
            pltpu.SemaphoreType.DMA((2,)),
        ],
        compiler_params=pltpu.CompilerParams(
            # cross-step manual prefetch requires sequential grid execution
            # TODO(synk): v7x - split the tile range over the 2 TCs ('parallel' axis)
            dimension_semantics=("arbitrary",)),
    )(xflat, w, shift2)
    return out.reshape(Tp, N, Cout)


# --------------------------- bidirectional LSTM -----------------------------

def _bilstm_rec_kernel(gf_ref, gb_ref, whh_ref, of_ref, ob_ref, h_sc, c_sc):
    # gf_ref: (tc, N, 4H) f32 fwd gates for time chunk i (forward order)
    # gb_ref: (tc, N, 4H) f32 bwd gates for time chunk nc-1-i
    # whh_ref: (2H, 8H) bf16 block-diagonal recurrent weights
    # of/ob:  (tc, N, H) f32 outputs for the same chunks
    # h_sc/c_sc: (N, 2H) f32 carried state  [fwd | bwd]
    tc, _, G4 = gf_ref.shape
    H = G4 // 4

    @pl.when(pl.program_id(0) == 0)
    def _():
        h_sc[...] = jnp.zeros_like(h_sc)
        c_sc[...] = jnp.zeros_like(c_sc)

    def half_cell(g4, c):
        i = jax.nn.sigmoid(g4[:, 0:H])
        f = jax.nn.sigmoid(g4[:, H:2 * H])
        gg = jnp.tanh(g4[:, 2 * H:3 * H])
        o = jax.nn.sigmoid(g4[:, 3 * H:4 * H])
        c_new = f * c + i * gg
        return o * jnp.tanh(c_new), c_new

    def body(s, carry):
        hf, cf, hb, cb = carry
        sb = tc - 1 - s
        # One fused matmul per step for both directions (bf16 in, f32 acc).
        h = jnp.concatenate([hf, hb], axis=-1).astype(jnp.bfloat16)   # (N, 2H)
        r = jnp.dot(h, whh_ref[...], preferred_element_type=jnp.float32)
        hf, cf = half_cell(gf_ref[s] + r[:, 0:G4], cf)
        hb, cb = half_cell(gb_ref[sb] + r[:, G4:2 * G4], cb)
        of_ref[s] = hf                       # lane-aligned (N, H) writes
        ob_ref[sb] = hb
        return hf, cf, hb, cb

    hf, cf, hb, cb = lax.fori_loop(
        0, tc, body,
        (h_sc[:, 0:H], c_sc[:, 0:H], h_sc[:, H:2 * H], c_sc[:, H:2 * H]))
    h_sc[:, 0:H] = hf
    h_sc[:, H:2 * H] = hb
    c_sc[:, 0:H] = cf
    c_sc[:, H:2 * H] = cb


def bilstm(x_tnd, lstm_params, *, t_valid, t_tile):
    """x_tnd: (Tp, N, D) bf16 time-major (rows >= t_valid are zero).
    Returns (out_fwd, out_bwd), each (Tp, N, H) f32 (rows >= t_valid invalid)."""
    Tp, N, D = x_tnd.shape
    assert Tp % t_tile == 0
    H = lstm_params["whh_f"].shape[0]
    G4, G8 = 4 * H, 8 * H
    R = Tp * N
    row_tile = t_tile * N
    n_tiles = R // row_tile
    nc = Tp // t_tile

    x2 = x_tnd.reshape(R, D)
    wih = jnp.concatenate([lstm_params["wih_f"], lstm_params["wih_b"]],
                          axis=1).astype(jnp.bfloat16)                  # (D, 8H)
    bias = jnp.concatenate([lstm_params["b_f"], lstm_params["b_b"]]
                           ).reshape(1, G8).astype(jnp.float32)

    # Rows at time >= t_valid must carry *exactly zero* gates: with zero state,
    # a zero gate row keeps (h, c) exactly zero, so the backward direction can
    # stream the zero-padded tail first with no per-step masking in the
    # serial recurrence.  Only the last projection tile needs masking.
    valid_last = t_valid * N - (n_tiles - 1) * row_tile   # in (0, row_tile]

    def proj_kernel(x_ref, w_ref, b_ref, o_ref):
        y = (jnp.dot(x_ref[...], w_ref[...], preferred_element_type=jnp.float32)
             + b_ref[...])
        i = pl.program_id(0)
        last = pl.num_programs(0) - 1

        @pl.when(i == last)
        def _():
            r = lax.broadcasted_iota(jnp.int32, y.shape, 0)
            o_ref[...] = jnp.where(r < valid_last, y, 0.0)

        @pl.when(i != last)
        def _():
            o_ref[...] = y

    # TODO(synk): store the hoisted gates in bf16 (halves gate HBM traffic)
    # once re-validated against the accuracy tolerance; kept f32 here.
    gx = pl.pallas_call(
        proj_kernel,
        grid=(n_tiles,),
        in_specs=[
            pl.BlockSpec((row_tile, D), lambda i: (i, 0)),
            pl.BlockSpec((D, G8), lambda i: (0, 0)),
            pl.BlockSpec((1, G8), lambda i: (0, 0)),
        ],
        out_specs=pl.BlockSpec((row_tile, G8), lambda i: (i, 0)),
        out_shape=jax.ShapeDtypeStruct((R, G8), jnp.float32),
        compiler_params=pltpu.CompilerParams(
            dimension_semantics=("parallel",)),
    )(x2, wih, bias)
    gx3 = gx.reshape(Tp, N, G8)

    # Block-diagonal recurrent weights: rows [0:H] (h_fwd) feed the fwd gate
    # columns, rows [H:2H] (h_bwd) feed the bwd gate columns.
    whh_bd = jnp.zeros((2 * H, G8), jnp.float32)
    whh_bd = whh_bd.at[0:H, 0:G4].set(lstm_params["whh_f"])
    whh_bd = whh_bd.at[H:2 * H, G4:G8].set(lstm_params["whh_b"])
    whh_bd = whh_bd.astype(jnp.bfloat16)

    # Gates are streamed chunk-by-chunk (bwd chunks in reverse order); h/c are
    # carried across chunks in VMEM scratch, so VMEM use is O(chunk), not O(T).
    # TODO(synk): v7x - run fwd/bwd directions on separate TensorCores.
    out_f, out_b = pl.pallas_call(
        _bilstm_rec_kernel,
        grid=(nc,),
        in_specs=[
            pl.BlockSpec((t_tile, N, G4), lambda i: (i, 0, 0)),           # fwd gates
            pl.BlockSpec((t_tile, N, G4), lambda i: (nc - 1 - i, 0, 1)),  # bwd gates
            pl.BlockSpec((2 * H, G8), lambda i: (0, 0)),
        ],
        out_specs=(pl.BlockSpec((t_tile, N, H), lambda i: (i, 0, 0)),
                   pl.BlockSpec((t_tile, N, H), lambda i: (nc - 1 - i, 0, 0))),
        out_shape=(jax.ShapeDtypeStruct((Tp, N, H), jnp.float32),
                   jax.ShapeDtypeStruct((Tp, N, H), jnp.float32)),
        scratch_shapes=[pltpu.VMEM((N, 2 * H), jnp.float32),
                        pltpu.VMEM((N, 2 * H), jnp.float32)],
        compiler_params=pltpu.CompilerParams(
            dimension_semantics=("arbitrary",)),
    )(gx3, gx3, whh_bd)
    return out_f, out_b


# ------------------------------- Encoder ------------------------------------

class HParams:
    encoder_embedding_dim = 512
    encoder_n_convolutions = 2
    encoder_input_dim = [512, 256]
    encoder_output_dim = [256, 256]
    encoder_kernel_size = 5
    encoder_cnn_dropout_p = 0.5


def init_encoder_params(key, hp):
    params = {"convs": [], "lstm": {}}
    K = hp.encoder_kernel_size
    keys = jax.random.split(key, 8 * hp.encoder_n_convolutions + 8)
    ki = 0
    for i in range(hp.encoder_n_convolutions):
        cin = hp.encoder_input_dim[i]
        cout = hp.encoder_output_dim[i]
        gain = math.sqrt(2.0)                                   # relu gain
        a = gain * math.sqrt(6.0 / (cin * K + cout * K))        # xavier_uniform
        w = jax.random.uniform(keys[ki], (K, cin, cout), jnp.float32, -a, a); ki += 1
        bb = 1.0 / math.sqrt(cin * K)
        bias = jax.random.uniform(keys[ki], (cout,), jnp.float32, -bb, bb); ki += 1
        gamma = 1.0 + 0.1 * jax.random.normal(keys[ki], (cout,), jnp.float32); ki += 1
        beta = 0.05 * jax.random.normal(keys[ki], (cout,), jnp.float32); ki += 1
        mean = 0.1 * jax.random.normal(keys[ki], (cout,), jnp.float32); ki += 1
        var = 1.0 + 0.2 * jax.random.uniform(keys[ki], (cout,), jnp.float32); ki += 1
        params["convs"].append(dict(w=w, bias=bias, gamma=gamma, beta=beta,
                                    mean=mean, var=var))
    D = hp.encoder_output_dim[-1]
    H = D // 2
    s = 1.0 / math.sqrt(H)

    def u(k, shape):
        return jax.random.uniform(k, shape, jnp.float32, -s, s)

    params["lstm"] = dict(
        wih_f=u(keys[ki + 0], (D, 4 * H)), whh_f=u(keys[ki + 1], (H, 4 * H)),
        b_f=u(keys[ki + 2], (4 * H,)) + u(keys[ki + 3], (4 * H,)),
        wih_b=u(keys[ki + 4], (D, 4 * H)), whh_b=u(keys[ki + 5], (H, 4 * H)),
        b_b=u(keys[ki + 6], (4 * H,)) + u(keys[ki + 7], (4 * H,)),
    )
    return params


def encoder_forward(x_nct, params, hp, *, t_tile=128):
    assert x_nct.shape[1] == 512                     # mirrors the PyTorch assert
    N, _, T = x_nct.shape
    tt = min(t_tile, ((T + 7) // 8) * 8)             # effective time tile
    assert tt % 8 == 0
    x = jnp.transpose(x_nct, (2, 0, 1)).astype(jnp.bfloat16)   # (T, N, C) time-major
    eps = 1e-5
    for i in range(hp.encoder_n_convolutions):
        p = params["convs"][i]
        scale = p["gamma"] / jnp.sqrt(p["var"] + eps)
        shift = p["beta"] - p["mean"] * scale + p["bias"] * scale
        w_folded = (p["w"] * scale[None, None, :]).astype(jnp.bfloat16)  # BN scale folded
        x = conv_bn_relu(x, w_folded, shift, t_tile=tt)
        # Dropout: identity in eval mode.
    out_f, out_b = bilstm(x, params["lstm"], t_valid=T, t_tile=tt)  # (Tp, N, H) each
    out_tn = jnp.concatenate([out_f[:T], out_b[:T]], axis=-1)       # (T, N, 2H)
    return jnp.transpose(out_tn, (1, 0, 2))                         # (N, T, 2H)


# ----------------------------- pure-JAX reference ----------------------------

def encoder_reference(x_nct, params, hp):
    x = jnp.transpose(x_nct, (0, 2, 1)).astype(jnp.float32)    # (N, T, C)
    eps = 1e-5
    pad = (hp.encoder_kernel_size - 1) // 2
    hi = lax.Precision.HIGHEST
    for i in range(hp.encoder_n_convolutions):
        p = params["convs"][i]
        K = p["w"].shape[0]
        T = x.shape[1]
        xp = jnp.pad(x, ((0, 0), (pad, pad), (0, 0)))
        y = sum(jnp.einsum("ntc,co->nto", xp[:, k:k + T, :], p["w"][k], precision=hi)
                for k in range(K))
        y = y + p["bias"]
        scale = p["gamma"] / jnp.sqrt(p["var"] + eps)
        y = (y - p["mean"]) * scale + p["beta"]
        x = jnp.maximum(y, 0.0)
    lp = params["lstm"]
    N, T, D = x.shape
    H = lp["whh_f"].shape[0]

    def run(seq, wih, whh, b):
        h = jnp.zeros((N, H), jnp.float32)
        c = jnp.zeros((N, H), jnp.float32)
        outs = []
        for t in range(T):
            g = (jnp.dot(seq[:, t, :], wih, precision=hi)
                 + jnp.dot(h, whh, precision=hi) + b)
            i = jax.nn.sigmoid(g[:, 0:H])
            f = jax.nn.sigmoid(g[:, H:2 * H])
            gg = jnp.tanh(g[:, 2 * H:3 * H])
            o = jax.nn.sigmoid(g[:, 3 * H:4 * H])
            c = f * c + i * gg
            h = o * jnp.tanh(c)
            outs.append(h)
        return jnp.stack(outs, axis=1)

    fwd = run(x, lp["wih_f"], lp["whh_f"], lp["b_f"])
    bwd = run(x[:, ::-1, :], lp["wih_b"], lp["whh_b"], lp["b_b"])[:, ::-1, :]
    return jnp.concatenate([fwd, bwd], axis=-1)


# ----------------------------------- main ------------------------------------

if __name__ == "__main__":
    hp = HParams()
    key = jax.random.PRNGKey(0)
    kx, kp = jax.random.split(key)

    N, C, T = 2, hp.encoder_embedding_dim, 40        # PyTorch-style NCT input
    x = jax.random.normal(kx, (N, C, T), jnp.float32)
    params = init_encoder_params(kp, hp)

    # small t_tile so the test exercises multi-tile pipelining, partial tiles,
    # the masked projection tail and the multi-chunk streamed recurrence
    fwd = jax.jit(functools.partial(encoder_forward, hp=hp, t_tile=16))
    out = jax.block_until_ready(fwd(x, params))

    H = hp.encoder_output_dim[-1] // 2
    assert out.shape == (N, T, 2 * H), out.shape

    ref = jax.block_until_ready(encoder_reference(x, params, hp))
    np.testing.assert_allclose(np.asarray(out, dtype=np.float32), np.asarray(ref),
                               rtol=3e-2, atol=3e-2)
    print("KERNEL_OK")
</pallas_src>

<mosaic_0001>
module attributes {stable_mosaic.version = 11 : i64} {
  func.func @kernel(%arg0: i32, %arg1: memref<104x512xbf16, #tpu.memory_space<any>>, %arg2: memref<5x512x256xbf16, #tpu.memory_space<vmem>>, %arg3: memref<1x256xf32, #tpu.memory_space<vmem>>, %arg4: memref<32x256xbf16, #tpu.memory_space<vmem>>, %arg5: memref<2x40x512xbf16, #tpu.memory_space<vmem>>, %arg6: memref<2x!tpu.dma_semaphore, #tpu.memory_space<semaphore_mem>>) attributes {dimension_semantics = [#tpu.dimension_semantics<arbitrary>], iteration_bounds = array<i64: 3>, scalar_prefetch = 0 : i64, scratch_operands = 2 : i64, tpu.core_type = #tpu.core_type<tc>, window_params = [{}, {pipeline_mode = #tpu.pipeline_mode<synchronous>, transform_indices = @transform_1, window_bounds = array<i64: 5, 512, 256>}, {pipeline_mode = #tpu.pipeline_mode<synchronous>, transform_indices = @transform_2, window_bounds = array<i64: 1, 256>}, {transform_indices = @transform_3, window_bounds = array<i64: 32, 256>}]} {
    %c2_i32 = arith.constant 2 : i32
    %c0_i32 = arith.constant 0 : i32
    %0 = arith.cmpi eq, %c2_i32, %c0_i32 : i32
    %c1_i32 = arith.constant 1 : i32
    %1 = arith.select %0, %c1_i32, %c2_i32 : i32
    %2 = arith.remsi %arg0, %1 : i32
    %c0_i32_0 = arith.constant 0 : i32
    %3 = arith.cmpi ne, %2, %c0_i32_0 : i32
    %c0_i32_1 = arith.constant 0 : i32
    %4 = arith.cmpi slt, %2, %c0_i32_1 : i32
    %c0_i32_2 = arith.constant 0 : i32
    %5 = arith.cmpi slt, %1, %c0_i32_2 : i32
    %6 = arith.xori %4, %5 : i1
    %7 = arith.andi %6, %3 : i1
    %8 = arith.addi %2, %1 : i32
    %9 = arith.select %7, %8, %2 : i32
    %c0_i32_3 = arith.constant 0 : i32
    %10 = arith.cmpi eq, %arg0, %c0_i32_3 : i32
    %11 = arith.extui %10 : i1 to i32
    %c0_i32_4 = arith.constant 0 : i32
    %12 = arith.cmpi ne, %11, %c0_i32_4 : i32
    scf.if %12 {
      %c0_i32_39 = arith.constant 0 : i32
      %c0_i32_40 = arith.constant 0 : i32
      %c0_i32_41 = arith.constant 0 : i32
      %c0_i32_42 = arith.constant 0 : i32
      %68 = tpu.memref_slice %arg1[%c0_i32_41, %c0_i32_42] : memref<104x512xbf16, #tpu.memory_space<any>> -> memref<40x512xbf16, #tpu.memory_space<any>>
      %c0_i32_43 = arith.constant 0 : i32
      %c0_i32_44 = arith.constant 0 : i32
      %69 = tpu.memref_slice %arg5[%c0_i32_39, %c0_i32_43, %c0_i32_44] : memref<2x40x512xbf16, #tpu.memory_space<vmem>> -> memref<1x40x512xbf16, #tpu.memory_space<vmem>>
      %70 = tpu.memref_squeeze %69 : memref<1x40x512xbf16, #tpu.memory_space<vmem>> -> memref<40x512xbf16, #tpu.memory_space<vmem>>
      %71 = tpu.memref_slice %arg6[%c0_i32_40] : memref<2x!tpu.dma_semaphore, #tpu.memory_space<semaphore_mem>> -> memref<1x!tpu.dma_semaphore, #tpu.memory_space<semaphore_mem>>
      %72 = tpu.memref_squeeze %71 : memref<1x!tpu.dma_semaphore, #tpu.memory_space<semaphore_mem>> -> memref<!tpu.dma_semaphore, #tpu.memory_space<semaphore_mem>>
      tpu.enqueue_dma source(%68 : memref<40x512xbf16, #tpu.memory_space<any>>) target(%70 : memref<40x512xbf16, #tpu.memory_space<vmem>>) target_semaphore(%72 : memref<!tpu.dma_semaphore, #tpu.memory_space<semaphore_mem>>)
    } else {
    }
    %c1_i32_5 = arith.constant 1 : i32
    %13 = arith.addi %arg0, %c1_i32_5 : i32
    %c3_i32 = arith.constant 3 : i32
    %14 = arith.cmpi slt, %13, %c3_i32 : i32
    %15 = arith.extui %14 : i1 to i32
    %c0_i32_6 = arith.constant 0 : i32
    %16 = arith.cmpi ne, %15, %c0_i32_6 : i32
    scf.if %16 {
      %c1_i32_39 = arith.constant 1 : i32
      %68 = arith.addi %arg0, %c1_i32_39 : i32
      %c1_i32_40 = arith.constant 1 : i32
      %69 = arith.subi %c1_i32_40, %9 : i32
      %c32_i32_41 = arith.constant 32 : i32
      %70 = arith.muli %68, %c32_i32_41 : i32
      %c0_i32_42 = arith.constant 0 : i32
      %71 = tpu.memref_slice %arg1[%70, %c0_i32_42] : memref<104x512xbf16, #tpu.memory_space<any>> -> memref<40x512xbf16, #tpu.memory_space<any>>
      %c0_i32_43 = arith.constant 0 : i32
      %c0_i32_44 = arith.constant 0 : i32
      %72 = tpu.memref_slice %arg5[%69, %c0_i32_43, %c0_i32_44] : memref<2x40x512xbf16, #tpu.memory_space<vmem>> -> memref<1x40x512xbf16, #tpu.memory_space<vmem>>
      %73 = tpu.memref_squeeze %72 : memref<1x40x512xbf16, #tpu.memory_space<vmem>> -> memref<40x512xbf16, #tpu.memory_space<vmem>>
      %74 = tpu.memref_slice %arg6[%69] : memref<2x!tpu.dma_semaphore, #tpu.memory_space<semaphore_mem>> -> memref<1x!tpu.dma_semaphore, #tpu.memory_space<semaphore_mem>>
      %75 = tpu.memref_squeeze %74 : memref<1x!tpu.dma_semaphore, #tpu.memory_space<semaphore_mem>> -> memref<!tpu.dma_semaphore, #tpu.memory_space<semaphore_mem>>
      tpu.enqueue_dma source(%71 : memref<40x512xbf16, #tpu.memory_space<any>>) target(%73 : memref<40x512xbf16, #tpu.memory_space<vmem>>) target_semaphore(%75 : memref<!tpu.dma_semaphore, #tpu.memory_space<semaphore_mem>>)
    } else {
    }
    %c32_i32 = arith.constant 32 : i32
    %17 = arith.muli %arg0, %c32_i32 : i32
    %c0_i32_7 = arith.constant 0 : i32
    %18 = tpu.memref_slice %arg1[%17, %c0_i32_7] : memref<104x512xbf16, #tpu.memory_space<any>> -> memref<40x512xbf16, #tpu.memory_space<any>>
    %c0_i32_8 = arith.constant 0 : i32
    %c0_i32_9 = arith.constant 0 : i32
    %19 = tpu.memref_slice %arg5[%9, %c0_i32_8, %c0_i32_9] : memref<2x40x512xbf16, #tpu.memory_space<vmem>> -> memref<1x40x512xbf16, #tpu.memory_space<vmem>>
    %20 = tpu.memref_squeeze %19 : memref<1x40x512xbf16, #tpu.memory_space<vmem>> -> memref<40x512xbf16, #tpu.memory_space<vmem>>
    %21 = tpu.memref_slice %arg6[%9] : memref<2x!tpu.dma_semaphore, #tpu.memory_space<semaphore_mem>> -> memref<1x!tpu.dma_semaphore, #tpu.memory_space<semaphore_mem>>
    %22 = tpu.memref_squeeze %21 : memref<1x!tpu.dma_semaphore, #tpu.memory_space<semaphore_mem>> -> memref<!tpu.dma_semaphore, #tpu.memory_space<semaphore_mem>>
    tpu.wait_dma2 semaphore(%22 : memref<!tpu.dma_semaphore, #tpu.memory_space<semaphore_mem>>) src(%18 : memref<40x512xbf16, #tpu.memory_space<any>>) dst(%20 : memref<40x512xbf16, #tpu.memory_space<vmem>>)
    %23 = arith.index_cast %9 : i32 to index
    %c0 = arith.constant 0 : index
    %c0_10 = arith.constant 0 : index
    %24 = vector.load %arg5[%23, %c0, %c0_10] : memref<2x40x512xbf16, #tpu.memory_space<vmem>>, vector<1x32x512xbf16>
    %25 = vector.shape_cast %24 : vector<1x32x512xbf16> to vector<32x512xbf16>
    %c0_11 = arith.constant 0 : index
    %c0_12 = arith.constant 0 : index
    %c0_13 = arith.constant 0 : index
    %26 = vector.load %arg2[%c0_11, %c0_12, %c0_13] : memref<5x512x256xbf16, #tpu.memory_space<vmem>>, vector<1x512x256xbf16>
    %27 = vector.shape_cast %26 : vector<1x512x256xbf16> to vector<512x256xbf16>
    %cst = arith.constant dense<0.000000e+00> : vector<32x256xf32>
    %28 = tpu.matmul %25, %27, %cst {dimension_numbers = #tpu.dot_dimension_numbers<[1], [0], [0], [1], [0, 0, 1, 1], [], []>} : vector<32x512xbf16>, vector<512x256xbf16>, vector<32x256xf32> -> vector<32x256xf32>
    %29 = arith.index_cast %9 : i32 to index
    %c2 = arith.constant 2 : index
    %c0_14 = arith.constant 0 : index
    %30 = vector.load %arg5[%29, %c2, %c0_14] : memref<2x40x512xbf16, #tpu.memory_space<vmem>>, vector<1x32x512xbf16>
    %31 = vector.shape_cast %30 : vector<1x32x512xbf16> to vector<32x512xbf16>
    %c1 = arith.constant 1 : index
    %c0_15 = arith.constant 0 : index
    %c0_16 = arith.constant 0 : index
    %32 = vector.load %arg2[%c1, %c0_15, %c0_16] : memref<5x512x256xbf16, #tpu.memory_space<vmem>>, vector<1x512x256xbf16>
    %33 = vector.shape_cast %32 : vector<1x512x256xbf16> to vector<512x256xbf16>
    %cst_17 = arith.constant dense<0.000000e+00> : vector<32x256xf32>
    %34 = tpu.matmul %31, %33, %cst_17 {dimension_numbers = #tpu.dot_dimension_numbers<[1], [0], [0], [1], [0, 0, 1, 1], [], []>} : vector<32x512xbf16>, vector<512x256xbf16>, vector<32x256xf32> -> vector<32x256xf32>
    %35 = arith.addf %28, %34 : vector<32x256xf32>
    %36 = arith.index_cast %9 : i32 to index
    %c4 = arith.constant 4 : index
    %c0_18 = arith.constant 0 : index
    %37 = vector.load %arg5[%36, %c4, %c0_18] : memref<2x40x512xbf16, #tpu.memory_space<vmem>>, vector<1x32x512xbf16>
    %38 = vector.shape_cast %37 : vector<1x32x512xbf16> to vector<32x512xbf16>
    %c2_19 = arith.constant 2 : index
    %c0_20 = arith.constant 0 : index
    %c0_21 = arith.constant 0 : index
    %39 = vector.load %arg2[%c2_19, %c0_20, %c0_21] : memref<5x512x256xbf16, #tpu.memory_space<vmem>>, vector<1x512x256xbf16>
    %40 = vector.shape_cast %39 : vector<1x512x256xbf16> to vector<512x256xbf16>
    %cst_22 = arith.constant dense<0.000000e+00> : vector<32x256xf32>
    %41 = tpu.matmul %38, %40, %cst_22 {dimension_numbers = #tpu.dot_dimension_numbers<[1], [0], [0], [1], [0, 0, 1, 1], [], []>} : vector<32x512xbf16>, vector<512x256xbf16>, vector<32x256xf32> -> vector<32x256xf32>
    %42 = arith.addf %35, %41 : vector<32x256xf32>
    %43 = arith.index_cast %9 : i32 to index
    %c6 = arith.constant 6 : index
    %c0_23 = arith.constant 0 : index
    %44 = vector.load %arg5[%43, %c6, %c0_23] : memref<2x40x512xbf16, #tpu.memory_space<vmem>>, vector<1x32x512xbf16>
    %45 = vector.shape_cast %44 : vector<1x32x512xbf16> to vector<32x512xbf16>
    %c3 = arith.constant 3 : index
    %c0_24 = arith.constant 0 : index
    %c0_25 = arith.constant 0 : index
    %46 = vector.load %arg2[%c3, %c0_24, %c0_25] : memref<5x512x256xbf16, #tpu.memory_space<vmem>>, vector<1x512x256xbf16>
    %47 = vector.shape_cast %46 : vector<1x512x256xbf16> to vector<512x256xbf16>
    %cst_26 = arith.constant dense<0.000000e+00> : vector<32x256xf32>
    %48 = tpu.matmul %45, %47, %cst_26 {dimension_numbers = #tpu.dot_dimension_numbers<[1], [0], [0], [1], [0, 0, 1, 1], [], []>} : vector<32x512xbf16>, vector<512x256xbf16>, vector<32x256xf32> -> vector<32x256xf32>
    %49 = arith.addf %42, %48 : vector<32x256xf32>
    %50 = arith.index_cast %9 : i32 to index
    %c8 = arith.constant 8 : index
    %c0_27 = arith.constant 0 : index
    %51 = vector.load %arg5[%50, %c8, %c0_27] : memref<2x40x512xbf16, #tpu.memory_space<vmem>>, vector<1x32x512xbf16>
    %52 = vector.shape_cast %51 : vector<1x32x512xbf16> to vector<32x512xbf16>
    %c4_28 = arith.constant 4 : index
    %c0_29 = arith.constant 0 : index
    %c0_30 = arith.constant 0 : index
    %53 = vector.load %arg2[%c4_28, %c0_29, %c0_30] : memref<5x512x256xbf16, #tpu.memory_space<vmem>>, vector<1x512x256xbf16>
    %54 = vector.shape_cast %53 : vector<1x512x256xbf16> to vector<512x256xbf16>
    %cst_31 = arith.constant dense<0.000000e+00> : vector<32x256xf32>
    %55 = tpu.matmul %52, %54, %cst_31 {dimension_numbers = #tpu.dot_dimension_numbers<[1], [0], [0], [1], [0, 0, 1, 1], [], []>} : vector<32x512xbf16>, vector<512x256xbf16>, vector<32x256xf32> -> vector<32x256xf32>
    %56 = arith.addf %49, %55 : vector<32x256xf32>
    %c0_32 = arith.constant 0 : index
    %c0_33 = arith.constant 0 : index
    %57 = vector.load %arg3[%c0_32, %c0_33] : memref<1x256xf32, #tpu.memory_space<vmem>>, vector<1x256xf32>
    %58 = vector.broadcast %57 : vector<1x256xf32> to vector<32x256xf32>
    %59 = arith.addf %56, %58 : vector<32x256xf32>
    %cst_34 = arith.constant 0.000000e+00 : f32
    %60 = vector.broadcast %cst_34 : f32 to vector<32x256xf32>
    %61 = arith.maximumf %59, %60 : vector<32x256xf32>
    %c2_i32_35 = arith.constant 2 : i32
    %62 = arith.cmpi eq, %arg0, %c2_i32_35 : i32
    %63 = arith.extui %62 : i1 to i32
    %c0_i32_36 = arith.constant 0 : i32
    %64 = arith.cmpi ne, %63, %c0_i32_36 : i32
    scf.if %64 {
      %68 = tpu.iota {dimensions = array<i32: 0>} : vector<32x256xi32>
      %c16_i32 = arith.constant 16 : i32
      %69 = vector.broadcast %c16_i32 : i32 to vector<32x256xi32>
      %70 = arith.cmpi slt, %68, %69 : vector<32x256xi32>
      %cst_39 = arith.constant 0.000000e+00 : f32
      %71 = vector.broadcast %cst_39 : f32 to vector<32x256xf32>
      %72 = arith.select %70, %61, %71 : vector<32x256xi1>, vector<32x256xf32>
      %73 = arith.truncf %72 : vector<32x256xf32> to vector<32x256xbf16>
      %c0_40 = arith.constant 0 : index
      %c0_41 = arith.constant 0 : index
      %74 = vector.load %arg4[%c0_40, %c0_41] : memref<32x256xbf16, #tpu.memory_space<vmem>>, vector<32x256xbf16>
      tpu.vector_store %arg4[%c0_40, %c0_41], %73 {strides = array<i32>} : memref<32x256xbf16, #tpu.memory_space<vmem>>, vector<32x256xbf16>,
    } else {
    }
    %c2_i32_37 = arith.constant 2 : i32
    %65 = arith.cmpi ne, %arg0, %c2_i32_37 : i32
    %66 = arith.extui %65 : i1 to i32
    %c0_i32_38 = arith.constant 0 : i32
    %67 = arith.cmpi ne, %66, %c0_i32_38 : i32
    scf.if %67 {
      %68 = arith.truncf %61 : vector<32x256xf32> to vector<32x256xbf16>
      %c0_39 = arith.constant 0 : index
      %c0_40 = arith.constant 0 : index
      %69 = vector.load %arg4[%c0_39, %c0_40] : memref<32x256xbf16, #tpu.memory_space<vmem>>, vector<32x256xbf16>
      tpu.vector_store %arg4[%c0_39, %c0_40], %68 {strides = array<i32>} : memref<32x256xbf16, #tpu.memory_space<vmem>>, vector<32x256xbf16>,
    } else {
    }
    return
  }
  func.func @transform_1(%arg0: i32) -> (i32, i32, i32) {
    %c0_i32 = arith.constant 0 : i32
    %c0_i32_0 = arith.constant 0 : i32
    %c0_i32_1 = arith.constant 0 : i32
    %c0_i32_2 = arith.constant 0 : i32
    return %c0_i32, %c0_i32_0, %c0_i32_1 : i32, i32, i32
  }
  func.func @transform_2(%arg0: i32) -> (i32, i32) {
    %c0_i32 = arith.constant 0 : i32
    %c0_i32_0 = arith.constant 0 : i32
    %c0_i32_1 = arith.constant 0 : i32
    return %c0_i32, %c0_i32_0 : i32, i32
  }
  func.func @transform_3(%arg0: i32) -> (i32, i32) {
    %c0_i32 = arith.constant 0 : i32
    %c0_i32_0 = arith.constant 0 : i32
    return %arg0, %c0_i32 : i32, i32
  }
}

module attributes {stable_mosaic.version = 11 : i64} {
  func.func @kernel(%arg0: i32, %arg1: memref<104x256xbf16, #tpu.memory_space<any>>, %arg2: memref<5x256x256xbf16, #tpu.memory_space<vmem>>, %arg3: memref<1x256xf32, #tpu.memory_space<vmem>>, %arg4: memref<32x256xbf16, #tpu.memory_space<vmem>>, %arg5: memref<2x40x256xbf16, #tpu.memory_space<vmem>>, %arg6: memref<2x!tpu.dma_semaphore, #tpu.memory_space<semaphore_mem>>) attributes {dimension_semantics = [#tpu.dimension_semantics<arbitrary>], iteration_bounds = array<i64: 3>, scalar_prefetch = 0 : i64, scratch_operands = 2 : i64, tpu.core_type = #tpu.core_type<tc>, window_params = [{}, {pipeline_mode = #tpu.pipeline_mode<synchronous>, transform_indices = @transform_1, window_bounds = array<i64: 5, 256, 256>}, {pipeline_mode = #tpu.pipeline_mode<synchronous>, transform_indices = @transform_2, window_bounds = array<i64: 1, 256>}, {transform_indices = @transform_3, window_bounds = array<i64: 32, 256>}]} {
    %c2_i32 = arith.constant 2 : i32
    %c0_i32 = arith.constant 0 : i32
    %0 = arith.cmpi eq, %c2_i32, %c0_i32 : i32
    %c1_i32 = arith.constant 1 : i32
    %1 = arith.select %0, %c1_i32, %c2_i32 : i32
    %2 = arith.remsi %arg0, %1 : i32
    %c0_i32_0 = arith.constant 0 : i32
    %3 = arith.cmpi ne, %2, %c0_i32_0 : i32
    %c0_i32_1 = arith.constant 0 : i32
    %4 = arith.cmpi slt, %2, %c0_i32_1 : i32
    %c0_i32_2 = arith.constant 0 : i32
    %5 = arith.cmpi slt, %1, %c0_i32_2 : i32
    %6 = arith.xori %4, %5 : i1
    %7 = arith.andi %6, %3 : i1
    %8 = arith.addi %2, %1 : i32
    %9 = arith.select %7, %8, %2 : i32
    %c0_i32_3 = arith.constant 0 : i32
    %10 = arith.cmpi eq, %arg0, %c0_i32_3 : i32
    %11 = arith.extui %10 : i1 to i32
    %c0_i32_4 = arith.constant 0 : i32
    %12 = arith.cmpi ne, %11, %c0_i32_4 : i32
    scf.if %12 {
      %c0_i32_37 = arith.constant 0 : i32
      %c0_i32_38 = arith.constant 0 : i32
      %c0_i32_39 = arith.constant 0 : i32
      %c0_i32_40 = arith.constant 0 : i32
      %64 = tpu.memref_slice %arg1[%c0_i32_39, %c0_i32_40] : memref<104x256xbf16, #tpu.memory_space<any>> -> memref<40x256xbf16, #tpu.memory_space<any>>
      %c0_i32_41 = arith.constant 0 : i32
      %c0_i32_42 = arith.constant 0 : i32
      %65 = tpu.memref_slice %arg5[%c0_i32_37, %c0_i32_41, %c0_i32_42] : memref<2x40x256xbf16, #tpu.memory_space<vmem>> -> memref<1x40x256xbf16, #tpu.memory_space<vmem>>
      %66 = tpu.memref_squeeze %65 : memref<1x40x256xbf16, #tpu.memory_space<vmem>> -> memref<40x256xbf16, #tpu.memory_space<vmem>>
      %67 = tpu.memref_slice %arg6[%c0_i32_38] : memref<2x!tpu.dma_semaphore, #tpu.memory_space<semaphore_mem>> -> memref<1x!tpu.dma_semaphore, #tpu.memory_space<semaphore_mem>>
      %68 = tpu.memref_squeeze %67 : memref<1x!tpu.dma_semaphore, #tpu.memory_space<semaphore_mem>> -> memref<!tpu.dma_semaphore, #tpu.memory_space<semaphore_mem>>
      tpu.enqueue_dma source(%64 : memref<40x256xbf16, #tpu.memory_space<any>>) target(%66 : memref<40x256xbf16, #tpu.memory_space<vmem>>) target_semaphore(%68 : memref<!tpu.dma_semaphore, #tpu.memory_space<semaphore_mem>>)
    } else {
    }
    %c1_i32_5 = arith.constant 1 : i32
    %13 = arith.addi %arg0, %c1_i32_5 : i32
    %c3_i32 = arith.constant 3 : i32
    %14 = arith.cmpi slt, %13, %c3_i32 : i32
    %15 = arith.extui %14 : i1 to i32
    %c0_i32_6 = arith.constant 0 : i32
    %16 = arith.cmpi ne, %15, %c0_i32_6 : i32
    scf.if %16 {
      %c1_i32_37 = arith.constant 1 : i32
      %64 = arith.addi %arg0, %c1_i32_37 : i32
      %c1_i32_38 = arith.constant 1 : i32
      %65 = arith.subi %c1_i32_38, %9 : i32
      %c32_i32_39 = arith.constant 32 : i32
      %66 = arith.muli %64, %c32_i32_39 : i32
      %c0_i32_40 = arith.constant 0 : i32
      %67 = tpu.memref_slice %arg1[%66, %c0_i32_40] : memref<104x256xbf16, #tpu.memory_space<any>> -> memref<40x256xbf16, #tpu.memory_space<any>>
      %c0_i32_41 = arith.constant 0 : i32
      %c0_i32_42 = arith.constant 0 : i32
      %68 = tpu.memref_slice %arg5[%65, %c0_i32_41, %c0_i32_42] : memref<2x40x256xbf16, #tpu.memory_space<vmem>> -> memref<1x40x256xbf16, #tpu.memory_space<vmem>>
      %69 = tpu.memref_squeeze %68 : memref<1x40x256xbf16, #tpu.memory_space<vmem>> -> memref<40x256xbf16, #tpu.memory_space<vmem>>
      %70 = tpu.memref_slice %arg6[%65] : memref<2x!tpu.dma_semaphore, #tpu.memory_space<semaphore_mem>> -> memref<1x!tpu.dma_semaphore, #tpu.memory_space<semaphore_mem>>
      %71 = tpu.memref_squeeze %70 : memref<1x!tpu.dma_semaphore, #tpu.memory_space<semaphore_mem>> -> memref<!tpu.dma_semaphore, #tpu.memory_space<semaphore_mem>>
      tpu.enqueue_dma source(%67 : memref<40x256xbf16, #tpu.memory_space<any>>) target(%69 : memref<40x256xbf16, #tpu.memory_space<vmem>>) target_semaphore(%71 : memref<!tpu.dma_semaphore, #tpu.memory_space<semaphore_mem>>)
    } else {
    }
    %c32_i32 = arith.constant 32 : i32
    %17 = arith.muli %arg0, %c32_i32 : i32
    %c0_i32_7 = arith.constant 0 : i32
    %18 = tpu.memref_slice %arg1[%17, %c0_i32_7] : memref<104x256xbf16, #tpu.memory_space<any>> -> memref<40x256xbf16, #tpu.memory_space<any>>
    %c0_i32_8 = arith.constant 0 : i32
    %c0_i32_9 = arith.constant 0 : i32
    %19 = tpu.memref_slice %arg5[%9, %c0_i32_8, %c0_i32_9] : memref<2x40x256xbf16, #tpu.memory_space<vmem>> -> memref<1x40x256xbf16, #tpu.memory_space<vmem>>
    %20 = tpu.memref_squeeze %19 : memref<1x40x256xbf16, #tpu.memory_space<vmem>> -> memref<40x256xbf16, #tpu.memory_space<vmem>>
    %21 = tpu.memref_slice %arg6[%9] : memref<2x!tpu.dma_semaphore, #tpu.memory_space<semaphore_mem>> -> memref<1x!tpu.dma_semaphore, #tpu.memory_space<semaphore_mem>>
    %22 = tpu.memref_squeeze %21 : memref<1x!tpu.dma_semaphore, #tpu.memory_space<semaphore_mem>> -> memref<!tpu.dma_semaphore, #tpu.memory_space<semaphore_mem>>
    tpu.wait_dma2 semaphore(%22 : memref<!tpu.dma_semaphore, #tpu.memory_space<semaphore_mem>>) src(%18 : memref<40x256xbf16, #tpu.memory_space<any>>) dst(%20 : memref<40x256xbf16, #tpu.memory_space<vmem>>)
    %23 = arith.index_cast %9 : i32 to index
    %c0 = arith.constant 0 : index
    %c0_10 = arith.constant 0 : index
    %24 = vector.load %arg5[%23, %c0, %c0_10] : memref<2x40x256xbf16, #tpu.memory_space<vmem>>, vector<1x32x256xbf16>
    %25 = vector.shape_cast %24 : vector<1x32x256xbf16> to vector<32x256xbf16>
    %c0_11 = arith.constant 0 : index
    %c0_12 = arith.constant 0 : index
    %c0_13 = arith.constant 0 : index
    %26 = vector.load %arg2[%c0_11, %c0_12, %c0_13] : memref<5x256x256xbf16, #tpu.memory_space<vmem>>, vector<1x256x256xbf16>
    %27 = vector.shape_cast %26 : vector<1x256x256xbf16> to vector<256x256xbf16>
    %cst = arith.constant dense<0.000000e+00> : vector<32x256xf32>
    %28 = tpu.matmul %25, %27, %cst {dimension_numbers = #tpu.dot_dimension_numbers<[1], [0], [0], [1], [0, 0, 1, 1], [], []>} : vector<32x256xbf16>, vector<256x256xbf16>, vector<32x256xf32> -> vector<32x256xf32>
    %29 = arith.index_cast %9 : i32 to index
    %c2 = arith.constant 2 : index
    %c0_14 = arith.constant 0 : index
    %30 = vector.load %arg5[%29, %c2, %c0_14] : memref<2x40x256xbf16, #tpu.memory_space<vmem>>, vector<1x32x256xbf16>
    %31 = vector.shape_cast %30 : vector<1x32x256xbf16> to vector<32x256xbf16>
    %c1 = arith.constant 1 : index
    %c0_15 = arith.constant 0 : index
    %c0_16 = arith.constant 0 : index
    %32 = vector.load %arg2[%c1, %c0_15, %c0_16] : memref<5x256x256xbf16, #tpu.memory_space<vmem>>, vector<1x256x256xbf16>
    %33 = vector.shape_cast %32 : vector<1x256x256xbf16> to vector<256x256xbf16>
    %cst_17 = arith.constant dense<0.000000e+00> : vector<32x256xf32>
    %34 = tpu.matmul %31, %33, %cst_17 {dimension_numbers = #tpu.dot_dimension_numbers<[1], [0], [0], [1], [0, 0, 1, 1], [], []>} : vector<32x256xbf16>, vector<256x256xbf16>, vector<32x256xf32> -> vector<32x256xf32>
    %35 = arith.addf %28, %34 : vector<32x256xf32>
    %36 = arith.index_cast %9 : i32 to index
    %c4 = arith.constant 4 : index
    %c0_18 = arith.constant 0 : index
    %37 = vector.load %arg5[%36, %c4, %c0_18] : memref<2x40x256xbf16, #tpu.memory_space<vmem>>, vector<1x32x256xbf16>
    %38 = vector.shape_cast %37 : vector<1x32x256xbf16> to vector<32x256xbf16>
    %c2_19 = arith.constant 2 : index
    %c0_20 = arith.constant 0 : index
    %c0_21 = arith.constant 0 : index
    %39 = vector.load %arg2[%c2_19, %c0_20, %c0_21] : memref<5x256x256xbf16, #tpu.memory_space<vmem>>, vector<1x256x256xbf16>
    %40 = vector.shape_cast %39 : vector<1x256x256xbf16> to vector<256x256xbf16>
    %cst_22 = arith.constant dense<0.000000e+00> : vector<32x256xf32>
    %41 = tpu.matmul %38, %40, %cst_22 {dimension_numbers = #tpu.dot_dimension_numbers<[1], [0], [0], [1], [0, 0, 1, 1], [], []>} : vector<32x256xbf16>, vector<256x256xbf16>, vector<32x256xf32> -> vector<32x256xf32>
    %42 = arith.addf %35, %41 : vector<32x256xf32>
    %43 = arith.index_cast %9 : i32 to index
    %c6 = arith.constant 6 : index
    %c0_23 = arith.constant 0 : index
    %44 = vector.load %arg5[%43, %c6, %c0_23] : memref<2x40x256xbf16, #tpu.memory_space<vmem>>, vector<1x32x256xbf16>
    %45 = vector.shape_cast %44 : vector<1x32x256xbf16> to vector<32x256xbf16>
    %c3 = arith.constant 3 : index
    %c0_24 = arith.constant 0 : index
    %c0_25 = arith.constant 0 : index
    %46 = vector.load %arg2[%c3, %c0_24, %c0_25] : memref<5x256x256xbf16, #tpu.memory_space<vmem>>, vector<1x256x256xbf16>
    %47 = vector.shape_cast %46 : vector<1x256x256xbf16> to vector<256x256xbf16>
    %cst_26 = arith.constant dense<0.000000e+00> : vector<32x256xf32>
    %48 = tpu.matmul %45, %47, %cst_26 {dimension_numbers = #tpu.dot_dimension_numbers<[1], [0], [0], [1], [0, 0, 1, 1], [], []>} : vector<32x256xbf16>, vector<256x256xbf16>, vector<32x256xf32> -> vector<32x256xf32>
    %49 = arith.addf %42, %48 : vector<32x256xf32>
    %50 = arith.index_cast %9 : i32 to index
    %c8 = arith.constant 8 : index
    %c0_27 = arith.constant 0 : index
    %51 = vector.load %arg5[%50, %c8, %c0_27] : memref<2x40x256xbf16, #tpu.memory_space<vmem>>, vector<1x32x256xbf16>
    %52 = vector.shape_cast %51 : vector<1x32x256xbf16> to vector<32x256xbf16>
    %c4_28 = arith.constant 4 : index
    %c0_29 = arith.constant 0 : index
    %c0_30 = arith.constant 0 : index
    %53 = vector.load %arg2[%c4_28, %c0_29, %c0_30] : memref<5x256x256xbf16, #tpu.memory_space<vmem>>, vector<1x256x256xbf16>
    %54 = vector.shape_cast %53 : vector<1x256x256xbf16> to vector<256x256xbf16>
    %cst_31 = arith.constant dense<0.000000e+00> : vector<32x256xf32>
    %55 = tpu.matmul %52, %54, %cst_31 {dimension_numbers = #tpu.dot_dimension_numbers<[1], [0], [0], [1], [0, 0, 1, 1], [], []>} : vector<32x256xbf16>, vector<256x256xbf16>, vector<32x256xf32> -> vector<32x256xf32>
    %56 = arith.addf %49, %55 : vector<32x256xf32>
    %c0_32 = arith.constant 0 : index
    %c0_33 = arith.constant 0 : index
    %57 = vector.load %arg3[%c0_32, %c0_33] : memref<1x256xf32, #tpu.memory_space<vmem>>, vector<1x256xf32>
    %58 = vector.broadcast %57 : vector<1x256xf32> to vector<32x256xf32>
    %59 = arith.addf %56, %58 : vector<32x256xf32>
    %cst_34 = arith.constant 0.000000e+00 : f32
    %60 = vector.broadcast %cst_34 : f32 to vector<32x256xf32>
    %61 = arith.maximumf %59, %60 : vector<32x256xf32>
    %62 = arith.truncf %61 : vector<32x256xf32> to vector<32x256xbf16>
    %c0_35 = arith.constant 0 : index
    %c0_36 = arith.constant 0 : index
    %63 = vector.load %arg4[%c0_35, %c0_36] : memref<32x256xbf16, #tpu.memory_space<vmem>>, vector<32x256xbf16>
    tpu.vector_store %arg4[%c0_35, %c0_36], %62 {strides = array<i32>} : memref<32x256xbf16, #tpu.memory_space<vmem>>, vector<32x256xbf16>,
    return
  }
  func.func @transform_1(%arg0: i32) -> (i32, i32, i32) {
    %c0_i32 = arith.constant 0 : i32
    %c0_i32_0 = arith.constant 0 : i32
    %c0_i32_1 = arith.constant 0 : i32
    %c0_i32_2 = arith.constant 0 : i32
    return %c0_i32, %c0_i32_0, %c0_i32_1 : i32, i32, i32
  }
  func.func @transform_2(%arg0: i32) -> (i32, i32) {
    %c0_i32 = arith.constant 0 : i32
    %c0_i32_0 = arith.constant 0 : i32
    %c0_i32_1 = arith.constant 0 : i32
    return %c0_i32, %c0_i32_0 : i32, i32
  }
  func.func @transform_3(%arg0: i32) -> (i32, i32) {
    %c0_i32 = arith.constant 0 : i32
    %c0_i32_0 = arith.constant 0 : i32
    return %arg0, %c0_i32 : i32, i32
  }
}

module attributes {stable_mosaic.version = 11 : i64} {
  func.func @proj_kernel(%arg0: i32, %arg1: memref<32x256xbf16, #tpu.memory_space<vmem>>, %arg2: memref<256x1024xbf16, #tpu.memory_space<vmem>>, %arg3: memref<1x1024xf32, #tpu.memory_space<vmem>>, %arg4: memref<32x1024xf32, #tpu.memory_space<vmem>>) attributes {dimension_semantics = [#tpu.dimension_semantics<parallel>], iteration_bounds = array<i64: 3>, scalar_prefetch = 0 : i64, scratch_operands = 0 : i64, tpu.core_type = #tpu.core_type<tc>, window_params = [{transform_indices = @transform_0, window_bounds = array<i64: 32, 256>}, {pipeline_mode = #tpu.pipeline_mode<synchronous>, transform_indices = @transform_1, window_bounds = array<i64: 256, 1024>}, {pipeline_mode = #tpu.pipeline_mode<synchronous>, transform_indices = @transform_2, window_bounds = array<i64: 1, 1024>}, {transform_indices = @transform_3, window_bounds = array<i64: 32, 1024>}]} {
    %c0 = arith.constant 0 : index
    %c0_0 = arith.constant 0 : index
    %0 = vector.load %arg1[%c0, %c0_0] : memref<32x256xbf16, #tpu.memory_space<vmem>>, vector<32x256xbf16>
    %c0_1 = arith.constant 0 : index
    %c0_2 = arith.constant 0 : index
    %1 = vector.load %arg2[%c0_1, %c0_2] : memref<256x1024xbf16, #tpu.memory_space<vmem>>, vector<256x1024xbf16>
    %cst = arith.constant dense<0.000000e+00> : vector<32x1024xf32>
    %2 = tpu.matmul %0, %1, %cst {dimension_numbers = #tpu.dot_dimension_numbers<[1], [0], [0], [1], [0, 0, 1, 1], [], []>} : vector<32x256xbf16>, vector<256x1024xbf16>, vector<32x1024xf32> -> vector<32x1024xf32>
    %c0_3 = arith.constant 0 : index
    %c0_4 = arith.constant 0 : index
    %3 = vector.load %arg3[%c0_3, %c0_4] : memref<1x1024xf32, #tpu.memory_space<vmem>>, vector<1x1024xf32>
    %4 = vector.broadcast %3 : vector<1x1024xf32> to vector<32x1024xf32>
    %5 = arith.addf %2, %4 : vector<32x1024xf32>
    %c2_i32 = arith.constant 2 : i32
    %6 = arith.cmpi eq, %arg0, %c2_i32 : i32
    %7 = arith.extui %6 : i1 to i32
    %c0_i32 = arith.constant 0 : i32
    %8 = arith.cmpi ne, %7, %c0_i32 : i32
    scf.if %8 {
      %12 = tpu.iota {dimensions = array<i32: 0>} : vector<32x1024xi32>
      %c16_i32 = arith.constant 16 : i32
      %13 = vector.broadcast %c16_i32 : i32 to vector<32x1024xi32>
      %14 = arith.cmpi slt, %12, %13 : vector<32x1024xi32>
      %cst_7 = arith.constant 0.000000e+00 : f32
      %15 = vector.broadcast %cst_7 : f32 to vector<32x1024xf32>
      %16 = arith.select %14, %5, %15 : vector<32x1024xi1>, vector<32x1024xf32>
      %c0_8 = arith.constant 0 : index
      %c0_9 = arith.constant 0 : index
      %17 = vector.load %arg4[%c0_8, %c0_9] : memref<32x1024xf32, #tpu.memory_space<vmem>>, vector<32x1024xf32>
      tpu.vector_store %arg4[%c0_8, %c0_9], %16 {strides = array<i32>} : memref<32x1024xf32, #tpu.memory_space<vmem>>, vector<32x1024xf32>,
    } else {
    }
    %c2_i32_5 = arith.constant 2 : i32
    %9 = arith.cmpi ne, %arg0, %c2_i32_5 : i32
    %10 = arith.extui %9 : i1 to i32
    %c0_i32_6 = arith.constant 0 : i32
    %11 = arith.cmpi ne, %10, %c0_i32_6 : i32
    scf.if %11 {
      %c0_7 = arith.constant 0 : index
      %c0_8 = arith.constant 0 : index
      %12 = vector.load %arg4[%c0_7, %c0_8] : memref<32x1024xf32, #tpu.memory_space<vmem>>, vector<32x1024xf32>
      tpu.vector_store %arg4[%c0_7, %c0_8], %5 {strides = array<i32>} : memref<32x1024xf32, #tpu.memory_space<vmem>>, vector<32x1024xf32>,
    } else {
    }
    return
  }
  func.func @transform_0(%arg0: i32) -> (i32, i32) {
    %c0_i32 = arith.constant 0 : i32
    %c0_i32_0 = arith.constant 0 : i32
    return %arg0, %c0_i32 : i32, i32
  }
  func.func @transform_1(%arg0: i32) -> (i32, i32) {
    %c0_i32 = arith.constant 0 : i32
    %c0_i32_0 = arith.constant 0 : i32
    %c0_i32_1 = arith.constant 0 : i32
    return %c0_i32, %c0_i32_0 : i32, i32
  }
  func.func @transform_2(%arg0: i32) -> (i32, i32) {
    %c0_i32 = arith.constant 0 : i32
    %c0_i32_0 = arith.constant 0 : i32
    %c0_i32_1 = arith.constant 0 : i32
    return %c0_i32, %c0_i32_0 : i32, i32
  }
  func.func @transform_3(%arg0: i32) -> (i32, i32) {
    %c0_i32 = arith.constant 0 : i32
    %c0_i32_0 = arith.constant 0 : i32
    return %arg0, %c0_i32 : i32, i32
  }
}

module attributes {stable_mosaic.version = 11 : i64} {
  func.func @_bilstm_rec_kernel(%arg0: i32, %arg1: memref<16x2x512xf32, #tpu.memory_space<vmem>>, %arg2: memref<16x2x512xf32, #tpu.memory_space<vmem>>, %arg3: memref<256x1024xbf16, #tpu.memory_space<vmem>>, %arg4: memref<16x2x128xf32, #tpu.memory_space<vmem>>, %arg5: memref<16x2x128xf32, #tpu.memory_space<vmem>>, %arg6: memref<2x256xf32, #tpu.memory_space<vmem>>, %arg7: memref<2x256xf32, #tpu.memory_space<vmem>>) attributes {dimension_semantics = [#tpu.dimension_semantics<arbitrary>], iteration_bounds = array<i64: 3>, scalar_prefetch = 0 : i64, scratch_operands = 2 : i64, tpu.core_type = #tpu.core_type<tc>, window_params = [{transform_indices = @transform_0, window_bounds = array<i64: 16, 2, 512>}, {transform_indices = @transform_1, window_bounds = array<i64: 16, 2, 512>}, {pipeline_mode = #tpu.pipeline_mode<synchronous>, transform_indices = @transform_2, window_bounds = array<i64: 256, 1024>}, {transform_indices = @transform_3, window_bounds = array<i64: 16, 2, 128>}, {transform_indices = @transform_4, window_bounds = array<i64: 16, 2, 128>}]} {
    %c0_i32 = arith.constant 0 : i32
    %0 = arith.cmpi eq, %arg0, %c0_i32 : i32
    %1 = arith.extui %0 : i1 to i32
    %c0_i32_0 = arith.constant 0 : i32
    %2 = arith.cmpi ne, %1, %c0_i32_0 : i32
    scf.if %2 {
      %cst = arith.constant 0.000000e+00 : f32
      %13 = vector.broadcast %cst : f32 to vector<2x256xf32>
      %c0_17 = arith.constant 0 : index
      %c0_18 = arith.constant 0 : index
      %14 = vector.load %arg6[%c0_17, %c0_18] : memref<2x256xf32, #tpu.memory_space<vmem>>, vector<2x256xf32>
      tpu.vector_store %arg6[%c0_17, %c0_18], %13 {strides = array<i32>} : memref<2x256xf32, #tpu.memory_space<vmem>>, vector<2x256xf32>,
      %cst_19 = arith.constant 0.000000e+00 : f32
      %15 = vector.broadcast %cst_19 : f32 to vector<2x256xf32>
      %c0_20 = arith.constant 0 : index
      %c0_21 = arith.constant 0 : index
      %16 = vector.load %arg7[%c0_20, %c0_21] : memref<2x256xf32, #tpu.memory_space<vmem>>, vector<2x256xf32>
      tpu.vector_store %arg7[%c0_20, %c0_21], %15 {strides = array<i32>} : memref<2x256xf32, #tpu.memory_space<vmem>>, vector<2x256xf32>,
    } else {
    }
    %c0 = arith.constant 0 : index
    %c0_1 = arith.constant 0 : index
    %3 = vector.load %arg6[%c0, %c0_1] : memref<2x256xf32, #tpu.memory_space<vmem>>, vector<2x128xf32>
    %c0_2 = arith.constant 0 : index
    %c0_3 = arith.constant 0 : index
    %4 = vector.load %arg7[%c0_2, %c0_3] : memref<2x256xf32, #tpu.memory_space<vmem>>, vector<2x128xf32>
    %c0_4 = arith.constant 0 : index
    %c128 = arith.constant 128 : index
    %5 = vector.load %arg6[%c0_4, %c128] : memref<2x256xf32, #tpu.memory_space<vmem>>, vector<2x128xf32>
    %c0_5 = arith.constant 0 : index
    %c128_6 = arith.constant 128 : index
    %6 = vector.load %arg7[%c0_5, %c128_6] : memref<2x256xf32, #tpu.memory_space<vmem>>, vector<2x128xf32>
    %c0_i32_7 = arith.constant 0 : i32
    %c16_i32 = arith.constant 16 : i32
    %7 = arith.addi %c0_i32_7, %c16_i32 : i32
    %c1_i32 = arith.constant 1 : i32
    %8:4 = scf.for %arg8 = %c0_i32_7 to %7 step %c1_i32 iter_args(%arg9 = %3, %arg10 = %4, %arg11 = %5, %arg12 = %6) -> (vector<2x128xf32>, vector<2x128xf32>, vector<2x128xf32>, vector<2x128xf32>)  : i32 {
      %c15_i32 = arith.constant 15 : i32
      %13 = arith.subi %c15_i32, %arg8 : i32
      %14 = tpu.concatenate %arg9, %arg11 in 1 : vector<2x128xf32>, vector<2x128xf32> -> vector<2x256xf32>
      %15 = arith.truncf %14 : vector<2x256xf32> to vector<2x256xbf16>
      %c0_17 = arith.constant 0 : index
      %c0_18 = arith.constant 0 : index
      %16 = vector.load %arg3[%c0_17, %c0_18] : memref<256x1024xbf16, #tpu.memory_space<vmem>>, vector<256x1024xbf16>
      %cst = arith.constant dense<0.000000e+00> : vector<2x1024xf32>
      %17 = tpu.matmul %15, %16, %cst {dimension_numbers = #tpu.dot_dimension_numbers<[1], [0], [0], [1], [0, 0, 1, 1], [], []>} : vector<2x256xbf16>, vector<256x1024xbf16>, vector<2x1024xf32> -> vector<2x1024xf32>
      %18 = arith.index_cast %arg8 : i32 to index
      %c0_19 = arith.constant 0 : index
      %c0_20 = arith.constant 0 : index
      %19 = vector.load %arg1[%18, %c0_19, %c0_20] : memref<16x2x512xf32, #tpu.memory_space<vmem>>, vector<1x2x512xf32>
      %20 = vector.shape_cast %19 : vector<1x2x512xf32> to vector<2x512xf32>
      %21 = vector.extract_strided_slice %17 {offsets = [0, 0], sizes = [2, 512], strides = [1, 1]} : vector<2x1024xf32> to vector<2x512xf32>
      %22 = arith.addf %20, %21 : vector<2x512xf32>
      %23 = vector.extract_strided_slice %22 {offsets = [0, 0], sizes = [2, 128], strides = [1, 1]} : vector<2x512xf32> to vector<2x128xf32>
      %24 = arith.negf %23 : vector<2x128xf32>
      %25 = math.exp %24 : vector<2x128xf32>
      %cst_21 = arith.constant 1.000000e+00 : f32
      %26 = vector.broadcast %cst_21 : f32 to vector<2x128xf32>
      %27 = arith.addf %26, %25 : vector<2x128xf32>
      %28 = arith.divf %26, %27 : vector<2x128xf32>
      %29 = vector.extract_strided_slice %22 {offsets = [0, 128], sizes = [2, 128], strides = [1, 1]} : vector<2x512xf32> to vector<2x128xf32>
      %30 = arith.negf %29 : vector<2x128xf32>
      %31 = math.exp %30 : vector<2x128xf32>
      %cst_22 = arith.constant 1.000000e+00 : f32
      %32 = vector.broadcast %cst_22 : f32 to vector<2x128xf32>
      %33 = arith.addf %32, %31 : vector<2x128xf32>
      %34 = arith.divf %32, %33 : vector<2x128xf32>
      %35 = vector.extract_strided_slice %22 {offsets = [0, 256], sizes = [2, 128], strides = [1, 1]} : vector<2x512xf32> to vector<2x128xf32>
      %36 = math.tanh %35 : vector<2x128xf32>
      %37 = vector.extract_strided_slice %22 {offsets = [0, 384], sizes = [2, 128], strides = [1, 1]} : vector<2x512xf32> to vector<2x128xf32>
      %38 = arith.negf %37 : vector<2x128xf32>
      %39 = math.exp %38 : vector<2x128xf32>
      %cst_23 = arith.constant 1.000000e+00 : f32
      %40 = vector.broadcast %cst_23 : f32 to vector<2x128xf32>
      %41 = arith.addf %40, %39 : vector<2x128xf32>
      %42 = arith.divf %40, %41 : vector<2x128xf32>
      %43 = arith.mulf %34, %arg10 : vector<2x128xf32>
      %44 = arith.mulf %28, %36 : vector<2x128xf32>
      %45 = arith.addf %43, %44 : vector<2x128xf32>
      %46 = math.tanh %45 : vector<2x128xf32>
      %47 = arith.mulf %42, %46 : vector<2x128xf32>
      %48 = arith.index_cast %13 : i32 to index
      %c0_24 = arith.constant 0 : index
      %c0_25 = arith.constant 0 : index
      %49 = vector.load %arg2[%48, %c0_24, %c0_25] : memref<16x2x512xf32, #tpu.memory_space<vmem>>, vector<1x2x512xf32>
      %50 = vector.shape_cast %49 : vector<1x2x512xf32> to vector<2x512xf32>
      %51 = vector.extract_strided_slice %17 {offsets = [0, 512], sizes = [2, 512], strides = [1, 1]} : vector<2x1024xf32> to vector<2x512xf32>
      %52 = arith.addf %50, %51 : vector<2x512xf32>
      %53 = vector.extract_strided_slice %52 {offsets = [0, 0], sizes = [2, 128], strides = [1, 1]} : vector<2x512xf32> to vector<2x128xf32>
      %54 = arith.negf %53 : vector<2x128xf32>
      %55 = math.exp %54 : vector<2x128xf32>
      %cst_26 = arith.constant 1.000000e+00 : f32
      %56 = vector.broadcast %cst_26 : f32 to vector<2x128xf32>
      %57 = arith.addf %56, %55 : vector<2x128xf32>
      %58 = arith.divf %56, %57 : vector<2x128xf32>
      %59 = vector.extract_strided_slice %52 {offsets = [0, 128], sizes = [2, 128], strides = [1, 1]} : vector<2x512xf32> to vector<2x128xf32>
      %60 = arith.negf %59 : vector<2x128xf32>
      %61 = math.exp %60 : vector<2x128xf32>
      %cst_27 = arith.constant 1.000000e+00 : f32
      %62 = vector.broadcast %cst_27 : f32 to vector<2x128xf32>
      %63 = arith.addf %62, %61 : vector<2x128xf32>
      %64 = arith.divf %62, %63 : vector<2x128xf32>
      %65 = vector.extract_strided_slice %52 {offsets = [0, 256], sizes = [2, 128], strides = [1, 1]} : vector<2x512xf32> to vector<2x128xf32>
      %66 = math.tanh %65 : vector<2x128xf32>
      %67 = vector.extract_strided_slice %52 {offsets = [0, 384], sizes = [2, 128], strides = [1, 1]} : vector<2x512xf32> to vector<2x128xf32>
      %68 = arith.negf %67 : vector<2x128xf32>
      %69 = math.exp %68 : vector<2x128xf32>
      %cst_28 = arith.constant 1.000000e+00 : f32
      %70 = vector.broadcast %cst_28 : f32 to vector<2x128xf32>
      %71 = arith.addf %70, %69 : vector<2x128xf32>
      %72 = arith.divf %70, %71 : vector<2x128xf32>
      %73 = arith.mulf %64, %arg12 : vector<2x128xf32>
      %74 = arith.mulf %58, %66 : vector<2x128xf32>
      %75 = arith.addf %73, %74 : vector<2x128xf32>
      %76 = math.tanh %75 : vector<2x128xf32>
      %77 = arith.mulf %72, %76 : vector<2x128xf32>
      %78 = arith.index_cast %arg8 : i32 to index
      %c0_29 = arith.constant 0 : index
      %c0_30 = arith.constant 0 : index
      %79 = vector.load %arg4[%78, %c0_29, %c0_30] : memref<16x2x128xf32, #tpu.memory_space<vmem>>, vector<1x2x128xf32>
      %80 = vector.shape_cast %79 : vector<1x2x128xf32> to vector<2x128xf32>
      %81 = vector.shape_cast %47 : vector<2x128xf32> to vector<1x2x128xf32>
      tpu.vector_store %arg4[%78, %c0_29, %c0_30], %81 {strides = array<i32>} : memref<16x2x128xf32, #tpu.memory_space<vmem>>, vector<1x2x128xf32>,
      %82 = arith.index_cast %13 : i32 to index
      %c0_31 = arith.constant 0 : index
      %c0_32 = arith.constant 0 : index
      %83 = vector.load %arg5[%82, %c0_31, %c0_32] : memref<16x2x128xf32, #tpu.memory_space<vmem>>, vector<1x2x128xf32>
      %84 = vector.shape_cast %83 : vector<1x2x128xf32> to vector<2x128xf32>
      %85 = vector.shape_cast %77 : vector<2x128xf32> to vector<1x2x128xf32>
      tpu.vector_store %arg5[%82, %c0_31, %c0_32], %85 {strides = array<i32>} : memref<16x2x128xf32, #tpu.memory_space<vmem>>, vector<1x2x128xf32>,
      scf.yield %47, %45, %77, %75 : vector<2x128xf32>, vector<2x128xf32>, vector<2x128xf32>, vector<2x128xf32>
    }
    %c16_i32_8 = arith.constant 16 : i32
    %c0_9 = arith.constant 0 : index
    %c0_10 = arith.constant 0 : index
    %9 = vector.load %arg6[%c0_9, %c0_10] : memref<2x256xf32, #tpu.memory_space<vmem>>, vector<2x128xf32>
    tpu.vector_store %arg6[%c0_9, %c0_10], %8#0 {strides = array<i32>} : memref<2x256xf32, #tpu.memory_space<vmem>>, vector<2x128xf32>,
    %c0_11 = arith.constant 0 : index
    %c128_12 = arith.constant 128 : index
    %10 = vector.load %arg6[%c0_11, %c128_12] : memref<2x256xf32, #tpu.memory_space<vmem>>, vector<2x128xf32>
    tpu.vector_store %arg6[%c0_11, %c128_12], %8#2 {strides = array<i32>} : memref<2x256xf32, #tpu.memory_space<vmem>>, vector<2x128xf32>,
    %c0_13 = arith.constant 0 : index
    %c0_14 = arith.constant 0 : index
    %11 = vector.load %arg7[%c0_13, %c0_14] : memref<2x256xf32, #tpu.memory_space<vmem>>, vector<2x128xf32>
    tpu.vector_store %arg7[%c0_13, %c0_14], %8#1 {strides = array<i32>} : memref<2x256xf32, #tpu.memory_space<vmem>>, vector<2x128xf32>,
    %c0_15 = arith.constant 0 : index
    %c128_16 = arith.constant 128 : index
    %12 = vector.load %arg7[%c0_15, %c128_16] : memref<2x256xf32, #tpu.memory_space<vmem>>, vector<2x128xf32>
    tpu.vector_store %arg7[%c0_15, %c128_16], %8#3 {strides = array<i32>} : memref<2x256xf32, #tpu.memory_space<vmem>>, vector<2x128xf32>,
    return
  }
  func.func @transform_0(%arg0: i32) -> (i32, i32, i32) {
    %c0_i32 = arith.constant 0 : i32
    %c0_i32_0 = arith.constant 0 : i32
    %c0_i32_1 = arith.constant 0 : i32
    return %arg0, %c0_i32, %c0_i32_0 : i32, i32, i32
  }
  func.func @transform_1(%arg0: i32) -> (i32, i32, i32) {
    %c2_i32 = arith.constant 2 : i32
    %0 = arith.subi %c2_i32, %arg0 : i32
    %c0_i32 = arith.constant 0 : i32
    %c1_i32 = arith.constant 1 : i32
    %c0_i32_0 = arith.constant 0 : i32
    return %0, %c0_i32, %c1_i32 : i32, i32, i32
  }
  func.func @transform_2(%arg0: i32) -> (i32, i32) {
    %c0_i32 = arith.constant 0 : i32
    %c0_i32_0 = arith.constant 0 : i32
    %c0_i32_1 = arith.constant 0 : i32
    return %c0_i32, %c0_i32_0 : i32, i32
  }
  func.func @transform_3(%arg0: i32) -> (i32, i32, i32) {
    %c0_i32 = arith.constant 0 : i32
    %c0_i32_0 = arith.constant 0 : i32
    %c0_i32_1 = arith.constant 0 : i32
    return %arg0, %c0_i32, %c0_i32_0 : i32, i32, i32
  }
  func.func @transform_4(%arg0: i32) -> (i32, i32, i32) {
    %c2_i32 = arith.constant 2 : i32
    %0 = arith.subi %c2_i32, %arg0 : i32
    %c0_i32 = arith.constant 0 : i32
    %c0_i32_0 = arith.constant 0 : i32
    %c0_i32_1 = arith.constant 0 : i32
    return %0, %c0_i32, %c0_i32_0 : i32, i32, i32
  }
}

</mosaic_0001>

<bundles_post_ra>
// kernel: encoder_forward.5
= control target key start
LH: loop header
LB: loop body
LE: loop exit
PB: predicated region body
PF: predicated region fallthrough
CT: control target
= control target key end

     0   :  { %s2452_s12 = smov 0   ;;  %s3088_s0 = inlined_call_operand.vmem [shape: bf16[104,256], index: 0, kind: input, shape index: {}]   ;;  %s3089_s1 = inlined_call_operand.vmem [shape: bf16[5,256,256], index: 1, kind: input, shape index: {}]   ;;  %s3090_s2 = inlined_call_operand.vmem [shape: f32[1,256], index: 2, kind: input, shape index: {}]   ;;  %s3091_s3 = inlined_call_operand.vmem [shape: bf16[96,256], index: 3, kind: output, shape index: {}]  }
   0x1 LB: > { %s2458_s13 = sadd.s32 4294967295, %s2430_s12   ;;  %p1782_p0 = scmp.ge.s32.totalorder %s2430_s12, 1  ;;  %s2430_s12 = sphi %s2452_s12, %s13_s12  }
   0x2   : > { %p103_p1 = scmp.lt.s32.totalorder %s2430_s12, 4 }
   0x4   : > { %p104_p2 = pnand %p1782_p0, %p103_p1 }
   0x5   : > { %s1783_s14 = sshll.u32 (!%p104_p2), %s2458_s13, 2  ;;  %s129_s15 = ssub.s32 (!%p104_p2), 0, %s2458_s13 }
   0x6   : > { %107 = sbr.rel (%p104_p2) target bundleno = 443 (0x1bb), region = 28  ;;  %p122_p3 = scmp.lt.s32.totalorder (!%p104_p2), %s1783_s14, 11 }
   0x7   : > { %p128_p4 = scmp.lt.s32.totalorder (!%p104_p2), %s2458_s13, 0  ;;  %s1786_s16 = smin.u32 (!%p104_p2), %s2458_s13, %s129_s15 }
   0x8   : > { %s131_s17 = sand.u32 (!%p104_p2), 1, %s1786_s16   ;;  %p1789_p6 = scmp.ne.s32.totalorder (!%p104_p2), %s2458_s13, 0 }
   0x9   : > { %s132_s19 = ssub.s32 (!%p104_p2), 0, %s131_s17 }
   0xb   : > { %s3093_s14 = smov (!%p122_p3, %s1783_s14), 11  ;;  %s3095_s19 = smov (!%p128_p4, %s132_s19), %s131_s17 }
   0xc   : > { %s2112_s18 = sshll.u32 %s3093_s14, 3  ;;  %p1788_p5 = scmp.lt.s32.totalorder %s3095_s19, 0 }
   0xd   : > { %s2469_s22 = scalar_lea.vmem %s3091_s3, %s2112_s18  ;;  %s138_s23 = sadd.s32 2, %s3095_s19 }
   0xe   : > { %s3097_s23 = smov (!%p1788_p5, %s138_s23), %s3095_s19  ;;  %143 = sbr.rel (%p1789_p6) target bundleno = 24 (0x18), region = 32 }
  0x13   : > { %v177_v0 = vld [vmem:[%s3088_s0] sm:$0xff]  ;;  %v179_v1 = vld [vmem:[%s3088_s0 + $0x8] sm:$0xff]  ;;  %v181_v2 = vld [vmem:[%s3088_s0 + $0x10] sm:$0xff] }
  0x14   : > { %178 = vst [vmem:[#allocation2] sm:$0xff] %v177_v0  ;;  %180 = vst [vmem:[#allocation2 + $0x8] sm:$0xff] %v179_v1  ;;  %v183_v3 = vld [vmem:[%s3088_s0 + $0x18] sm:$0xff]  ;;  %v185_v4 = vld [vmem:[%s3088_s0 + $0x20] sm:$0xff] }
  0x15   : > { %182 = vst [vmem:[#allocation2 + $0x10] sm:$0xff] %v181_v2  ;;  %184 = vst [vmem:[#allocation2 + $0x18] sm:$0xff] %v183_v3 }
  0x16   : > { %186 = vst [vmem:[#allocation2 + $0x20] sm:$0xff] %v185_v4 }
  0x17   : > { %194 = vsyncadd [#allocation3], 640 }
  0x18 PF: > { %s195_s7 = sadd.s32 1, %s2458_s13 }
  0x19   : > { %p1790_p7 = scmp.ge.s32.totalorder %s195_s7, 3 }
  0x1a   : > { %s200_s8 = ssub.s32 (!%p1790_p7), 1, %s3097_s23  ;;  %s2113_s9 = sshll.u32 (!%p1790_p7), %s2458_s13, 5 }
  0x1b   : > { %199 = sbr.rel (%p1790_p7) target bundleno = 37 (0x25), region = 70  ;;  %s2114_s10 = sadd.s32 (!%p1790_p7), 32, %s2113_s9 }
  0x1c   : > { %s2116_s11 = smul.u32 (!%p1790_p7), 40, %s200_s8  ;;  %s202_s14 = sshra.s32 (!%p1790_p7), %s2114_s10, 3 }
  0x1d   : > { %s2115_s15 = sshll.u32 (!%p1790_p7), %s202_s14, 3  ;;  %s210_s13 = scalar_lea.sflag (!%p1790_p7), [#allocation3], %s200_s8 }
  0x1e   : > { %s206_s18 = scalar_lea.vmem (!%p1790_p7), %s3088_s0, %s2115_s15  ;;  %s209_s19 = scalar_lea.vmem (!%p1790_p7), [#allocation2], %s2116_s11 }
  0x20   : > { %v244_v5 = vld [vmem:[%s206_s18] sm:$0xff]  ;;  %v246_v6 = vld [vmem:[%s206_s18 + $0x8] sm:$0xff]  ;;  %v248_v7 = vld [vmem:[%s206_s18 + $0x10] sm:$0xff] }
  0x21   : > { %245 = vst [vmem:[%s209_s19] sm:$0xff] %v244_v5  ;;  %247 = vst [vmem:[%s209_s19 + $0x8] sm:$0xff] %v246_v6  ;;  %v250_v8 = vld [vmem:[%s206_s18 + $0x18] sm:$0xff]  ;;  %v252_v9 = vld [vmem:[%s206_s18 + $0x20] sm:$0xff] }
  0x22   : > { %249 = vst [vmem:[%s209_s19 + $0x10] sm:$0xff] %v248_v7  ;;  %251 = vst [vmem:[%s209_s19 + $0x18] sm:$0xff] %v250_v8 }
  0x23   : > { %253 = vst [vmem:[%s209_s19 + $0x20] sm:$0xff] %v252_v9 }
  0x24   : > { %261 = vsyncadd %s210_s13, 640 }
  0x25 PF: > { %s2117_s20 = smul.u32 40, %s3097_s23  ;;  %s265_s24 = scalar_lea.sflag [#allocation3], %s3097_s23 }
  0x27   : > { %s2496_s21 = scalar_lea.vmem [#allocation2], %s2117_s20 }
  0x28   : > { %2426 = dma.done.wait %s265_s24, 640 }
  0x29   : > { %2427 = vsyncadd %s265_s24, 4294966656  ;;  %v2162_v10 = vld [vmem:[%s3089_s1 + $0x174] ss:$8 sps:$4 sm:$0xff]   ;;  %v2166_v12 = vld [vmem:[%s3089_s1 + $0x170] ss:$8 sps:$4 sm:$0xff]   ;;  %vm362_vm0 = vcmask 1046528  }
  0x2a   : > { %v2164_v11 = vld [vmem:[%s3089_s1 + $0x74] ss:$8 sps:$4 sm:$0xff]   ;;  %537 = vmatprep.subr.bf16.mxu0 %v2162_v10  ;;  %v2167_v13 = vld [vmem:[%s3089_s1 + $0x70] ss:$8 sps:$4 sm:$0xff]   ;;  %v2168_v14 = vld [vmem:[%s3089_s1 + $0x164] ss:$8 sps:$4 sm:$0xff]  }
  0x2b   : > { %759 = vmatprep.subr.bf16.mxu1 %v2164_v11  ;;  %538 = vmatpush1.bf16.msra.mxu0 %v2166_v12  ;;  %v2170_v15 = vld [vmem:[%s3089_s1 + $0x64] ss:$8 sps:$4 sm:$0xff]   ;;  %v2172_v16 = vld [vmem:[%s3089_s1 + $0x160] ss:$8 sps:$4 sm:$0xff]   ;;  %v2174_v18 = vld [vmem:[%s3089_s1 + $0x154] ss:$8 sps:$4 sm:$0xff]  }
  0x2c   : > { %760 = vmatpush1.bf16.msra.mxu1 %v2167_v13  ;;  %539 = vmatprep.subr.bf16.mxu0 %v2168_v14  ;;  %v2173_v17 = vld [vmem:[%s3089_s1 + $0x60] ss:$8 sps:$4 sm:$0xff]   ;;  %v2176_v19 = vld [vmem:[%s3089_s1 + $0x54] ss:$8 sps:$4 sm:$0xff]   ;;  %v2178_v20 = vld [vmem:[%s3089_s1 + $0x150] ss:$8 sps:$4 sm:$0xff]  }
  0x2d   : > { %761 = vmatprep.subr.bf16.mxu1 %v2170_v15  ;;  %v2179_v21 = vld [vmem:[%s3089_s1 + $0x50] ss:$8 sps:$4 sm:$0xff]   ;;  %v2180_v22 = vld [vmem:[%s3089_s1 + $0x144] ss:$8 sps:$4 sm:$0xff]   ;;  %v2184_v24 = vld [vmem:[%s3089_s1 + $0x140] ss:$8 sps:$4 sm:$0xff]  }
  0x2e   : > { %v2182_v23 = vld [vmem:[%s3089_s1 + $0x44] ss:$8 sps:$4 sm:$0xff]   ;;  %v2185_v25 = vld [vmem:[%s3089_s1 + $0x40] ss:$8 sps:$4 sm:$0xff]   ;;  %v2186_v26 = vld [vmem:[%s3089_s1 + $0x134] ss:$8 sps:$4 sm:$0xff]  }
  0x2f   : > { %540 = vmatpush1.bf16.msra.mxu0 %v2172_v16  ;;  %v2188_v27 = vld [vmem:[%s3089_s1 + $0x34] ss:$8 sps:$4 sm:$0xff]   ;;  %v2190_v28 = vld [vmem:[%s3089_s1 + $0x130] ss:$8 sps:$4 sm:$0xff]   ;;  %v2192_v30 = vld [vmem:[%s3089_s1 + $0x124] ss:$8 sps:$4 sm:$0xff]  }
  0x30   : > { %762 = vmatpush1.bf16.msra.mxu1 %v2173_v17  ;;  %541 = vmatprep.subr.bf16.mxu0 %v2174_v18  ;;  %v2191_v29 = vld [vmem:[%s3089_s1 + $0x30] ss:$8 sps:$4 sm:$0xff]   ;;  %v2194_v31 = vld [vmem:[%s3089_s1 + $0x24] ss:$8 sps:$4 sm:$0xff]   ;;  %v2196_v32 = vld [vmem:[%s3089_s1 + $0x120] ss:$8 sps:$4 sm:$0xff]  }
  0x31   : > { %763 = vmatprep.subr.bf16.mxu1 %v2176_v19  ;;  %v2197_v33 = vld [vmem:[%s3089_s1 + $0x20] ss:$8 sps:$4 sm:$0xff]   ;;  %v2198_v34 = vld [vmem:[%s3089_s1 + $0x114] ss:$8 sps:$4 sm:$0xff]   ;;  %v2202_v36 = vld [vmem:[%s3089_s1 + $0x110] ss:$8 sps:$4 sm:$0xff]  }
  0x32   : > { %v2200_v35 = vld [vmem:[%s3089_s1 + $0x14] ss:$8 sps:$4 sm:$0xff]   ;;  %v2203_v37 = vld [vmem:[%s3089_s1 + $0x10] ss:$8 sps:$4 sm:$0xff]   ;;  %v2204_v38 = vld [vmem:[%s3089_s1 + $0x104] ss:$8 sps:$4 sm:$0xff]  }
  0x33   : > { %542 = vmatpush1.bf16.msra.mxu0 %v2178_v20  ;;  %v2206_v39 = vld [vmem:[%s3089_s1 + $0x4] ss:$8 sps:$4 sm:$0xff]   ;;  %v2208_v40 = vld [vmem:[%s3089_s1 + $0x100] ss:$8 sps:$4 sm:$0xff]   ;;  %v2210_v42 = vld [vmem:[%s3089_s1 + $0x1f4] ss:$8 sps:$4 sm:$0xff]  }
  0x34   : > { %764 = vmatpush1.bf16.msra.mxu1 %v2179_v21  ;;  %543 = vmatprep.subr.bf16.mxu0 %v2180_v22  ;;  %v2209_v41 = vld [vmem:[%s3089_s1] ss:$8 sps:$4 sm:$0xff]   ;;  %v2212_v43 = vld [vmem:[%s3089_s1 + $0xf4] ss:$8 sps:$4 sm:$0xff]   ;;  %v2214_v44 = vld [vmem:[%s3089_s1 + $0x1f0] ss:$8 sps:$4 sm:$0xff]  }
  0x35   : > { %765 = vmatprep.subr.bf16.mxu1 %v2182_v23  ;;  %v2215_v45 = vld [vmem:[%s3089_s1 + $0xf0] ss:$8 sps:$4 sm:$0xff]   ;;  %v2216_v46 = vld [vmem:[%s3089_s1 + $0x1e4] ss:$8 sps:$4 sm:$0xff]   ;;  %v2220_v48 = vld [vmem:[%s3089_s1 + $0x1e0] ss:$8 sps:$4 sm:$0xff]  }
  0x36   : > { %v2218_v47 = vld [vmem:[%s3089_s1 + $0xe4] ss:$8 sps:$4 sm:$0xff]   ;;  %v2221_v49 = vld [vmem:[%s3089_s1 + $0xe0] ss:$8 sps:$4 sm:$0xff]   ;;  %v2222_v50 = vld [vmem:[%s3089_s1 + $0x1d4] ss:$8 sps:$4 sm:$0xff]  }
  0x37   : > { %544 = vmatpush1.bf16.msra.mxu0 %v2184_v24  ;;  %v2224_v51 = vld [vmem:[%s3089_s1 + $0xd4] ss:$8 sps:$4 sm:$0xff]   ;;  %v2226_v52 = vld [vmem:[%s3089_s1 + $0x1d0] ss:$8 sps:$4 sm:$0xff]   ;;  %v2228_v54 = vld [vmem:[%s3089_s1 + $0x1c4] ss:$8 sps:$4 sm:$0xff]  }
  0x38   : > { %766 = vmatpush1.bf16.msra.mxu1 %v2185_v25  ;;  %545 = vmatprep.subr.bf16.mxu0 %v2186_v26  ;;  %v2227_v53 = vld [vmem:[%s3089_s1 + $0xd0] ss:$8 sps:$4 sm:$0xff]   ;;  %v2230_v55 = vld [vmem:[%s3089_s1 + $0xc4] ss:$8 sps:$4 sm:$0xff]   ;;  %v2232_v56 = vld [vmem:[%s3089_s1 + $0x1c0] ss:$8 sps:$4 sm:$0xff]  }
  0x39   : > { %767 = vmatprep.subr.bf16.mxu1 %v2188_v27  ;;  %v2233_v57 = vld [vmem:[%s3089_s1 + $0xc0] ss:$8 sps:$4 sm:$0xff]   ;;  %v2647_v59 = vld [vmem:[%s2496_s21 + $0x10] sm:$0xff]  ;;  %v2240_v9 = vld [vmem:[%s3089_s1 + $0x1a4] ss:$8 sps:$4 sm:$0xff]   ;;  %vm857_vm1 = vcmask 1045504  }
  0x3a   : > { %v2644_v58 = vld [vmem:[%s2496_s21 + $0x8] sm:$0xff]  ;;  %v2650_v60 = vld [vmem:[%s2496_s21 + $0x18] sm:$0xff]  ;;  %v306_v61 = vld [vmem:[%s2496_s21] sm:$0xee]  ;;  %vm1138_vm2 = vcmask 1044480  }
  0x3b   : > { %546 = vmatpush1.bf16.msra.mxu0 %v2190_v28  ;;  %v1829_v62 = vcombine.high %v306_v61, %v2644_v58  ;;  %v2656_v63 = vcombine.high %v2647_v59, %v2650_v60  ;;  %v270_v0 = vld [vmem:[%s2496_s21] sm:$0xff]  ;;  %v2234_v1 = vld [vmem:[%s3089_s1 + $0x1b4] ss:$8 sps:$4 sm:$0xff]   ;;  %v2238_v6 = vld [vmem:[%s3089_s1 + $0x1b0] ss:$8 sps:$4 sm:$0xff]   ;;  %v1828_v17 = vcombine.low %v306_v61, %v2644_v58  ;;  %v2703_v18 = vcombine.low %v2647_v59, %v2650_v60 }
  0x3c   : > { %768 = vmatpush1.bf16.msra.mxu1 %v2191_v29  ;;  %547 = vmatprep.subr.bf16.mxu0 %v2192_v30  ;;  %v2236_v2 = vld [vmem:[%s3089_s1 + $0xb4] ss:$8 sps:$4 sm:$0xff]   ;;  %v1867_v3 = vcombine.high %v270_v0, %v2644_v58  ;;  %v2239_v7 = vld [vmem:[%s3089_s1 + $0xb0] ss:$8 sps:$4 sm:$0xff]   ;;  %v2242_v10 = vld [vmem:[%s3089_s1 + $0xa4] ss:$8 sps:$4 sm:$0xff]   ;;  %v1866_v27 = vcombine.low %v270_v0, %v2644_v58 }
  0x3d   : > { %769 = vmatprep.subr.bf16.mxu1 %v2194_v31  ;;  %v366_v4 = vrot.slane %v1829_v62, 1  ;;  %v367_v5 = vrot.slane %v2656_v63, 1  ;;  %v2244_v11 = vld [vmem:[%s3089_s1 + $0x1a0] ss:$8 sps:$4 sm:$0xff]   ;;  %v2246_v13 = vld [vmem:[%s3089_s1 + $0x194] ss:$8 sps:$4 sm:$0xff]   ;;  %v2069_v31 = vcombine.high %v2644_v58, %v2647_v59 }
  0x3e   : > { %791 = vmatprep.mubr.bf16.mxu1 %v1867_v3  ;;  %v2245_v12 = vld [vmem:[%s3089_s1 + $0xa0] ss:$8 sps:$4 sm:$0xff]   ;;  %v2248_v14 = vld [vmem:[%s3089_s1 + $0x94] ss:$8 sps:$4 sm:$0xff]   ;;  %v2250_v15 = vld [vmem:[%s3089_s1 + $0x190] ss:$8 sps:$4 sm:$0xff]  }
  0x3f   : > { %548 = vmatpush1.bf16.msra.mxu0 %v2196_v32  ;;  %v368_v8 = vsel %vm362_vm0, %v366_v4, %v367_v5  ;;  %v2251_v16 = vld [vmem:[%s3089_s1 + $0x90] ss:$8 sps:$4 sm:$0xff]   ;;  %v2252_v19 = vld [vmem:[%s3089_s1 + $0x184] ss:$8 sps:$4 sm:$0xff]   ;;  %v2256_v21 = vld [vmem:[%s3089_s1 + $0x180] ss:$8 sps:$4 sm:$0xff]   ;;  %v2068_v32 = vcombine.low %v2644_v58, %v2647_v59 }
  0x40   : > { %770 = vmatpush1.bf16.msra.mxu1 %v2197_v33  ;;  %549 = vmatprep.subr.bf16.mxu0 %v2198_v34  ;;  %v2254_v20 = vld [vmem:[%s3089_s1 + $0x84] ss:$8 sps:$4 sm:$0xff]   ;;  %v2257_v22 = vld [vmem:[%s3089_s1 + $0x80] ss:$8 sps:$4 sm:$0xff]   ;;  %v363_v23 = vrot.slane %v1828_v17, 1  ;;  %v364_v24 = vrot.slane %v2703_v18, 1 }
  0x41   : > { %771 = vmatprep.subr.bf16.mxu1 %v2200_v35  ;;  %569 = vmatprep.mubr.bf16.mxu0 %v368_v8  ;;  %v2266_v25 = vld [vmem:[%s3089_s1 + $0x274] ss:$8 sps:$4 sm:$0xff]   ;;  %v2264_v29 = vld [vmem:[%s3089_s1 + $0x270] ss:$8 sps:$4 sm:$0xff]   ;;  %v2272_v33 = vld [vmem:[%s3089_s1 + $0x264] ss:$8 sps:$4 sm:$0xff]  }
  0x42   : > { %v2269_v26 = vld [vmem:[%s3089_s1 + $0x374] ss:$8 sps:$4 sm:$0xff]   ;;  %v365_v28 = vsel %vm362_vm0, %v363_v23, %v364_v24  ;;  %v2267_v30 = vld [vmem:[%s3089_s1 + $0x370] ss:$8 sps:$4 sm:$0xff]   ;;  %v2275_v34 = vld [vmem:[%s3089_s1 + $0x364] ss:$8 sps:$4 sm:$0xff]  }
  0x43   : > { %550 = vmatpush1.bf16.msra.mxu0 %v2202_v36  ;;  %v2270_v35 = vld [vmem:[%s3089_s1 + $0x260] ss:$8 sps:$4 sm:$0xff]   ;;  %v2302_v61 = vld [vmem:[%s3089_s1 + $0x214] ss:$8 sps:$4 sm:$0xff]   ;;  %v2300_v3 = vld [vmem:[%s3089_s1 + $0x210] ss:$8 sps:$4 sm:$0xff]  }
  0x44   : > { %772 = vmatpush1.bf16.msra.mxu1 %v2203_v37  ;;  %551 = vmatprep.subr.bf16.mxu0 %v2204_v38  ;;  %v2273_v36 = vld [vmem:[%s3089_s1 + $0x360] ss:$8 sps:$4 sm:$0xff]   ;;  %v2278_v37 = vld [vmem:[%s3089_s1 + $0x254] ss:$8 sps:$4 sm:$0xff]   ;;  %v2303_v4 = vld [vmem:[%s3089_s1 + $0x310] ss:$8 sps:$4 sm:$0xff]  }
  0x45   : > { %773 = vmatprep.subr.bf16.mxu1 %v2206_v39  ;;  %v2281_v38 = vld [vmem:[%s3089_s1 + $0x354] ss:$8 sps:$4 sm:$0xff]   ;;  %v2276_v39 = vld [vmem:[%s3089_s1 + $0x250] ss:$8 sps:$4 sm:$0xff]   ;;  %v1093_v8 = vld [vmem:[%s2496_s21] sm:$0x88] }
  0x46   : > { %v2314_v23 = vld [vmem:[%s3089_s1 + $0x2f4] ss:$8 sps:$4 sm:$0xff]  }
  0x47   : > { %552 = vmatpush1.bf16.msra.mxu0 %v2208_v40  ;;  %v2279_v40 = vld [vmem:[%s3089_s1 + $0x350] ss:$8 sps:$4 sm:$0xff]  }
  0x48   : > { %774 = vmatpush1.bf16.msra.mxu1 %v2209_v41  ;;  %553 = vmatprep.subr.bf16.mxu0 %v2210_v42  ;;  %v2284_v41 = vld [vmem:[%s3089_s1 + $0x244] ss:$8 sps:$4 sm:$0xff]  }
  0x49   : > { %775 = vmatprep.subr.bf16.mxu1 %v2212_v43  ;;  %v2287_v42 = vld [vmem:[%s3089_s1 + $0x344] ss:$8 sps:$4 sm:$0xff]   ;;  %v2282_v43 = vld [vmem:[%s3089_s1 + $0x240] ss:$8 sps:$4 sm:$0xff]  }
  0x4b   : > { %554 = vmatpush2.bf16.msra.mxu0 %v2214_v44  ;;  %v2285_v44 = vld [vmem:[%s3089_s1 + $0x340] ss:$8 sps:$4 sm:$0xff]  }
  0x4c   : > { %776 = vmatpush2.bf16.msra.mxu1 %v2215_v45  ;;  %555 = vmatprep.subr.bf16.mxu0 %v2216_v46  ;;  %v2290_v45 = vld [vmem:[%s3089_s1 + $0x234] ss:$8 sps:$4 sm:$0xff]  }
  0x4d   : > { %777 = vmatprep.subr.bf16.mxu1 %v2218_v47  ;;  %v2293_v46 = vld [vmem:[%s3089_s1 + $0x334] ss:$8 sps:$4 sm:$0xff]   ;;  %v2288_v47 = vld [vmem:[%s3089_s1 + $0x230] ss:$8 sps:$4 sm:$0xff]  }
  0x4f   : > { %556 = vmatpush2.bf16.msra.mxu0 %v2220_v48  ;;  %v307_v48 = vld [vmem:[%s2496_s21 + $0x20] sm:$0x11] }
  0x50   : > { %778 = vmatpush2.bf16.msra.mxu1 %v2221_v49  ;;  %557 = vmatprep.subr.bf16.mxu0 %v2222_v50  ;;  %v2291_v49 = vld [vmem:[%s3089_s1 + $0x330] ss:$8 sps:$4 sm:$0xff]   ;;  %v2296_v50 = vld [vmem:[%s3089_s1 + $0x224] ss:$8 sps:$4 sm:$0xff]  }
  0x51   : > { %779 = vmatprep.subr.bf16.mxu1 %v2224_v51  ;;  %v1833_v51 = vcombine.high %v307_v48, %v307_v48 }
  0x53   : > { %558 = vmatpush2.bf16.msra.mxu0 %v2226_v52  ;;  %v1832_v52 = vcombine.low %v307_v48, %v307_v48  ;;  %v2339_v48 = vld [vmem:[%s3089_s1 + $0x3b0] ss:$8 sps:$4 sm:$0xff]  }
  0x54   : > { %780 = vmatpush2.bf16.msra.mxu1 %v2227_v53  ;;  %559 = vmatprep.subr.bf16.mxu0 %v2228_v54  ;;  %v2299_v53 = vld [vmem:[%s3089_s1 + $0x324] ss:$8 sps:$4 sm:$0xff]   ;;  %v371_v54 = vrot.slane %v1833_v51, 1  ;;  %v2344_v51 = vld [vmem:[%s3089_s1 + $0x2a0] ss:$8 sps:$4 sm:$0xff]  }
  0x55   : > { %781 = vmatprep.subr.bf16.mxu1 %v2230_v55  ;;  %v369_v55 = vrot.slane %v1832_v52, 1  ;;  %v2347_v52 = vld [vmem:[%s3089_s1 + $0x3a0] ss:$8 sps:$4 sm:$0xff]  }
  0x56   : > { %v372_v62 = vsel %vm362_vm0, %v367_v5, %v371_v54  ;;  %v812_v5 = vld [vmem:[%s2496_s21] sm:$0xcc]  ;;  %v2355_v54 = vld [vmem:[%s3089_s1 + $0x394] ss:$8 sps:$4 sm:$0xff]  }
  0x57   : > { %560 = vmatpush2.bf16.msra.mxu0 %v2232_v56  ;;  %v2294_v56 = vld [vmem:[%s3089_s1 + $0x220] ss:$8 sps:$4 sm:$0xff]   ;;  %v370_v0 = vsel %vm362_vm0, %v364_v24, %v369_v55  ;;  %v2350_v55 = vld [vmem:[%s3089_s1 + $0x290] ss:$8 sps:$4 sm:$0xff]  }
  0x58   : > { %782 = vmatpush2.bf16.msra.mxu1 %v2233_v57  ;;  %561 = vmatprep.subr.bf16.mxu0 %v2234_v1  ;;  %v2297_v57 = vld [vmem:[%s3089_s1 + $0x320] ss:$8 sps:$4 sm:$0xff]   ;;  %v2305_v1 = vld [vmem:[%s3089_s1 + $0x314] ss:$8 sps:$4 sm:$0xff]  }
  0x59   : > { %783 = vmatprep.subr.bf16.mxu1 %v2236_v2  ;;  %v862_v2 = vrot.slane %v2656_v63, 2 }
  0x5b   : > { %562 = vmatpush2.bf16.msra.mxu0 %v2238_v6  ;;  %v1932_v6 = vcombine.low %v812_v5, %v2644_v58 }
  0x5c   : > { %784 = vmatpush2.bf16.msra.mxu1 %v2239_v7  ;;  %563 = vmatprep.subr.bf16.mxu0 %v2240_v9  ;;  %v1933_v7 = vcombine.high %v812_v5, %v2644_v58  ;;  %v1143_v9 = vrot.slane %v2656_v63, 3  ;;  %v2359_v5 = vld [vmem:[%s3089_s1 + $0x380] ss:$8 sps:$4 sm:$0xff]  }
  0x5d   : > { %785 = vmatprep.subr.bf16.mxu1 %v2242_v10  ;;  %v859_v10 = vrot.slane %v2703_v18, 2 }
  0x5e   : > { %v861_v17 = vrot.slane %v1933_v7, 2 }
  0x5f   : > { %564 = vmatpush2.bf16.msra.mxu0 %v2244_v11  ;;  %v2308_v11 = vld [vmem:[%s3089_s1 + $0x204] ss:$8 sps:$4 sm:$0xff]  }
  0x60   : > { %786 = vmatpush2.bf16.msra.mxu1 %v2245_v12  ;;  %565 = vmatprep.subr.bf16.mxu0 %v2246_v13  ;;  %v2311_v12 = vld [vmem:[%s3089_s1 + $0x304] ss:$8 sps:$4 sm:$0xff]   ;;  %v2000_v13 = vcombine.low %v1093_v8, %v2644_v58  ;;  %v863_v24 = vsel %vm857_vm1, %v861_v17, %v862_v2 }
  0x61   : > { %787 = vmatprep.subr.bf16.mxu1 %v2248_v14  ;;  %v2001_v14 = vcombine.high %v1093_v8, %v2644_v58 }
  0x63   : > { %566 = vmatpush2.bf16.msra.mxu0 %v2250_v15  ;;  %v1140_v15 = vrot.slane %v2703_v18, 3 }
  0x64   : > { %788 = vmatpush2.bf16.msra.mxu1 %v2251_v16  ;;  %567 = vmatprep.subr.bf16.mxu0 %v2252_v19  ;;  %v858_v16 = vrot.slane %v1932_v6, 2  ;;  %v2306_v19 = vld [vmem:[%s3089_s1 + $0x200] ss:$8 sps:$4 sm:$0xff]   ;;  %v2368_v6 = vld [vmem:[%s3089_s1 + $0x474] ss:$8 sps:$4 sm:$0xff]  }
  0x65   : > { %789 = vmatprep.subr.bf16.mxu1 %v2254_v20  ;;  %v1139_v20 = vrot.slane %v2000_v13, 3 }
  0x67   : > { %568 = vmatpush2.bf16.msra.mxu0 %v2256_v21  ;;  %v1142_v21 = vrot.slane %v2001_v14, 3  ;;  %v2371_v14 = vld [vmem:[%s3089_s1 + $0x464] ss:$8 sps:$4 sm:$0xff]  }
  0x68   : > { %790 = vmatpush2.bf16.msra.mxu1 %v2257_v22  ;;  %1032 = vmatprep.subr.bf16.mxu0 %v2266_v25  ;;  %v2309_v22 = vld [vmem:[%s3089_s1 + $0x300] ss:$8 sps:$4 sm:$0xff]   ;;  %v2850_v25 = vsel %vm857_vm1, %v858_v16, %v859_v10 }
  0x69   : > { %1313 = vmatprep.subr.bf16.mxu1 %v2269_v26  ;;  %v2317_v26 = vld [vmem:[%s3089_s1 + $0x3f4] ss:$8 sps:$4 sm:$0xff]  }
  0x6a   : > { %570 = vmatmul.mubr.bf16.vlgmr.msra.gmra.mxu0 %v365_v28  ;;  %v2861_v28 = vsel %vm1138_vm2, %v1139_v20, %v1140_v15 }
  0x6b   : > { %792 = vmatmul.mubr.bf16.vlgmr.msra.gmra.mxu1 %v1866_v27  ;;  %1033 = vmatpush1.bf16.msra.mxu0 %v2264_v29  ;;  %v1144_v27 = vsel %vm1138_vm2, %v1142_v21, %v1143_v9  ;;  %v2312_v29 = vld [vmem:[%s3089_s1 + $0x2f0] ss:$8 sps:$4 sm:$0xff]  }
  0x6c   : > { %1314 = vmatpush1.bf16.msra.mxu1 %v2267_v30  ;;  %1034 = vmatprep.subr.bf16.mxu0 %v2272_v33  ;;  %v2315_v30 = vld [vmem:[%s3089_s1 + $0x3f0] ss:$8 sps:$4 sm:$0xff]   ;;  %v2320_v33 = vld [vmem:[%s3089_s1 + $0x2e4] ss:$8 sps:$4 sm:$0xff]  }
  0x6d   : > { %1315 = vmatprep.subr.bf16.mxu1 %v2275_v34  ;;  %801 = vmatprep.mubr.bf16.mxu1 %v2656_v63  ;;  %v2323_v34 = vld [vmem:[%s3089_s1 + $0x3e4] ss:$8 sps:$4 sm:$0xff]  }
  0x6e   : > { %579 = vmatprep.mubr.bf16.mxu0 %v372_v62  ;;  %v2358_v62 = vld [vmem:[%s3089_s1 + $0x284] ss:$8 sps:$4 sm:$0xff]  }
  0x6f   : > { %1035 = vmatpush1.bf16.msra.mxu0 %v2270_v35  ;;  %v2318_v35 = vld [vmem:[%s3089_s1 + $0x2e0] ss:$8 sps:$4 sm:$0xff]  }
  0x70   : > { %1316 = vmatpush1.bf16.msra.mxu1 %v2273_v36  ;;  %1036 = vmatprep.subr.bf16.mxu0 %v2278_v37  ;;  %v2321_v36 = vld [vmem:[%s3089_s1 + $0x3e0] ss:$8 sps:$4 sm:$0xff]   ;;  %v2326_v37 = vld [vmem:[%s3089_s1 + $0x2d4] ss:$8 sps:$4 sm:$0xff]  }
  0x71   : > { %1317 = vmatprep.subr.bf16.mxu1 %v2281_v38  ;;  %v2329_v38 = vld [vmem:[%s3089_s1 + $0x3d4] ss:$8 sps:$4 sm:$0xff]  }
  0x72   : > { %580 = vmatmul.mubr.bf16.gmra.mxu0 %v370_v0  ;;  %v2361_v0 = vld [vmem:[%s3089_s1 + $0x384] ss:$8 sps:$4 sm:$0xff]  }
  0x73   : > { %802 = vmatmul.mubr.bf16.gmra.mxu1 %v2703_v18  ;;  %1037 = vmatpush1.bf16.msra.mxu0 %v2276_v39  ;;  %v2324_v39 = vld [vmem:[%s3089_s1 + $0x2d0] ss:$8 sps:$4 sm:$0xff]   ;;  %v2384_v18 = vld [vmem:[%s3089_s1 + $0x434] ss:$8 sps:$4 sm:$0xff]  }
  0x74   : > { %1318 = vmatpush1.bf16.msra.mxu1 %v2279_v40  ;;  %1038 = vmatprep.subr.bf16.mxu0 %v2284_v41  ;;  %v2327_v40 = vld [vmem:[%s3089_s1 + $0x3d0] ss:$8 sps:$4 sm:$0xff]   ;;  %v2332_v41 = vld [vmem:[%s3089_s1 + $0x2c4] ss:$8 sps:$4 sm:$0xff]  }
  0x75   : > { %1319 = vmatprep.subr.bf16.mxu1 %v2287_v42  ;;  %1064 = vmatprep.mubr.bf16.mxu0 %v863_v24  ;;  %v2335_v42 = vld [vmem:[%s3089_s1 + $0x3c4] ss:$8 sps:$4 sm:$0xff]  }
  0x76   : > { %1345 = vmatprep.mubr.bf16.mxu1 %v1144_v27  ;;  %v2381_v24 = vld [vmem:[%s3089_s1 + $0x444] ss:$8 sps:$4 sm:$0xff]   ;;  %v2385_v27 = vld [vmem:[%s3089_s1 + $0x420] ss:$8 sps:$4 sm:$0xff]  }
  0x77   : > { %1039 = vmatpush1.bf16.msra.mxu0 %v2282_v43  ;;  %v2330_v43 = vld [vmem:[%s3089_s1 + $0x2c0] ss:$8 sps:$4 sm:$0xff]  }
  0x78   : > { %1320 = vmatpush1.bf16.msra.mxu1 %v2285_v44  ;;  %1040 = vmatprep.subr.bf16.mxu0 %v2290_v45  ;;  %v2333_v44 = vld [vmem:[%s3089_s1 + $0x3c0] ss:$8 sps:$4 sm:$0xff]   ;;  %v2338_v45 = vld [vmem:[%s3089_s1 + $0x2b4] ss:$8 sps:$4 sm:$0xff]  }
  0x79   : > { %1321 = vmatprep.subr.bf16.mxu1 %v2293_v46  ;;  %v2341_v46 = vld [vmem:[%s3089_s1 + $0x3b4] ss:$8 sps:$4 sm:$0xff]  }
  0x7b   : > { %1041 = vmatpush1.bf16.msra.mxu0 %v2288_v47  ;;  %v2336_v47 = vld [vmem:[%s3089_s1 + $0x2b0] ss:$8 sps:$4 sm:$0xff]  }
  0x7c   : > { %1322 = vmatpush1.bf16.msra.mxu1 %v2291_v49  ;;  %1042 = vmatprep.subr.bf16.mxu0 %v2296_v50  ;;  %v2346_v49 = vld [vmem:[%s3089_s1 + $0x2a4] ss:$8 sps:$4 sm:$0xff]  }
  0x7d   : > { %1323 = vmatprep.subr.bf16.mxu1 %v2299_v53  ;;  %v2349_v50 = vld [vmem:[%s3089_s1 + $0x3a4] ss:$8 sps:$4 sm:$0xff]   ;;  %v2352_v53 = vld [vmem:[%s3089_s1 + $0x294] ss:$8 sps:$4 sm:$0xff]  }
  0x7f   : > { %1043 = vmatpush1.bf16.msra.mxu0 %v2294_v56  ;;  %v2353_v56 = vld [vmem:[%s3089_s1 + $0x390] ss:$8 sps:$4 sm:$0xff]  }
  0x80   : > { %1324 = vmatpush1.bf16.msra.mxu1 %v2297_v57  ;;  %1044 = vmatprep.subr.bf16.mxu0 %v2302_v61  ;;  %v813_v57 = vld [vmem:[%s2496_s21 + $0x20] sm:$0x33] }
  0x81   : > { %1325 = vmatprep.subr.bf16.mxu1 %v2305_v1  ;;  %v1094_v61 = vld [vmem:[%s2496_s21 + $0x20] sm:$0x77]  ;;  %v1935_v1 = vcombine.high %v813_v57, %v813_v57 }
  0x82   : > { %v2002_v13 = vcombine.low %v1094_v61, %v1094_v61 }
  0x83   : > { %1045 = vmatpush1.bf16.msra.mxu0 %v2300_v3  ;;  %v2003_v3 = vcombine.high %v1094_v61, %v1094_v61  ;;  %v866_v7 = vrot.slane %v1935_v1, 2 }
  0x84   : > { %1326 = vmatpush1.bf16.msra.mxu1 %v2303_v4  ;;  %1046 = vmatprep.subr.bf16.mxu0 %v2308_v11  ;;  %v2356_v4 = vld [vmem:[%s3089_s1 + $0x280] ss:$8 sps:$4 sm:$0xff]   ;;  %v2366_v11 = vld [vmem:[%s3089_s1 + $0x470] ss:$8 sps:$4 sm:$0xff]   ;;  %v1145_v21 = vrot.slane %v2002_v13, 3 }
  0x85   : > { %1327 = vmatprep.subr.bf16.mxu1 %v2311_v12  ;;  %v1147_v8 = vrot.slane %v2003_v3, 3  ;;  %v1934_v12 = vcombine.low %v813_v57, %v813_v57  ;;  %v867_v16 = vsel %vm857_vm1, %v862_v2, %v866_v7  ;;  %v2979_v2 = vld [vmem:[%s2496_s21 + $0x20] sm:$0xff] }
  0x87   : > { %1047 = vmatpush1.bf16.msra.mxu0 %v2306_v19  ;;  %v1148_v17 = vsel %vm1138_vm2, %v1143_v9, %v1147_v8  ;;  %v2369_v19 = vld [vmem:[%s3089_s1 + $0x460] ss:$8 sps:$4 sm:$0xff]   ;;  %v864_v20 = vrot.slane %v1934_v12, 2  ;;  %v2374_v9 = vld [vmem:[%s3089_s1 + $0x450] ss:$8 sps:$4 sm:$0xff]  }
  0x88   : > { %1328 = vmatpush1.bf16.msra.mxu1 %v2309_v22  ;;  %1048 = vmatprep.subr.bf16.mxu0 %v2314_v23  ;;  %v2376_v22 = vld [vmem:[%s3089_s1 + $0x454] ss:$8 sps:$4 sm:$0xff]   ;;  %v1146_v23 = vsel %vm1138_vm2, %v1140_v15, %v1145_v21  ;;  %v2382_v15 = vld [vmem:[%s3089_s1 + $0x430] ss:$8 sps:$4 sm:$0xff]  }
  0x89   : > { %1329 = vmatprep.subr.bf16.mxu1 %v2317_v26  ;;  %v865_v63 = vsel %vm857_vm1, %v859_v10, %v864_v20  ;;  %v2379_v10 = vld [vmem:[%s3089_s1 + $0x440] ss:$8 sps:$4 sm:$0xff]   ;;  %v2387_v26 = vld [vmem:[%s3089_s1 + $0x424] ss:$8 sps:$4 sm:$0xff]  }
  0x8b   : > { %1049 = vmatpush2.bf16.msra.mxu0 %v2312_v29  ;;  %v2393_v29 = vld [vmem:[%s3089_s1 + $0x404] ss:$8 sps:$4 sm:$0xff]  }
  0x8c   : > { %1330 = vmatpush2.bf16.msra.mxu1 %v2315_v30  ;;  %1050 = vmatprep.subr.bf16.mxu0 %v2320_v33  ;;  %v2391_v30 = vld [vmem:[%s3089_s1 + $0x400] ss:$8 sps:$4 sm:$0xff]   ;;  %v2396_v33 = vld [vmem:[%s3089_s1 + $0x4f4] ss:$8 sps:$4 sm:$0xff]  }
  0x8d   : > { %1331 = vmatprep.subr.bf16.mxu1 %v2323_v34  ;;  %v2394_v34 = vld [vmem:[%s3089_s1 + $0x4f0] ss:$8 sps:$4 sm:$0xff]  }
  0x8f   : > { %1051 = vmatpush2.bf16.msra.mxu0 %v2318_v35  ;;  %v2399_v35 = vld [vmem:[%s3089_s1 + $0x4e4] ss:$8 sps:$4 sm:$0xff]  }
  0x90   : > { %1332 = vmatpush2.bf16.msra.mxu1 %v2321_v36  ;;  %1052 = vmatprep.subr.bf16.mxu0 %v2326_v37  ;;  %v2397_v36 = vld [vmem:[%s3089_s1 + $0x4e0] ss:$8 sps:$4 sm:$0xff]   ;;  %v2402_v37 = vld [vmem:[%s3089_s1 + $0x4d4] ss:$8 sps:$4 sm:$0xff]  }
  0x91   : > { %1333 = vmatprep.subr.bf16.mxu1 %v2329_v38  ;;  %v2400_v38 = vld [vmem:[%s3089_s1 + $0x4d0] ss:$8 sps:$4 sm:$0xff]  }
  0x93   : > { %1053 = vmatpush2.bf16.msra.mxu0 %v2324_v39  ;;  %v2405_v39 = vld [vmem:[%s3089_s1 + $0x4c4] ss:$8 sps:$4 sm:$0xff]  }
  0x94   : > { %1334 = vmatpush2.bf16.msra.mxu1 %v2327_v40  ;;  %1054 = vmatprep.subr.bf16.mxu0 %v2332_v41  ;;  %v2403_v40 = vld [vmem:[%s3089_s1 + $0x4c0] ss:$8 sps:$4 sm:$0xff]   ;;  %v2408_v41 = vld [vmem:[%s3089_s1 + $0x4b4] ss:$8 sps:$4 sm:$0xff]  }
  0x95   : > { %1335 = vmatprep.subr.bf16.mxu1 %v2335_v42  ;;  %v2406_v42 = vld [vmem:[%s3089_s1 + $0x4b0] ss:$8 sps:$4 sm:$0xff]  }
  0x97   : > { %1055 = vmatpush2.bf16.msra.mxu0 %v2330_v43  ;;  %v2411_v43 = vld [vmem:[%s3089_s1 + $0x4a4] ss:$8 sps:$4 sm:$0xff]  }
  0x98   : > { %1336 = vmatpush2.bf16.msra.mxu1 %v2333_v44  ;;  %1056 = vmatprep.subr.bf16.mxu0 %v2338_v45  ;;  %v2409_v44 = vld [vmem:[%s3089_s1 + $0x4a0] ss:$8 sps:$4 sm:$0xff]   ;;  %v2414_v45 = vld [vmem:[%s3089_s1 + $0x494] ss:$8 sps:$4 sm:$0xff]  }
  0x99   : > { %1337 = vmatprep.subr.bf16.mxu1 %v2341_v46  ;;  %v2412_v46 = vld [vmem:[%s3089_s1 + $0x490] ss:$8 sps:$4 sm:$0xff]  }
  0x9b   : > { %1057 = vmatpush2.bf16.msra.mxu0 %v2336_v47  ;;  %v2417_v47 = vld [vmem:[%s3089_s1 + $0x484] ss:$8 sps:$4 sm:$0xff]  }
  0x9c   : > { %1338 = vmatpush2.bf16.msra.mxu1 %v2339_v48  ;;  %1058 = vmatprep.subr.bf16.mxu0 %v2346_v49  ;;  %v2415_v48 = vld [vmem:[%s3089_s1 + $0x480] ss:$8 sps:$4 sm:$0xff]   ;;  %v2070_v49 = vcombine.low %v2650_v60, %v2979_v2 }
  0x9d   : > { %1339 = vmatprep.subr.bf16.mxu1 %v2349_v50 }
  0x9f   : > { %1059 = vmatpush2.bf16.msra.mxu0 %v2344_v51 }
  0xa0   : > { %1340 = vmatpush2.bf16.msra.mxu1 %v2347_v52  ;;  %1060 = vmatprep.subr.bf16.mxu0 %v2352_v53 }
  0xa1   : > { %1341 = vmatprep.subr.bf16.mxu1 %v2355_v54 }
  0xa3   : > { %1061 = vmatpush2.bf16.msra.mxu0 %v2350_v55 }
  0xa4   : > { %1342 = vmatpush2.bf16.msra.mxu1 %v2353_v56  ;;  %1062 = vmatprep.subr.bf16.mxu0 %v2358_v62 }
  0xa5   : > { %1343 = vmatprep.subr.bf16.mxu1 %v2361_v0 }
  0xa7   : > { %1063 = vmatpush2.bf16.msra.mxu0 %v2356_v4 }
  0xa8   : > { %1344 = vmatpush2.bf16.msra.mxu1 %v2359_v5  ;;  %1579 = vmatprep.subr.bf16.mxu0 %v2368_v6 }
  0xa9   : > { %2122 = vmatprep.subr.bf16.mxu1 %v2368_v6 }
  0xaa   : > { %1065 = vmatmul.mubr.bf16.vlgmr.msra.gmra.mxu0 %v2850_v25  ;;  %v2071_v25 = vcombine.high %v2650_v60, %v2979_v2 }
  0xab   : > { %1346 = vmatmul.mubr.bf16.vlgmr.msra.gmra.mxu1 %v2861_v28  ;;  %1580 = vmatpush1.bf16.msra.mxu0 %v2366_v11  ;;  %v2388_v28 = vld [vmem:[%s3089_s1 + $0x410] ss:$8 sps:$4 sm:$0xff]  }
  0xac   : > { %2138 = vmatpush1.bf16.msra.mxu1 %v2366_v11  ;;  %1581 = vmatprep.subr.bf16.mxu0 %v2371_v14 }
  0xad   : > { %2123 = vmatprep.subr.bf16.mxu1 %v2371_v14  ;;  %1074 = vmatprep.mubr.bf16.mxu0 %v867_v16  ;;  %v1642_v16 = vlaneseq }
  0xae   : > { %1355 = vmatprep.mubr.bf16.mxu1 %v1148_v17 }
  0xaf   : > { %1582 = vmatpush1.bf16.msra.mxu0 %v2369_v19  ;;  %v1643_v20 = vshrl.u32 %v1642_v16, 7 }
  0xb0   : > { %2139 = vmatpush1.bf16.msra.mxu1 %v2369_v19  ;;  %1583 = vmatprep.subr.bf16.mxu0 %v2376_v22 }
  0xb1   : > { %2124 = vmatprep.subr.bf16.mxu1 %v2376_v22 }
  0xb2   : > { %1075 = vmatmul.mubr.bf16.gmra.mxu0 %v865_v63 }
  0xb3   : > { %1356 = vmatmul.mubr.bf16.gmra.mxu1 %v1146_v23  ;;  %1584 = vmatpush1.bf16.msra.mxu0 %v2374_v9  ;;  %v1644_v23 = vsub.s32 0, %v1643_v20 }
  0xb4   : > { %2140 = vmatpush1.bf16.msra.mxu1 %v2374_v9  ;;  %1585 = vmatprep.subr.bf16.mxu0 %v2381_v24 }
  0xb5   : > { %2125 = vmatprep.subr.bf16.mxu1 %v2381_v24  ;;  %1611 = vmatprep.mubr.bf16.mxu0 %v2069_v31  ;;  %v2390_v31 = vld [vmem:[%s3089_s1 + $0x414] ss:$8 sps:$4 sm:$0xff]  }
  0xb6   : > { %1621 = vmatprep.mubr.bf16.mxu1 %v2071_v25 }
  0xb7   : > { %1586 = vmatpush1.bf16.msra.mxu0 %v2379_v10 }
  0xb8   : > { %2141 = vmatpush1.bf16.msra.mxu1 %v2379_v10  ;;  %1587 = vmatprep.subr.bf16.mxu0 %v2384_v18 }
  0xb9   : > { %2126 = vmatprep.subr.bf16.mxu1 %v2384_v18  ;;  %v1640_v18 = vld [vmem:[%s3090_s2] sm:$0x3] }
  0xbb   : > { %1588 = vmatpush1.bf16.msra.mxu0 %v2382_v15 }
  0xbc   : > { %2142 = vmatpush1.bf16.msra.mxu1 %v2382_v15  ;;  %1589 = vmatprep.subr.bf16.mxu0 %v2387_v26  ;;  %v1648_v15 = vsub.s32 1, %v1643_v20 }
  0xbd   : > { %2127 = vmatprep.subr.bf16.mxu1 %v2387_v26 }
  0xbf   : > { %1590 = vmatpush1.bf16.msra.mxu0 %v2385_v27 }
  0xc0   : > { %2143 = vmatpush1.bf16.msra.mxu1 %v2385_v27  ;;  %1591 = vmatprep.subr.bf16.mxu0 %v2390_v31 }
  0xc1   : > { %2128 = vmatprep.subr.bf16.mxu1 %v2390_v31 }
  0xc3   : > { %1592 = vmatpush1.bf16.msra.mxu0 %v2388_v28 }
  0xc4   : > { %2144 = vmatpush1.bf16.msra.mxu1 %v2388_v28  ;;  %1593 = vmatprep.subr.bf16.mxu0 %v2393_v29 }
  0xc5   : > { %2129 = vmatprep.subr.bf16.mxu1 %v2393_v29 }
  0xc7   : > { %1594 = vmatpush1.bf16.msra.mxu0 %v2391_v30 }
  0xc8   : > { %2145 = vmatpush1.bf16.msra.mxu1 %v2391_v30  ;;  %1595 = vmatprep.subr.bf16.mxu0 %v2396_v33 }
  0xc9   : > { %2130 = vmatprep.subr.bf16.mxu1 %v2396_v33 }
  0xcb   : > { %1596 = vmatpush2.bf16.msra.mxu0 %v2394_v34 }
  0xcc   : > { %2146 = vmatpush2.bf16.msra.mxu1 %v2394_v34  ;;  %1597 = vmatprep.subr.bf16.mxu0 %v2399_v35  ;;  %v1645_v34 = vrot.slane %v1640_v18, %v1644_v23 }
  0xcd   : > { %2131 = vmatprep.subr.bf16.mxu1 %v2399_v35 }
  0xcf   : > { %1598 = vmatpush2.bf16.msra.mxu0 %v2397_v36 }
  0xd0   : > { %2147 = vmatpush2.bf16.msra.mxu1 %v2397_v36  ;;  %1599 = vmatprep.subr.bf16.mxu0 %v2402_v37 }
  0xd1   : > { %2132 = vmatprep.subr.bf16.mxu1 %v2402_v37 }
  0xd3   : > { %1600 = vmatpush2.bf16.msra.mxu0 %v2400_v38 }
  0xd4   : > { %2148 = vmatpush2.bf16.msra.mxu1 %v2400_v38  ;;  %1601 = vmatprep.subr.bf16.mxu0 %v2405_v39  ;;  %v1649_v38 = vrot.slane %v1640_v18, %v1648_v15 }
  0xd5   : > { %2133 = vmatprep.subr.bf16.mxu1 %v2405_v39 }
  0xd7   : > { %1602 = vmatpush2.bf16.msra.mxu0 %v2403_v40 }
  0xd8   : > { %2149 = vmatpush2.bf16.msra.mxu1 %v2403_v40  ;;  %1603 = vmatprep.subr.bf16.mxu0 %v2408_v41 }
  0xd9   : > { %2134 = vmatprep.subr.bf16.mxu1 %v2408_v41 }
  0xdb   : > { %1604 = vmatpush2.bf16.msra.mxu0 %v2406_v42 }
  0xdc   : > { %2150 = vmatpush2.bf16.msra.mxu1 %v2406_v42  ;;  %1605 = vmatprep.subr.bf16.mxu0 %v2411_v43 }
  0xdd   : > { %2135 = vmatprep.subr.bf16.mxu1 %v2411_v43 }
  0xdf   : > { %1606 = vmatpush2.bf16.msra.mxu0 %v2409_v44 }
  0xe0   : > { %2151 = vmatpush2.bf16.msra.mxu1 %v2409_v44  ;;  %1607 = vmatprep.subr.bf16.mxu0 %v2414_v45 }
  0xe1   : > { %2136 = vmatprep.subr.bf16.mxu1 %v2414_v45 }
  0xe3   : > { %1608 = vmatpush2.bf16.msra.mxu0 %v2412_v46 }
  0xe4   : > { %2152 = vmatpush2.bf16.msra.mxu1 %v2412_v46  ;;  %1609 = vmatprep.subr.bf16.mxu0 %v2417_v47 }
  0xe5   : > { %2137 = vmatprep.subr.bf16.mxu1 %v2417_v47 }
  0xe7   : > { %1610 = vmatpush2.bf16.msra.mxu0 %v2415_v48 }
  0xe8   : > { %2153 = vmatpush2.bf16.msra.mxu1 %v2415_v48 }
  0xea   : > { %1612 = vmatmul.mubr.bf16.vlgmr.msra.gmra.mxu0 %v2068_v32 }
  0xeb   : > { %1622 = vmatmul.mubr.bf16.vlgmr.msra.gmra.mxu1 %v2070_v49 }
 0x12a   : > { %v571_v50 = vpop.f32.mrf.mxu0 }
 0x12b   : > { %v793_v51 = vpop.f32.mrf.mxu1 }
 0x12c   : > { %v573_v52 = vpop.f32.mrf.mxu0  ;;  %v794_v21 = vadd.f32 %v793_v51, %v571_v50 }
 0x12d   : > { %v795_v53 = vpop.f32.mrf.mxu1 }
 0x12e   : > { %v575_v54 = vpop.f32.mrf.mxu0  ;;  %v796_v2 = vadd.f32 %v795_v53, %v573_v52 }
 0x12f   : > { %v797_v55 = vpop.f32.mrf.mxu1 }
 0x130   : > { %v577_v56 = vpop.f32.mrf.mxu0  ;;  %v798_v31 = vadd.f32 %v797_v55, %v575_v54 }
 0x131   : > { %v799_v57 = vpop.f32.mrf.mxu1 }
 0x132   : > { %v581_v61 = vpop.f32.mrf.mxu0  ;;  %v800_v28 = vadd.f32 %v799_v57, %v577_v56 }
 0x133   : > { %v803_v62 = vpop.f32.mrf.mxu1 }
 0x134   : > { %v583_v0 = vpop.f32.mrf.mxu0  ;;  %v804_v22 = vadd.f32 %v803_v62, %v581_v61 }
 0x135   : > { %v805_v1 = vpop.f32.mrf.mxu1 }
 0x136   : > { %v585_v60 = vpop.f32.mrf.mxu0  ;;  %v806_v24 = vadd.f32 %v805_v1, %v583_v0 }
 0x137   : > { %v807_v3 = vpop.f32.mrf.mxu1 }
 0x138   : > { %v587_v4 = vpop.f32.mrf.mxu0  ;;  %v808_v29 = vadd.f32 %v807_v3, %v585_v60 }
 0x139   : > { %v809_v5 = vpop.f32.mrf.mxu1 }
 0x13a   : > { %v810_v35 = vadd.f32 %v809_v5, %v587_v4 }
 0x16a   : > { %v1066_v6 = vpop.f32.mrf.mxu0 }
 0x16b   : > { %v1347_v58 = vpop.f32.mrf.mxu1  ;;  %v1085_v25 = vadd.f32 %v1066_v6, %v794_v21 }
 0x16c   : > { %v1068_v59 = vpop.f32.mrf.mxu0 }
 0x16d   : > { %v1349_v32 = vpop.f32.mrf.mxu1  ;;  %v1086_v26 = vadd.f32 %v1068_v59, %v796_v2  ;;  %v1366_v36 = vadd.f32 %v1347_v58, %v1085_v25 }
 0x16e   : > { %v1070_v7 = vpop.f32.mrf.mxu0 }
 0x16f   : > { %v1351_v8 = vpop.f32.mrf.mxu1  ;;  %v1367_v39 = vadd.f32 %v1349_v32, %v1086_v26  ;;  %v1087_v40 = vadd.f32 %v1070_v7, %v798_v31 }
 0x170   : > { %v1072_v11 = vpop.f32.mrf.mxu0 }
 0x171   : > { %v1353_v12 = vpop.f32.mrf.mxu1  ;;  %v1088_v41 = vadd.f32 %v1072_v11, %v800_v28  ;;  %v1368_v55 = vadd.f32 %v1351_v8, %v1087_v40 }
 0x172   : > { %v1076_v13 = vpop.f32.mrf.mxu0 }
 0x173   : > { %v1357_v14 = vpop.f32.mrf.mxu1  ;;  %v1089_v10 = vadd.f32 %v1076_v13, %v804_v22  ;;  %v1369_v62 = vadd.f32 %v1353_v12, %v1088_v41 }
 0x174   : > { %v1078_v17 = vpop.f32.mrf.mxu0 }
 0x175   : > { %v1359_v19 = vpop.f32.mrf.mxu1  ;;  %v1090_v27 = vadd.f32 %v1078_v17, %v806_v24  ;;  %v1370_v37 = vadd.f32 %v1357_v14, %v1089_v10 }
 0x176   : > { %v1080_v63 = vpop.f32.mrf.mxu0 }
 0x177   : > { %v1361_v9 = vpop.f32.mrf.mxu1  ;;  %v1091_v42 = vadd.f32 %v1080_v63, %v808_v29  ;;  %v1371_v45 = vadd.f32 %v1359_v19, %v1090_v27 }
 0x178   : > { %v1082_v30 = vpop.f32.mrf.mxu0 }
 0x179   : > { %v1363_v33 = vpop.f32.mrf.mxu1  ;;  %v1092_v46 = vadd.f32 %v1082_v30, %v810_v35  ;;  %v1372_v56 = vadd.f32 %v1361_v9, %v1091_v42 }
 0x17b   : > { %v1373_v0 = vadd.f32 %v1363_v33, %v1092_v46 }
 0x1aa   : > { %v1613_v43 = vpop.f32.mrf.mxu0 }
 0x1ab   : > { %v1623_v44 = vpop.f32.mrf.mxu1  ;;  %v1632_v47 = vadd.f32 %v1613_v43, %v1366_v36 }
 0x1ac   : > { %v1636_v48 = vadd.f32 %v1623_v44, %v1370_v37  ;;  %v1615_v49 = vpop.f32.mrf.mxu0 }
 0x1ad   : > { %v1625_v50 = vpop.f32.mrf.mxu1  ;;  %v1652_v51 = vadd.f32 %v1645_v34, %v1632_v47  ;;  %v1633_v53 = vadd.f32 %v1615_v49, %v1367_v39 }
 0x1ae   : > { %v1656_v52 = vadd.f32 %v1645_v34, %v1636_v48  ;;  %v1637_v54 = vadd.f32 %v1625_v50, %v1371_v45  ;;  %v1617_v57 = vpop.f32.mrf.mxu0 }
 0x1af   : > { %v1627_v61 = vpop.f32.mrf.mxu1  ;;  %v1653_v1 = vadd.f32 %v1649_v38, %v1633_v53  ;;  %v1660_v3 = vmax.f32 %v1652_v51, 0.0  ;;  %v1634_v5 = vadd.f32 %v1617_v57, %v1368_v55 }
 0x1b0   : > { %v1657_v60 = vadd.f32 %v1649_v38, %v1637_v54  ;;  %v1664_v4 = vmax.f32 %v1656_v52, 0.0  ;;  %v1638_v6 = vadd.f32 %v1627_v61, %v1372_v56  ;;  %v1619_v58 = vpop.f32.mrf.mxu0 }
 0x1b1   : > { %v1629_v59 = vpop.f32.mrf.mxu1  ;;  %v1661_v32 = vmax.f32 %v1653_v1, 0.0  ;;  %v1635_v11 = vadd.f32 %v1619_v58, %v1369_v62  ;;  %v1654_v13 = vadd.f32 %v1645_v34, %v1634_v5 }
 0x1b2   : > { %v1665_v7 = vmax.f32 %v1657_v60, 0.0  ;;  %v1639_v8 = vadd.f32 %v1629_v59, %v1373_v0  ;;  %v1658_v14 = vadd.f32 %v1645_v34, %v1638_v6 }
 0x1b3   : > { %v2118_v12 = vpack.c.bf16 %v1661_v32, %v1660_v3  ;;  %v1655_v17 = vadd.f32 %v1649_v38, %v1635_v11  ;;  %v1662_v20 = vmax.f32 %v1654_v13, 0.0 }
 0x1b4   : > { %v2120_v16 = vpack.c.bf16 %v1665_v7, %v1664_v4  ;;  %v1659_v19 = vadd.f32 %v1649_v38, %v1639_v8  ;;  %v1666_v21 = vmax.f32 %v1658_v14, 0.0 }
 0x1b5   : > { %1692 = vst [vmem:[%s2469_s22] sm:$0xff] %v2118_v12  ;;  %v1663_v22 = vmax.f32 %v1655_v17, 0.0 }
 0x1b6   : > { %1694 = vst [vmem:[%s2469_s22 + $0x10] sm:$0xff] %v2120_v16  ;;  %v1667_v2 = vmax.f32 %v1659_v19, 0.0 }
 0x1b7   : > { %v2119_v63 = vpack.c.bf16 %v1663_v22, %v1662_v20 }
 0x1b8   : > { %v2121_v9 = vpack.c.bf16 %v1667_v2, %v1666_v21 }
 0x1b9   : > { %1693 = vst [vmem:[%s2469_s22 + $0x8] sm:$0xff] %v2119_v63 }
 0x1ba   : > { %1695 = vst [vmem:[%s2469_s22 + $0x18] sm:$0xff] %v2121_v9 }
 0x1bb PF: > { %s13_s12 = sadd.s32 1, %s2430_s12  }
 0x1bc   : > { %p10_p8 = scmp.ge.s32.totalorder %s13_s12, 5  }
 0x1be   :  { %12 = sbr.rel (!%p10_p8) target bundleno = 1 (0x1), region = 157 }
 0x1c3   :  { %1720 = vsyncmov [#allocation3] }
 0x1c6   :  { %s1721_s5 = vpop.sfrf %1720 }
 0x1c7   :  { %p2110_p9 = scmp.ne.s32.totalorder %s1721_s5, 0 }
 0x1c9   :  { %1725 = shalt.err (%p2110_p9)  }
 0x1ca   :  { %1727 = vsyncmov [#allocation3 + $0x1] }
 0x1cd   :  { %s1728_s23 = vpop.sfrf %1727 }
 0x1ce   :  { %p2111_p10 = scmp.ne.s32.totalorder %s1728_s23, 0 }
 0x1d0   :  { %1732 = shalt.err (%p2111_p10)  }

// kernel: encoder_forward.4
= control target key start
LH: loop header
LB: loop body
LE: loop exit
PB: predicated region body
PF: predicated region fallthrough
CT: control target
= control target key end

     0   :  { %s4416_s12 = smov 0   ;;  %s5691_s0 = inlined_call_operand.vmem [shape: bf16[104,512], index: 0, kind: input, shape index: {}]   ;;  %s5692_s1 = inlined_call_operand.vmem [shape: bf16[5,512,256], index: 1, kind: input, shape index: {}]   ;;  %s5693_s2 = inlined_call_operand.vmem [shape: f32[1,256], index: 2, kind: input, shape index: {}]   ;;  %s5694_s3 = inlined_call_operand.vmem [shape: bf16[96,256], index: 3, kind: output, shape index: {}]  }
   0x1 LB: > { %s4422_s13 = sadd.s32 4294967295, %s4393_s12   ;;  %p3194_p0 = scmp.ge.s32.totalorder %s4393_s12, 1  ;;  %s4393_s12 = sphi %s4416_s12, %s13_s12  }
   0x2   : > { %p103_p1 = scmp.lt.s32.totalorder %s4393_s12, 4 }
   0x4   : > { %p104_p2 = pnand %p3194_p0, %p103_p1 }
   0x6   : > { %107 = sbr.rel (%p104_p2) target bundleno = 600 (0x258), region = 28 }
   0xb   : > { %s3195_s14 = sshll.u32 %s4422_s13, 2  ;;  %s129_s15 = ssub.s32 0, %s4422_s13 }
   0xc   : > { %p122_p3 = scmp.lt.s32.totalorder %s3195_s14, 11  ;;  %p128_p4 = scmp.lt.s32.totalorder %s4422_s13, 0 }
   0xd   : > { %s3198_s16 = smin.u32 %s4422_s13, %s129_s15  ;;  %p3201_p6 = scmp.ne.s32.totalorder %s4422_s13, 0 }
   0xe   : > { %s5710_s14 = smov (!%p122_p3, %s3195_s14), 11  ;;  %s131_s17 = sand.u32 1, %s3198_s16  }
   0xf   : > { %s3838_s18 = sshll.u32 %s5710_s14, 3  ;;  %s132_s19 = ssub.s32 0, %s131_s17 }
  0x10   : > { %s4433_s22 = scalar_lea.vmem %s5694_s3, %s3838_s18  ;;  %s5712_s19 = smov (!%p128_p4, %s132_s19), %s131_s17 }
  0x11   : > { %p3200_p5 = scmp.lt.s32.totalorder %s5712_s19, 0  ;;  %s138_s23 = sadd.s32 2, %s5712_s19 }
  0x12   : > { %143 = sbr.rel (%p3201_p6) target bundleno = 30 (0x1e), region = 32 }
  0x13   : > { %s5714_s23 = smov (!%p3200_p5, %s138_s23), %s5712_s19 }
  0x17   : > { %v177_v0 = vld [vmem:[%s5691_s0] sm:$0xff]  ;;  %v179_v1 = vld [vmem:[%s5691_s0 + $0x8] sm:$0xff]  ;;  %v181_v2 = vld [vmem:[%s5691_s0 + $0x10] sm:$0xff] }
  0x18   : > { %178 = vst [vmem:[#allocation2] sm:$0xff] %v177_v0  ;;  %180 = vst [vmem:[#allocation2 + $0x8] sm:$0xff] %v179_v1  ;;  %v183_v3 = vld [vmem:[%s5691_s0 + $0x18] sm:$0xff]  ;;  %v185_v4 = vld [vmem:[%s5691_s0 + $0x20] sm:$0xff] }
  0x19   : > { %182 = vst [vmem:[#allocation2 + $0x10] sm:$0xff] %v181_v2  ;;  %v187_v5 = vld [vmem:[%s5691_s0 + $0x28] sm:$0xff]  ;;  %184 = vst [vmem:[#allocation2 + $0x18] sm:$0xff] %v183_v3  ;;  %v189_v6 = vld [vmem:[%s5691_s0 + $0x30] sm:$0xff] }
  0x1a   : > { %186 = vst [vmem:[#allocation2 + $0x20] sm:$0xff] %v185_v4  ;;  %188 = vst [vmem:[#allocation2 + $0x28] sm:$0xff] %v187_v5  ;;  %v191_v7 = vld [vmem:[%s5691_s0 + $0x38] sm:$0xff]  ;;  %v193_v8 = vld [vmem:[%s5691_s0 + $0x40] sm:$0xff] }
  0x1b   : > { %190 = vst [vmem:[#allocation2 + $0x30] sm:$0xff] %v189_v6  ;;  %192 = vst [vmem:[#allocation2 + $0x38] sm:$0xff] %v191_v7  ;;  %v195_v9 = vld [vmem:[%s5691_s0 + $0x48] sm:$0xff] }
  0x1c   : > { %194 = vst [vmem:[#allocation2 + $0x40] sm:$0xff] %v193_v8  ;;  %196 = vst [vmem:[#allocation2 + $0x48] sm:$0xff] %v195_v9 }
  0x1d   : > { %204 = vsyncadd [#allocation3], 1280 }
  0x1e PF: > { %s205_s19 = sadd.s32 1, %s4422_s13 }
  0x1f   : > { %p3202_p7 = scmp.ge.s32.totalorder %s205_s19, 3 }
  0x20   : > { %s210_s20 = ssub.s32 (!%p3202_p7), 1, %s5714_s23  ;;  %s3839_s21 = sshll.u32 (!%p3202_p7), %s4422_s13, 5 }
  0x21   : > { %209 = sbr.rel (%p3202_p7) target bundleno = 45 (0x2d), region = 70  ;;  %s3840_s24 = sadd.s32 (!%p3202_p7), 32, %s3839_s21 }
  0x22   : > { %s3842_s25 = smul.u32 (!%p3202_p7), 80, %s210_s20  ;;  %s212_s26 = sshra.s32 (!%p3202_p7), %s3840_s24, 3 }
  0x23   : > { %s3841_s27 = sshll.u32 (!%p3202_p7), %s212_s26, 4  ;;  %s220_s5 = scalar_lea.sflag (!%p3202_p7), [#allocation3], %s210_s20 }
  0x24   : > { %s216_s30 = scalar_lea.vmem (!%p3202_p7), %s5691_s0, %s3841_s27  ;;  %s219_s4 = scalar_lea.vmem (!%p3202_p7), [#allocation2], %s3842_s25 }
  0x26   : > { %v254_v10 = vld [vmem:[%s216_s30] sm:$0xff]  ;;  %v256_v11 = vld [vmem:[%s216_s30 + $0x8] sm:$0xff]  ;;  %v258_v12 = vld [vmem:[%s216_s30 + $0x10] sm:$0xff] }
  0x27   : > { %255 = vst [vmem:[%s219_s4] sm:$0xff] %v254_v10  ;;  %257 = vst [vmem:[%s219_s4 + $0x8] sm:$0xff] %v256_v11  ;;  %v260_v13 = vld [vmem:[%s216_s30 + $0x18] sm:$0xff]  ;;  %v262_v14 = vld [vmem:[%s216_s30 + $0x20] sm:$0xff] }
  0x28   : > { %259 = vst [vmem:[%s219_s4 + $0x10] sm:$0xff] %v258_v12  ;;  %v264_v15 = vld [vmem:[%s216_s30 + $0x28] sm:$0xff]  ;;  %261 = vst [vmem:[%s219_s4 + $0x18] sm:$0xff] %v260_v13  ;;  %v266_v16 = vld [vmem:[%s216_s30 + $0x30] sm:$0xff] }
  0x29   : > { %263 = vst [vmem:[%s219_s4 + $0x20] sm:$0xff] %v262_v14  ;;  %265 = vst [vmem:[%s219_s4 + $0x28] sm:$0xff] %v264_v15  ;;  %v268_v17 = vld [vmem:[%s216_s30 + $0x38] sm:$0xff]  ;;  %v270_v18 = vld [vmem:[%s216_s30 + $0x40] sm:$0xff] }
  0x2a   : > { %267 = vst [vmem:[%s219_s4 + $0x30] sm:$0xff] %v266_v16  ;;  %269 = vst [vmem:[%s219_s4 + $0x38] sm:$0xff] %v268_v17  ;;  %v272_v19 = vld [vmem:[%s216_s30 + $0x48] sm:$0xff] }
  0x2b   : > { %271 = vst [vmem:[%s219_s4 + $0x40] sm:$0xff] %v270_v18  ;;  %273 = vst [vmem:[%s219_s4 + $0x48] sm:$0xff] %v272_v19 }
  0x2c   : > { %281 = vsyncadd %s220_s5, 1280 }
  0x2d PF: > { %s3843_s6 = smul.u32 80, %s5714_s23  ;;  %s285_s8 = scalar_lea.sflag [#allocation3], %s5714_s23 }
  0x2f   : > { %s4475_s7 = scalar_lea.vmem [#allocation2], %s3843_s6 }
  0x30   : > { %4389 = dma.done.wait %s285_s8, 1280 }
  0x31   : > { %4390 = vsyncadd %s285_s8, 4294966016  ;;  %v3859_v20 = vld [vmem:[%s5692_s1 + $0x274] ss:$8 sps:$4 sm:$0xff]   ;;  %v3863_v22 = vld [vmem:[%s5692_s1 + $0x270] ss:$8 sps:$4 sm:$0xff]   ;;  %vm473_vm0 = vcmask 1046528  }
  0x32   : > { %v3861_v21 = vld [vmem:[%s5692_s1 + $0x374] ss:$8 sps:$4 sm:$0xff]   ;;  %822 = vmatprep.subr.bf16.mxu0 %v3859_v20  ;;  %v3864_v23 = vld [vmem:[%s5692_s1 + $0x370] ss:$8 sps:$4 sm:$0xff]   ;;  %v3865_v24 = vld [vmem:[%s5692_s1 + $0x264] ss:$8 sps:$4 sm:$0xff]  }
  0x33   : > { %875 = vmatprep.subr.bf16.mxu1 %v3861_v21  ;;  %823 = vmatpush1.bf16.msra.mxu0 %v3863_v22  ;;  %v3867_v25 = vld [vmem:[%s5692_s1 + $0x364] ss:$8 sps:$4 sm:$0xff]   ;;  %v3869_v26 = vld [vmem:[%s5692_s1 + $0x260] ss:$8 sps:$4 sm:$0xff]   ;;  %v3871_v28 = vld [vmem:[%s5692_s1 + $0x254] ss:$8 sps:$4 sm:$0xff]  }
  0x34   : > { %876 = vmatpush1.bf16.msra.mxu1 %v3864_v23  ;;  %824 = vmatprep.subr.bf16.mxu0 %v3865_v24  ;;  %v3870_v27 = vld [vmem:[%s5692_s1 + $0x360] ss:$8 sps:$4 sm:$0xff]   ;;  %v3873_v29 = vld [vmem:[%s5692_s1 + $0x354] ss:$8 sps:$4 sm:$0xff]   ;;  %v3875_v30 = vld [vmem:[%s5692_s1 + $0x250] ss:$8 sps:$4 sm:$0xff]  }
  0x35   : > { %877 = vmatprep.subr.bf16.mxu1 %v3867_v25  ;;  %v3876_v31 = vld [vmem:[%s5692_s1 + $0x350] ss:$8 sps:$4 sm:$0xff]   ;;  %v3877_v32 = vld [vmem:[%s5692_s1 + $0x244] ss:$8 sps:$4 sm:$0xff]   ;;  %v3881_v34 = vld [vmem:[%s5692_s1 + $0x240] ss:$8 sps:$4 sm:$0xff]  }
  0x36   : > { %v3879_v33 = vld [vmem:[%s5692_s1 + $0x344] ss:$8 sps:$4 sm:$0xff]   ;;  %v3882_v35 = vld [vmem:[%s5692_s1 + $0x340] ss:$8 sps:$4 sm:$0xff]   ;;  %v3883_v36 = vld [vmem:[%s5692_s1 + $0x234] ss:$8 sps:$4 sm:$0xff]  }
  0x37   : > { %825 = vmatpush1.bf16.msra.mxu0 %v3869_v26  ;;  %v3885_v37 = vld [vmem:[%s5692_s1 + $0x334] ss:$8 sps:$4 sm:$0xff]   ;;  %v3887_v38 = vld [vmem:[%s5692_s1 + $0x230] ss:$8 sps:$4 sm:$0xff]   ;;  %v3889_v40 = vld [vmem:[%s5692_s1 + $0x224] ss:$8 sps:$4 sm:$0xff]  }
  0x38   : > { %878 = vmatpush1.bf16.msra.mxu1 %v3870_v27  ;;  %826 = vmatprep.subr.bf16.mxu0 %v3871_v28  ;;  %v3888_v39 = vld [vmem:[%s5692_s1 + $0x330] ss:$8 sps:$4 sm:$0xff]   ;;  %v3891_v41 = vld [vmem:[%s5692_s1 + $0x324] ss:$8 sps:$4 sm:$0xff]   ;;  %v3893_v42 = vld [vmem:[%s5692_s1 + $0x220] ss:$8 sps:$4 sm:$0xff]  }
  0x39   : > { %879 = vmatprep.subr.bf16.mxu1 %v3873_v29  ;;  %v3894_v43 = vld [vmem:[%s5692_s1 + $0x320] ss:$8 sps:$4 sm:$0xff]   ;;  %v3895_v44 = vld [vmem:[%s5692_s1 + $0x214] ss:$8 sps:$4 sm:$0xff]   ;;  %v3899_v46 = vld [vmem:[%s5692_s1 + $0x210] ss:$8 sps:$4 sm:$0xff]  }
  0x3a   : > { %v3897_v45 = vld [vmem:[%s5692_s1 + $0x314] ss:$8 sps:$4 sm:$0xff]   ;;  %v3900_v47 = vld [vmem:[%s5692_s1 + $0x310] ss:$8 sps:$4 sm:$0xff]   ;;  %v3901_v48 = vld [vmem:[%s5692_s1 + $0x204] ss:$8 sps:$4 sm:$0xff]  }
  0x3b   : > { %827 = vmatpush1.bf16.msra.mxu0 %v3875_v30  ;;  %v3903_v49 = vld [vmem:[%s5692_s1 + $0x304] ss:$8 sps:$4 sm:$0xff]   ;;  %v3905_v50 = vld [vmem:[%s5692_s1 + $0x200] ss:$8 sps:$4 sm:$0xff]   ;;  %v3907_v52 = vld [vmem:[%s5692_s1 + $0x2f4] ss:$8 sps:$4 sm:$0xff]  }
  0x3c   : > { %880 = vmatpush1.bf16.msra.mxu1 %v3876_v31  ;;  %828 = vmatprep.subr.bf16.mxu0 %v3877_v32  ;;  %v3906_v51 = vld [vmem:[%s5692_s1 + $0x300] ss:$8 sps:$4 sm:$0xff]   ;;  %v3909_v53 = vld [vmem:[%s5692_s1 + $0x3f4] ss:$8 sps:$4 sm:$0xff]   ;;  %v3911_v54 = vld [vmem:[%s5692_s1 + $0x2f0] ss:$8 sps:$4 sm:$0xff]  }
  0x3d   : > { %881 = vmatprep.subr.bf16.mxu1 %v3879_v33  ;;  %v3912_v55 = vld [vmem:[%s5692_s1 + $0x3f0] ss:$8 sps:$4 sm:$0xff]   ;;  %v3913_v56 = vld [vmem:[%s5692_s1 + $0x2e4] ss:$8 sps:$4 sm:$0xff]   ;;  %v3917_v58 = vld [vmem:[%s5692_s1 + $0x2e0] ss:$8 sps:$4 sm:$0xff]  }
  0x3e   : > { %v3915_v57 = vld [vmem:[%s5692_s1 + $0x3e4] ss:$8 sps:$4 sm:$0xff]   ;;  %v3918_v59 = vld [vmem:[%s5692_s1 + $0x3e0] ss:$8 sps:$4 sm:$0xff]   ;;  %v3919_v60 = vld [vmem:[%s5692_s1 + $0x2d4] ss:$8 sps:$4 sm:$0xff]  }
  0x3f   : > { %829 = vmatpush1.bf16.msra.mxu0 %v3881_v34  ;;  %v3921_v61 = vld [vmem:[%s5692_s1 + $0x3d4] ss:$8 sps:$4 sm:$0xff]   ;;  %v3923_v62 = vld [vmem:[%s5692_s1 + $0x2d0] ss:$8 sps:$4 sm:$0xff]   ;;  %v3925_v0 = vld [vmem:[%s5692_s1 + $0x2c4] ss:$8 sps:$4 sm:$0xff]  }
  0x40   : > { %882 = vmatpush1.bf16.msra.mxu1 %v3882_v35  ;;  %830 = vmatprep.subr.bf16.mxu0 %v3883_v36  ;;  %v3924_v63 = vld [vmem:[%s5692_s1 + $0x3d0] ss:$8 sps:$4 sm:$0xff]   ;;  %v3927_v1 = vld [vmem:[%s5692_s1 + $0x3c4] ss:$8 sps:$4 sm:$0xff]   ;;  %v3929_v2 = vld [vmem:[%s5692_s1 + $0x2c0] ss:$8 sps:$4 sm:$0xff]  }
  0x41   : > { %883 = vmatprep.subr.bf16.mxu1 %v3885_v37  ;;  %v3930_v3 = vld [vmem:[%s5692_s1 + $0x3c0] ss:$8 sps:$4 sm:$0xff]   ;;  %v3931_v5 = vld [vmem:[%s5692_s1 + $0x2b4] ss:$8 sps:$4 sm:$0xff]   ;;  %v3935_v21 = vld [vmem:[%s5692_s1 + $0x2b0] ss:$8 sps:$4 sm:$0xff]  }
  0x42   : > { %v4623_v4 = vld [vmem:[%s4475_s7 + $0x10] sm:$0xff]  ;;  %v294_v7 = vld [vmem:[%s4475_s7 + $0x20] sm:$0xff]  ;;  %v4638_v12 = vld [vmem:[%s4475_s7 + $0x18] sm:$0xff]  ;;  %vm1461_vm1 = vcmask 1045504   ;;  %vm2013_vm2 = vcmask 1044480   ;;  %p3824_p8 = scmp.ne.s32.totalorder %s4422_s13, 2 }
  0x43   : > { %831 = vmatpush1.bf16.msra.mxu0 %v3887_v38  ;;  %v3933_v6 = vld [vmem:[%s5692_s1 + $0x3b4] ss:$8 sps:$4 sm:$0xff]   ;;  %v3936_v22 = vld [vmem:[%s5692_s1 + $0x3b0] ss:$8 sps:$4 sm:$0xff]   ;;  %v3937_v25 = vld [vmem:[%s5692_s1 + $0x2a4] ss:$8 sps:$4 sm:$0xff]  }
  0x44   : > { %884 = vmatpush1.bf16.msra.mxu1 %v3888_v39  ;;  %832 = vmatprep.subr.bf16.mxu0 %v3889_v40  ;;  %v296_v8 = vld [vmem:[%s4475_s7 + $0x30] sm:$0xff]  ;;  %v362_v9 = vld [vmem:[%s4475_s7] sm:$0xee]  ;;  %v295_v13 = vld [vmem:[%s4475_s7 + $0x28] sm:$0xff] }
  0x45   : > { %885 = vmatprep.subr.bf16.mxu1 %v3891_v41  ;;  %v3273_v10 = vcombine.high %v362_v9, %v4623_v4  ;;  %v4635_v11 = vcombine.high %v294_v7, %v296_v8  ;;  %v297_v14 = vld [vmem:[%s4475_s7 + $0x38] sm:$0xff]  ;;  %v363_v15 = vld [vmem:[%s4475_s7 + $0x8] sm:$0xee]  ;;  %v3272_v32 = vcombine.low %v362_v9, %v4623_v4  ;;  %v4685_v35 = vcombine.low %v294_v7, %v296_v8  ;;  %v364_v7 = vld [vmem:[%s4475_s7 + $0x40] sm:$0x11] }
  0x46   : > { %v4643_v16 = vcombine.high %v295_v13, %v297_v14  ;;  %v3275_v19 = vcombine.high %v363_v15, %v4638_v12  ;;  %v3939_v26 = vld [vmem:[%s5692_s1 + $0x3a4] ss:$8 sps:$4 sm:$0xff]   ;;  %v3941_v28 = vld [vmem:[%s5692_s1 + $0x2a0] ss:$8 sps:$4 sm:$0xff]   ;;  %v3943_v30 = vld [vmem:[%s5692_s1 + $0x294] ss:$8 sps:$4 sm:$0xff]   ;;  %v3274_v36 = vcombine.low %v363_v15, %v4638_v12  ;;  %v4688_v37 = vcombine.low %v295_v13, %v297_v14 }
  0x47   : > { %833 = vmatpush1.bf16.msra.mxu0 %v3893_v42  ;;  %v477_v17 = vrot.slane %v3273_v10, 1  ;;  %v478_v18 = vrot.slane %v4635_v11, 1  ;;  %v3942_v29 = vld [vmem:[%s5692_s1 + $0x3a0] ss:$8 sps:$4 sm:$0xff]   ;;  %v3945_v31 = vld [vmem:[%s5692_s1 + $0x394] ss:$8 sps:$4 sm:$0xff]   ;;  %v3281_v8 = vcombine.high %v364_v7, %v364_v7  ;;  %v3280_v10 = vcombine.low %v364_v7, %v364_v7 }
  0x48   : > { %886 = vmatpush1.bf16.msra.mxu1 %v3894_v43  ;;  %834 = vmatprep.subr.bf16.mxu0 %v3895_v44  ;;  %v484_v20 = vrot.slane %v4643_v16, 1  ;;  %v483_v24 = vrot.slane %v3275_v19, 1  ;;  %v3947_v33 = vld [vmem:[%s5692_s1 + $0x290] ss:$8 sps:$4 sm:$0xff]   ;;  %v3949_v38 = vld [vmem:[%s5692_s1 + $0x284] ss:$8 sps:$4 sm:$0xff]  }
  0x49   : > { %887 = vmatprep.subr.bf16.mxu1 %v3897_v45  ;;  %v479_v23 = vsel %vm473_vm0, %v477_v17, %v478_v18  ;;  %v3948_v34 = vld [vmem:[%s5692_s1 + $0x390] ss:$8 sps:$4 sm:$0xff]   ;;  %v3951_v39 = vld [vmem:[%s5692_s1 + $0x384] ss:$8 sps:$4 sm:$0xff]   ;;  %v3953_v40 = vld [vmem:[%s5692_s1 + $0x280] ss:$8 sps:$4 sm:$0xff]  }
  0x4a   : > { %854 = vmatprep.mubr.bf16.mxu0 %v479_v23  ;;  %v485_v27 = vsel %vm473_vm0, %v483_v24, %v484_v20  ;;  %v3954_v41 = vld [vmem:[%s5692_s1 + $0x380] ss:$8 sps:$4 sm:$0xff]   ;;  %v474_v42 = vrot.slane %v3272_v32, 1  ;;  %v475_v43 = vrot.slane %v4685_v35, 1  ;;  %v480_v44 = vrot.slane %v3274_v36, 1 }
  0x4b   : > { %835 = vmatpush1.bf16.msra.mxu0 %v3899_v46  ;;  %907 = vmatprep.mubr.bf16.mxu1 %v485_v27  ;;  %v481_v45 = vrot.slane %v4688_v37, 1  ;;  %v3965_v46 = vld [vmem:[%s5692_s1 + $0x74] ss:$8 sps:$4 sm:$0xff]   ;;  %v3993_v15 = vld [vmem:[%s5692_s1 + $0x20] ss:$8 sps:$4 sm:$0xff]   ;;  %v488_v17 = vrot.slane %v3281_v8, 1 }
  0x4c   : > { %888 = vmatpush1.bf16.msra.mxu1 %v3900_v47  ;;  %836 = vmatprep.subr.bf16.mxu0 %v3901_v48  ;;  %v3968_v47 = vld [vmem:[%s5692_s1 + $0x174] ss:$8 sps:$4 sm:$0xff]   ;;  %v476_v48 = vsel %vm473_vm0, %v474_v42, %v475_v43  ;;  %v486_v19 = vrot.slane %v3280_v10, 1  ;;  %v4011_v42 = vld [vmem:[%s5692_s1 + $0xf0] ss:$8 sps:$4 sm:$0xff]  }
  0x4d   : > { %889 = vmatprep.subr.bf16.mxu1 %v3903_v49  ;;  %v482_v49 = vsel %vm473_vm0, %v480_v44, %v481_v45  ;;  %v365_v9 = vld [vmem:[%s4475_s7 + $0x48] sm:$0x11]  ;;  %v4815_v32 = vld [vmem:[%s4475_s7] sm:$0xff] }
  0x4e   : > { %v3283_v13 = vcombine.high %v365_v9, %v365_v9  ;;  %v3282_v14 = vcombine.low %v365_v9, %v365_v9  ;;  %v4001_v24 = vld [vmem:[%s5692_s1 + $0x14] ss:$8 sps:$4 sm:$0xff]   ;;  %v487_v27 = vsel %vm473_vm0, %v475_v43, %v486_v19  ;;  %v4014_v43 = vld [vmem:[%s5692_s1 + $0x1f0] ss:$8 sps:$4 sm:$0xff]   ;;  %v4019_v44 = vld [vmem:[%s5692_s1 + $0xe4] ss:$8 sps:$4 sm:$0xff]  }
  0x4f   : > { %837 = vmatpush1.bf16.msra.mxu0 %v3905_v50  ;;  %v3963_v50 = vld [vmem:[%s5692_s1 + $0x70] ss:$8 sps:$4 sm:$0xff]   ;;  %v4057_v7 = vld [vmem:[%s5692_s1 + $0x80] ss:$8 sps:$4 sm:$0xff]   ;;  %v4069_v9 = vld [vmem:[%s5692_s1 + $0x474] ss:$8 sps:$4 sm:$0xff]  }
  0x50   : > { %890 = vmatpush1.bf16.msra.mxu1 %v3906_v51  ;;  %838 = vmatprep.subr.bf16.mxu0 %v3907_v52  ;;  %v3966_v51 = vld [vmem:[%s5692_s1 + $0x170] ss:$8 sps:$4 sm:$0xff]   ;;  %v3971_v52 = vld [vmem:[%s5692_s1 + $0x64] ss:$8 sps:$4 sm:$0xff]   ;;  %v490_v23 = vrot.slane %v3282_v14, 1 }
  0x51   : > { %891 = vmatprep.subr.bf16.mxu1 %v3909_v53  ;;  %v3974_v53 = vld [vmem:[%s5692_s1 + $0x164] ss:$8 sps:$4 sm:$0xff]   ;;  %v4060_v8 = vld [vmem:[%s5692_s1 + $0x180] ss:$8 sps:$4 sm:$0xff]   ;;  %v4072_v10 = vld [vmem:[%s5692_s1 + $0x574] ss:$8 sps:$4 sm:$0xff]  }
  0x52   : > { %v4075_v19 = vld [vmem:[%s5692_s1 + $0x464] ss:$8 sps:$4 sm:$0xff]  }
  0x53   : > { %839 = vmatpush2.bf16.msra.mxu0 %v3911_v54  ;;  %v3969_v54 = vld [vmem:[%s5692_s1 + $0x60] ss:$8 sps:$4 sm:$0xff]  }
  0x54   : > { %892 = vmatpush2.bf16.msra.mxu1 %v3912_v55  ;;  %840 = vmatprep.subr.bf16.mxu0 %v3913_v56  ;;  %v3972_v55 = vld [vmem:[%s5692_s1 + $0x160] ss:$8 sps:$4 sm:$0xff]   ;;  %v3977_v56 = vld [vmem:[%s5692_s1 + $0x54] ss:$8 sps:$4 sm:$0xff]  }
  0x55   : > { %893 = vmatprep.subr.bf16.mxu1 %v3915_v57  ;;  %v3980_v57 = vld [vmem:[%s5692_s1 + $0x154] ss:$8 sps:$4 sm:$0xff]  }
  0x57   : > { %841 = vmatpush2.bf16.msra.mxu0 %v3917_v58  ;;  %v3975_v58 = vld [vmem:[%s5692_s1 + $0x50] ss:$8 sps:$4 sm:$0xff]  }
  0x58   : > { %894 = vmatpush2.bf16.msra.mxu1 %v3918_v59  ;;  %842 = vmatprep.subr.bf16.mxu0 %v3919_v60  ;;  %v3978_v59 = vld [vmem:[%s5692_s1 + $0x150] ss:$8 sps:$4 sm:$0xff]   ;;  %v3983_v60 = vld [vmem:[%s5692_s1 + $0x44] ss:$8 sps:$4 sm:$0xff]  }
  0x59   : > { %895 = vmatprep.subr.bf16.mxu1 %v3921_v61  ;;  %v3986_v61 = vld [vmem:[%s5692_s1 + $0x144] ss:$8 sps:$4 sm:$0xff]  }
  0x5b   : > { %843 = vmatpush2.bf16.msra.mxu0 %v3923_v62  ;;  %v3981_v62 = vld [vmem:[%s5692_s1 + $0x40] ss:$8 sps:$4 sm:$0xff]  }
  0x5c   : > { %896 = vmatpush2.bf16.msra.mxu1 %v3924_v63  ;;  %844 = vmatprep.subr.bf16.mxu0 %v3925_v0  ;;  %v3984_v63 = vld [vmem:[%s5692_s1 + $0x140] ss:$8 sps:$4 sm:$0xff]   ;;  %v3989_v0 = vld [vmem:[%s5692_s1 + $0x34] ss:$8 sps:$4 sm:$0xff]  }
  0x5d   : > { %897 = vmatprep.subr.bf16.mxu1 %v3927_v1  ;;  %v3992_v1 = vld [vmem:[%s5692_s1 + $0x134] ss:$8 sps:$4 sm:$0xff]  }
  0x5f   : > { %845 = vmatpush2.bf16.msra.mxu0 %v3929_v2  ;;  %v3987_v2 = vld [vmem:[%s5692_s1 + $0x30] ss:$8 sps:$4 sm:$0xff]  }
  0x60   : > { %898 = vmatpush2.bf16.msra.mxu1 %v3930_v3  ;;  %846 = vmatprep.subr.bf16.mxu0 %v3931_v5  ;;  %v3990_v3 = vld [vmem:[%s5692_s1 + $0x130] ss:$8 sps:$4 sm:$0xff]   ;;  %v3995_v5 = vld [vmem:[%s5692_s1 + $0x24] ss:$8 sps:$4 sm:$0xff]  }
  0x61   : > { %899 = vmatprep.subr.bf16.mxu1 %v3933_v6  ;;  %v3998_v6 = vld [vmem:[%s5692_s1 + $0x124] ss:$8 sps:$4 sm:$0xff]  }
  0x63   : > { %847 = vmatpush2.bf16.msra.mxu0 %v3935_v21  ;;  %v3996_v21 = vld [vmem:[%s5692_s1 + $0x120] ss:$8 sps:$4 sm:$0xff]  }
  0x64   : > { %900 = vmatpush2.bf16.msra.mxu1 %v3936_v22  ;;  %848 = vmatprep.subr.bf16.mxu0 %v3937_v25  ;;  %v492_v22 = vrot.slane %v3283_v13, 1  ;;  %v4004_v25 = vld [vmem:[%s5692_s1 + $0x114] ss:$8 sps:$4 sm:$0xff]   ;;  %v3348_v13 = vcombine.low %v4815_v32, %v4623_v4 }
  0x65   : > { %901 = vmatprep.subr.bf16.mxu1 %v3939_v26  ;;  %v489_v26 = vsel %vm473_vm0, %v478_v18, %v488_v17  ;;  %v491_v18 = vsel %vm473_vm0, %v481_v45, %v490_v23  ;;  %v4022_v45 = vld [vmem:[%s5692_s1 + $0x1e4] ss:$8 sps:$4 sm:$0xff]   ;;  %v4070_v17 = vld [vmem:[%s5692_s1 + $0x570] ss:$8 sps:$4 sm:$0xff]   ;;  %v4076_v23 = vld [vmem:[%s5692_s1 + $0x560] ss:$8 sps:$4 sm:$0xff]  }
  0x67   : > { %849 = vmatpush2.bf16.msra.mxu0 %v3941_v28  ;;  %v493_v28 = vsel %vm473_vm0, %v484_v20, %v492_v22  ;;  %v4007_v20 = vld [vmem:[%s5692_s1 + $0x4] ss:$8 sps:$4 sm:$0xff]   ;;  %v4073_v22 = vld [vmem:[%s5692_s1 + $0x460] ss:$8 sps:$4 sm:$0xff]  }
  0x68   : > { %902 = vmatpush2.bf16.msra.mxu1 %v3942_v29  ;;  %850 = vmatprep.subr.bf16.mxu0 %v3943_v30  ;;  %v3999_v29 = vld [vmem:[%s5692_s1 + $0x10] ss:$8 sps:$4 sm:$0xff]  }
  0x69   : > { %903 = vmatprep.subr.bf16.mxu1 %v3945_v31  ;;  %v4002_v30 = vld [vmem:[%s5692_s1 + $0x110] ss:$8 sps:$4 sm:$0xff]   ;;  %v4010_v31 = vld [vmem:[%s5692_s1 + $0x104] ss:$8 sps:$4 sm:$0xff]  }
  0x6b   : > { %851 = vmatpush2.bf16.msra.mxu0 %v3947_v33  ;;  %v4818_v33 = vld [vmem:[%s4475_s7 + $0x8] sm:$0xff] }
  0x6c   : > { %904 = vmatpush2.bf16.msra.mxu1 %v3948_v34  ;;  %852 = vmatprep.subr.bf16.mxu0 %v3949_v38  ;;  %v3349_v34 = vcombine.high %v4815_v32, %v4623_v4  ;;  %v3351_v36 = vcombine.high %v4818_v33, %v4638_v12  ;;  %v4005_v38 = vld [vmem:[%s5692_s1] ss:$8 sps:$4 sm:$0xff]   ;;  %v3350_v14 = vcombine.low %v4818_v33, %v4638_v12  ;;  %v4090_v33 = vld [vmem:[%s5692_s1 + $0x544] ss:$8 sps:$4 sm:$0xff]  }
  0x6d   : > { %905 = vmatprep.subr.bf16.mxu1 %v3951_v39  ;;  %v4008_v39 = vld [vmem:[%s5692_s1 + $0x100] ss:$8 sps:$4 sm:$0xff]  }
  0x6f   : > { %853 = vmatpush2.bf16.msra.mxu0 %v3953_v40  ;;  %v4013_v40 = vld [vmem:[%s5692_s1 + $0xf4] ss:$8 sps:$4 sm:$0xff]  }
  0x70   : > { %906 = vmatpush2.bf16.msra.mxu1 %v3954_v41  ;;  %1266 = vmatprep.subr.bf16.mxu0 %v3965_v46  ;;  %v4016_v41 = vld [vmem:[%s5692_s1 + $0x1f4] ss:$8 sps:$4 sm:$0xff]   ;;  %v4017_v46 = vld [vmem:[%s5692_s1 + $0xe0] ss:$8 sps:$4 sm:$0xff]  }
  0x71   : > { %1319 = vmatprep.subr.bf16.mxu1 %v3968_v47  ;;  %v4020_v47 = vld [vmem:[%s5692_s1 + $0x1e0] ss:$8 sps:$4 sm:$0xff]  }
  0x72   : > { %855 = vmatmul.mubr.bf16.vlgmr.msra.gmra.mxu0 %v476_v48  ;;  %v4025_v48 = vld [vmem:[%s5692_s1 + $0xd4] ss:$8 sps:$4 sm:$0xff]  }
  0x73   : > { %908 = vmatmul.mubr.bf16.vlgmr.msra.gmra.mxu1 %v482_v49  ;;  %1267 = vmatpush1.bf16.msra.mxu0 %v3963_v50  ;;  %v4028_v49 = vld [vmem:[%s5692_s1 + $0x1d4] ss:$8 sps:$4 sm:$0xff]   ;;  %v4023_v50 = vld [vmem:[%s5692_s1 + $0xd0] ss:$8 sps:$4 sm:$0xff]  }
  0x74   : > { %1320 = vmatpush1.bf16.msra.mxu1 %v3966_v51  ;;  %1268 = vmatprep.subr.bf16.mxu0 %v3971_v52  ;;  %v4026_v51 = vld [vmem:[%s5692_s1 + $0x1d0] ss:$8 sps:$4 sm:$0xff]   ;;  %v4031_v52 = vld [vmem:[%s5692_s1 + $0xc4] ss:$8 sps:$4 sm:$0xff]  }
  0x75   : > { %1321 = vmatprep.subr.bf16.mxu1 %v3974_v53  ;;  %864 = vmatprep.mubr.bf16.mxu0 %v489_v26  ;;  %v4034_v53 = vld [vmem:[%s5692_s1 + $0x1c4] ss:$8 sps:$4 sm:$0xff]  }
  0x76   : > { %917 = vmatprep.mubr.bf16.mxu1 %v493_v28  ;;  %v4961_v26 = vld [vmem:[%s4475_s7] sm:$0xcc]  ;;  %v4966_v28 = vld [vmem:[%s4475_s7 + $0x8] sm:$0xcc] }
  0x77   : > { %1269 = vmatpush1.bf16.msra.mxu0 %v3969_v54  ;;  %v4029_v54 = vld [vmem:[%s5692_s1 + $0xc0] ss:$8 sps:$4 sm:$0xff]  }
  0x78   : > { %1322 = vmatpush1.bf16.msra.mxu1 %v3972_v55  ;;  %1270 = vmatprep.subr.bf16.mxu0 %v3977_v56  ;;  %v4032_v55 = vld [vmem:[%s5692_s1 + $0x1c0] ss:$8 sps:$4 sm:$0xff]   ;;  %v4037_v56 = vld [vmem:[%s5692_s1 + $0xb4] ss:$8 sps:$4 sm:$0xff]  }
  0x79   : > { %1323 = vmatprep.subr.bf16.mxu1 %v3980_v57  ;;  %v4040_v57 = vld [vmem:[%s5692_s1 + $0x1b4] ss:$8 sps:$4 sm:$0xff]  }
  0x7a   : > { %865 = vmatmul.mubr.bf16.gmra.mxu0 %v487_v27  ;;  %v3481_v27 = vcombine.high %v4961_v26, %v4623_v4  ;;  %v4082_v4 = vld [vmem:[%s5692_s1 + $0x550] ss:$8 sps:$4 sm:$0xff]  }
  0x7b   : > { %1271 = vmatpush1.bf16.msra.mxu0 %v3975_v58  ;;  %918 = vmatmul.mubr.bf16.gmra.mxu1 %v491_v18  ;;  %v4035_v58 = vld [vmem:[%s5692_s1 + $0xb0] ss:$8 sps:$4 sm:$0xff]  }
  0x7c   : > { %1324 = vmatpush1.bf16.msra.mxu1 %v3978_v59  ;;  %1272 = vmatprep.subr.bf16.mxu0 %v3983_v60  ;;  %v4038_v59 = vld [vmem:[%s5692_s1 + $0x1b0] ss:$8 sps:$4 sm:$0xff]   ;;  %v4047_v60 = vld [vmem:[%s5692_s1 + $0xa4] ss:$8 sps:$4 sm:$0xff]  }
  0x7d   : > { %1325 = vmatprep.subr.bf16.mxu1 %v3986_v61  ;;  %1298 = vmatprep.mubr.bf16.mxu0 %v3349_v34  ;;  %v4050_v61 = vld [vmem:[%s5692_s1 + $0x1a4] ss:$8 sps:$4 sm:$0xff]   ;;  %v4079_v18 = vld [vmem:[%s5692_s1 + $0x450] ss:$8 sps:$4 sm:$0xff]   ;;  %v4085_v34 = vld [vmem:[%s5692_s1 + $0x440] ss:$8 sps:$4 sm:$0xff]  }
  0x7e   : > { %1351 = vmatprep.mubr.bf16.mxu1 %v3351_v36 }
  0x7f   : > { %1273 = vmatpush1.bf16.msra.mxu0 %v3981_v62  ;;  %v4045_v62 = vld [vmem:[%s5692_s1 + $0xa0] ss:$8 sps:$4 sm:$0xff]  }
  0x80   : > { %1326 = vmatpush1.bf16.msra.mxu1 %v3984_v63  ;;  %1274 = vmatprep.subr.bf16.mxu0 %v3989_v0  ;;  %v4048_v63 = vld [vmem:[%s5692_s1 + $0x1a0] ss:$8 sps:$4 sm:$0xff]   ;;  %v4053_v0 = vld [vmem:[%s5692_s1 + $0x94] ss:$8 sps:$4 sm:$0xff]  }
  0x81   : > { %1327 = vmatprep.subr.bf16.mxu1 %v3992_v1  ;;  %v4056_v1 = vld [vmem:[%s5692_s1 + $0x194] ss:$8 sps:$4 sm:$0xff]  }
  0x83   : > { %1275 = vmatpush1.bf16.msra.mxu0 %v3987_v2  ;;  %v4051_v2 = vld [vmem:[%s5692_s1 + $0x90] ss:$8 sps:$4 sm:$0xff]  }
  0x84   : > { %1328 = vmatpush1.bf16.msra.mxu1 %v3990_v3  ;;  %1276 = vmatprep.subr.bf16.mxu0 %v3995_v5  ;;  %v4054_v3 = vld [vmem:[%s5692_s1 + $0x190] ss:$8 sps:$4 sm:$0xff]   ;;  %v4059_v5 = vld [vmem:[%s5692_s1 + $0x84] ss:$8 sps:$4 sm:$0xff]  }
  0x85   : > { %1329 = vmatprep.subr.bf16.mxu1 %v3998_v6  ;;  %v4062_v6 = vld [vmem:[%s5692_s1 + $0x184] ss:$8 sps:$4 sm:$0xff]  }
  0x87   : > { %1277 = vmatpush1.bf16.msra.mxu0 %v3993_v15  ;;  %v4067_v15 = vld [vmem:[%s5692_s1 + $0x470] ss:$8 sps:$4 sm:$0xff]  }
  0x88   : > { %1330 = vmatpush1.bf16.msra.mxu1 %v3996_v21  ;;  %1278 = vmatprep.subr.bf16.mxu0 %v4001_v24  ;;  %v4078_v21 = vld [vmem:[%s5692_s1 + $0x564] ss:$8 sps:$4 sm:$0xff]   ;;  %v4081_v24 = vld [vmem:[%s5692_s1 + $0x454] ss:$8 sps:$4 sm:$0xff]  }
  0x89   : > { %1331 = vmatprep.subr.bf16.mxu1 %v4004_v25  ;;  %v4084_v25 = vld [vmem:[%s5692_s1 + $0x554] ss:$8 sps:$4 sm:$0xff]  }
  0x8b   : > { %1279 = vmatpush1.bf16.msra.mxu0 %v3999_v29  ;;  %v1466_v29 = vrot.slane %v4635_v11, 2 }
  0x8c   : > { %1332 = vmatpush1.bf16.msra.mxu1 %v4002_v30  ;;  %1280 = vmatprep.subr.bf16.mxu0 %v4007_v20  ;;  %v3483_v30 = vcombine.high %v4966_v28, %v4638_v12  ;;  %v1465_v20 = vrot.slane %v3481_v27, 2  ;;  %v4087_v12 = vld [vmem:[%s5692_s1 + $0x444] ss:$8 sps:$4 sm:$0xff]  }
  0x8d   : > { %1333 = vmatprep.subr.bf16.mxu1 %v4010_v31  ;;  %v1472_v31 = vrot.slane %v4643_v16, 2  ;;  %v5133_v27 = vld [vmem:[%s4475_s7 + $0x10] sm:$0xff] }
  0x8e   : > { %v1471_v32 = vrot.slane %v3483_v30, 2  ;;  %v1467_v36 = vsel %vm1461_vm1, %v1465_v20, %v1466_v29  ;;  %v3480_v30 = vcombine.low %v4961_v26, %v5133_v27  ;;  %v4159_v20 = vld [vmem:[%s5692_s1 + $0x484] ss:$8 sps:$4 sm:$0xff]  }
  0x8f   : > { %1281 = vmatpush1.bf16.msra.mxu0 %v4005_v38 }
  0x90   : > { %1334 = vmatpush1.bf16.msra.mxu1 %v4008_v39  ;;  %1282 = vmatprep.subr.bf16.mxu0 %v4013_v40  ;;  %v1473_v38 = vsel %vm1461_vm1, %v1471_v32, %v1472_v31  ;;  %v4088_v39 = vld [vmem:[%s5692_s1 + $0x540] ss:$8 sps:$4 sm:$0xff]   ;;  %v4093_v40 = vld [vmem:[%s5692_s1 + $0x434] ss:$8 sps:$4 sm:$0xff]  }
  0x91   : > { %1335 = vmatprep.subr.bf16.mxu1 %v4016_v41  ;;  %v4096_v41 = vld [vmem:[%s5692_s1 + $0x534] ss:$8 sps:$4 sm:$0xff]  }
  0x93   : > { %1283 = vmatpush2.bf16.msra.mxu0 %v4011_v42  ;;  %v4091_v42 = vld [vmem:[%s5692_s1 + $0x430] ss:$8 sps:$4 sm:$0xff]  }
  0x94   : > { %1336 = vmatpush2.bf16.msra.mxu1 %v4014_v43  ;;  %1284 = vmatprep.subr.bf16.mxu0 %v4019_v44  ;;  %v4094_v43 = vld [vmem:[%s5692_s1 + $0x530] ss:$8 sps:$4 sm:$0xff]   ;;  %v4099_v44 = vld [vmem:[%s5692_s1 + $0x424] ss:$8 sps:$4 sm:$0xff]  }
  0x95   : > { %1337 = vmatprep.subr.bf16.mxu1 %v4022_v45  ;;  %v4102_v45 = vld [vmem:[%s5692_s1 + $0x524] ss:$8 sps:$4 sm:$0xff]  }
  0x97   : > { %1285 = vmatpush2.bf16.msra.mxu0 %v4017_v46  ;;  %v4097_v46 = vld [vmem:[%s5692_s1 + $0x420] ss:$8 sps:$4 sm:$0xff]  }
  0x98   : > { %1338 = vmatpush2.bf16.msra.mxu1 %v4020_v47  ;;  %1286 = vmatprep.subr.bf16.mxu0 %v4025_v48  ;;  %v4100_v47 = vld [vmem:[%s5692_s1 + $0x520] ss:$8 sps:$4 sm:$0xff]   ;;  %v4105_v48 = vld [vmem:[%s5692_s1 + $0x414] ss:$8 sps:$4 sm:$0xff]  }
  0x99   : > { %1339 = vmatprep.subr.bf16.mxu1 %v4028_v49  ;;  %v4108_v49 = vld [vmem:[%s5692_s1 + $0x514] ss:$8 sps:$4 sm:$0xff]  }
  0x9b   : > { %1287 = vmatpush2.bf16.msra.mxu0 %v4023_v50  ;;  %v4103_v50 = vld [vmem:[%s5692_s1 + $0x410] ss:$8 sps:$4 sm:$0xff]  }
  0x9c   : > { %1340 = vmatpush2.bf16.msra.mxu1 %v4026_v51  ;;  %1288 = vmatprep.subr.bf16.mxu0 %v4031_v52  ;;  %v4106_v51 = vld [vmem:[%s5692_s1 + $0x510] ss:$8 sps:$4 sm:$0xff]   ;;  %v4111_v52 = vld [vmem:[%s5692_s1 + $0x404] ss:$8 sps:$4 sm:$0xff]  }
  0x9d   : > { %1341 = vmatprep.subr.bf16.mxu1 %v4034_v53  ;;  %v4114_v53 = vld [vmem:[%s5692_s1 + $0x504] ss:$8 sps:$4 sm:$0xff]  }
  0x9f   : > { %1289 = vmatpush2.bf16.msra.mxu0 %v4029_v54  ;;  %v4109_v54 = vld [vmem:[%s5692_s1 + $0x400] ss:$8 sps:$4 sm:$0xff]  }
  0xa0   : > { %1342 = vmatpush2.bf16.msra.mxu1 %v4032_v55  ;;  %1290 = vmatprep.subr.bf16.mxu0 %v4037_v56  ;;  %v4112_v55 = vld [vmem:[%s5692_s1 + $0x500] ss:$8 sps:$4 sm:$0xff]   ;;  %v4117_v56 = vld [vmem:[%s5692_s1 + $0x4f4] ss:$8 sps:$4 sm:$0xff]  }
  0xa1   : > { %1343 = vmatprep.subr.bf16.mxu1 %v4040_v57  ;;  %v4120_v57 = vld [vmem:[%s5692_s1 + $0x5f4] ss:$8 sps:$4 sm:$0xff]  }
  0xa3   : > { %1291 = vmatpush2.bf16.msra.mxu0 %v4035_v58  ;;  %v4115_v58 = vld [vmem:[%s5692_s1 + $0x4f0] ss:$8 sps:$4 sm:$0xff]  }
  0xa4   : > { %1344 = vmatpush2.bf16.msra.mxu1 %v4038_v59  ;;  %1292 = vmatprep.subr.bf16.mxu0 %v4047_v60  ;;  %v4118_v59 = vld [vmem:[%s5692_s1 + $0x5f0] ss:$8 sps:$4 sm:$0xff]   ;;  %v4123_v60 = vld [vmem:[%s5692_s1 + $0x4e4] ss:$8 sps:$4 sm:$0xff]  }
  0xa5   : > { %1345 = vmatprep.subr.bf16.mxu1 %v4050_v61  ;;  %v4126_v61 = vld [vmem:[%s5692_s1 + $0x5e4] ss:$8 sps:$4 sm:$0xff]  }
  0xa7   : > { %1293 = vmatpush2.bf16.msra.mxu0 %v4045_v62  ;;  %v4121_v62 = vld [vmem:[%s5692_s1 + $0x4e0] ss:$8 sps:$4 sm:$0xff]  }
  0xa8   : > { %1346 = vmatpush2.bf16.msra.mxu1 %v4048_v63  ;;  %1294 = vmatprep.subr.bf16.mxu0 %v4053_v0  ;;  %v4124_v63 = vld [vmem:[%s5692_s1 + $0x5e0] ss:$8 sps:$4 sm:$0xff]   ;;  %v4129_v0 = vld [vmem:[%s5692_s1 + $0x4d4] ss:$8 sps:$4 sm:$0xff]  }
  0xa9   : > { %1347 = vmatprep.subr.bf16.mxu1 %v4056_v1  ;;  %v4132_v1 = vld [vmem:[%s5692_s1 + $0x5d4] ss:$8 sps:$4 sm:$0xff]  }
  0xab   : > { %1295 = vmatpush2.bf16.msra.mxu0 %v4051_v2  ;;  %v4127_v2 = vld [vmem:[%s5692_s1 + $0x4d0] ss:$8 sps:$4 sm:$0xff]  }
  0xac   : > { %1348 = vmatpush2.bf16.msra.mxu1 %v4054_v3  ;;  %1296 = vmatprep.subr.bf16.mxu0 %v4059_v5  ;;  %v4130_v3 = vld [vmem:[%s5692_s1 + $0x5d0] ss:$8 sps:$4 sm:$0xff]   ;;  %v4135_v5 = vld [vmem:[%s5692_s1 + $0x4c4] ss:$8 sps:$4 sm:$0xff]  }
  0xad   : > { %1349 = vmatprep.subr.bf16.mxu1 %v4062_v6  ;;  %v4138_v6 = vld [vmem:[%s5692_s1 + $0x5c4] ss:$8 sps:$4 sm:$0xff]  }
  0xaf   : > { %1297 = vmatpush2.bf16.msra.mxu0 %v4057_v7  ;;  %v4133_v7 = vld [vmem:[%s5692_s1 + $0x4c0] ss:$8 sps:$4 sm:$0xff]  }
  0xb0   : > { %1350 = vmatpush2.bf16.msra.mxu1 %v4060_v8  ;;  %1810 = vmatprep.subr.bf16.mxu0 %v4069_v9  ;;  %v4136_v8 = vld [vmem:[%s5692_s1 + $0x5c0] ss:$8 sps:$4 sm:$0xff]   ;;  %v4141_v9 = vld [vmem:[%s5692_s1 + $0x4b4] ss:$8 sps:$4 sm:$0xff]  }
  0xb1   : > { %1863 = vmatprep.subr.bf16.mxu1 %v4072_v10  ;;  %v4144_v10 = vld [vmem:[%s5692_s1 + $0x5b4] ss:$8 sps:$4 sm:$0xff]  }
  0xb2   : > { %1299 = vmatmul.mubr.bf16.vlgmr.msra.gmra.mxu0 %v3348_v13  ;;  %v4139_v13 = vld [vmem:[%s5692_s1 + $0x4b0] ss:$8 sps:$4 sm:$0xff]  }
  0xb3   : > { %1352 = vmatmul.mubr.bf16.vlgmr.msra.gmra.mxu1 %v3350_v14  ;;  %1811 = vmatpush1.bf16.msra.mxu0 %v4067_v15  ;;  %v4142_v14 = vld [vmem:[%s5692_s1 + $0x5b0] ss:$8 sps:$4 sm:$0xff]   ;;  %v4147_v15 = vld [vmem:[%s5692_s1 + $0x4a4] ss:$8 sps:$4 sm:$0xff]  }
  0xb4   : > { %1864 = vmatpush1.bf16.msra.mxu1 %v4070_v17  ;;  %1812 = vmatprep.subr.bf16.mxu0 %v4075_v19  ;;  %v4150_v17 = vld [vmem:[%s5692_s1 + $0x5a4] ss:$8 sps:$4 sm:$0xff]   ;;  %v4145_v19 = vld [vmem:[%s5692_s1 + $0x4a0] ss:$8 sps:$4 sm:$0xff]  }
  0xb5   : > { %1865 = vmatprep.subr.bf16.mxu1 %v4078_v21  ;;  %1308 = vmatprep.mubr.bf16.mxu0 %v4635_v11  ;;  %v4148_v21 = vld [vmem:[%s5692_s1 + $0x5a0] ss:$8 sps:$4 sm:$0xff]  }
  0xb6   : > { %1361 = vmatprep.mubr.bf16.mxu1 %v4643_v16 }
  0xb7   : > { %1813 = vmatpush1.bf16.msra.mxu0 %v4073_v22  ;;  %v4153_v22 = vld [vmem:[%s5692_s1 + $0x494] ss:$8 sps:$4 sm:$0xff]  }
  0xb8   : > { %1866 = vmatpush1.bf16.msra.mxu1 %v4076_v23  ;;  %1814 = vmatprep.subr.bf16.mxu0 %v4081_v24  ;;  %v4156_v23 = vld [vmem:[%s5692_s1 + $0x594] ss:$8 sps:$4 sm:$0xff]   ;;  %v4151_v24 = vld [vmem:[%s5692_s1 + $0x490] ss:$8 sps:$4 sm:$0xff]  }
  0xb9   : > { %1867 = vmatprep.subr.bf16.mxu1 %v4084_v25  ;;  %v4154_v25 = vld [vmem:[%s5692_s1 + $0x590] ss:$8 sps:$4 sm:$0xff]  }
  0xba   : > { %1309 = vmatmul.mubr.bf16.gmra.mxu0 %v4685_v35 }
  0xbb   : > { %1362 = vmatmul.mubr.bf16.gmra.mxu1 %v4688_v37  ;;  %1815 = vmatpush1.bf16.msra.mxu0 %v4079_v18  ;;  %v1374_v18 = vld [vmem:[%s4475_s7 + $0x40] sm:$0x33] }
  0xbc   : > { %1868 = vmatpush1.bf16.msra.mxu1 %v4082_v4  ;;  %1816 = vmatprep.subr.bf16.mxu0 %v4087_v12  ;;  %v5142_v4 = vld [vmem:[%s4475_s7 + $0x18] sm:$0xff]  ;;  %v1375_v12 = vld [vmem:[%s4475_s7 + $0x48] sm:$0x33]  ;;  %v3485_v26 = vcombine.high %v1374_v18, %v1374_v18 }
  0xbd   : > { %1869 = vmatprep.subr.bf16.mxu1 %v4090_v33  ;;  %1842 = vmatprep.mubr.bf16.mxu0 %v1467_v36  ;;  %v3482_v32 = vcombine.low %v4966_v28, %v5142_v4  ;;  %v4162_v33 = vld [vmem:[%s5692_s1 + $0x584] ss:$8 sps:$4 sm:$0xff]   ;;  %v1463_v36 = vrot.slane %v4685_v35, 2  ;;  %v4157_v28 = vld [vmem:[%s5692_s1 + $0x480] ss:$8 sps:$4 sm:$0xff]  }
  0xbe   : > { %1895 = vmatprep.mubr.bf16.mxu1 %v1473_v38  ;;  %v1469_v38 = vrot.slane %v4688_v37, 2 }
  0xbf   : > { %1817 = vmatpush1.bf16.msra.mxu0 %v4085_v34  ;;  %v1462_v34 = vrot.slane %v3480_v30, 2  ;;  %v4201_v30 = vld [vmem:[%s5692_s1 + $0x620] ss:$8 sps:$4 sm:$0xff]  }
  0xc0   : > { %1870 = vmatpush1.bf16.msra.mxu1 %v4088_v39  ;;  %1818 = vmatprep.subr.bf16.mxu0 %v4093_v40  ;;  %v3487_v39 = vcombine.high %v1375_v12, %v1375_v12  ;;  %v4160_v40 = vld [vmem:[%s5692_s1 + $0x580] ss:$8 sps:$4 sm:$0xff]  }
  0xc1   : > { %1871 = vmatprep.subr.bf16.mxu1 %v4096_v41  ;;  %v1468_v41 = vrot.slane %v3482_v32, 2  ;;  %v4212_v32 = vld [vmem:[%s5692_s1 + $0x714] ss:$8 sps:$4 sm:$0xff]  }
  0xc3   : > { %1819 = vmatpush1.bf16.msra.mxu0 %v4091_v42  ;;  %v4169_v42 = vld [vmem:[%s5692_s1 + $0x674] ss:$8 sps:$4 sm:$0xff]  }
  0xc4   : > { %1872 = vmatpush1.bf16.msra.mxu1 %v4094_v43  ;;  %1820 = vmatprep.subr.bf16.mxu0 %v4099_v44  ;;  %v4172_v43 = vld [vmem:[%s5692_s1 + $0x774] ss:$8 sps:$4 sm:$0xff]   ;;  %v4167_v44 = vld [vmem:[%s5692_s1 + $0x670] ss:$8 sps:$4 sm:$0xff]  }
  0xc5   : > { %1873 = vmatprep.subr.bf16.mxu1 %v4102_v45  ;;  %v1476_v45 = vrot.slane %v3485_v26, 2  ;;  %v4215_v26 = vld [vmem:[%s5692_s1 + $0x604] ss:$8 sps:$4 sm:$0xff]  }
  0xc7   : > { %1821 = vmatpush1.bf16.msra.mxu0 %v4097_v46  ;;  %v1464_v46 = vsel %vm1461_vm1, %v1462_v34, %v1463_v36  ;;  %v4218_v34 = vld [vmem:[%s5692_s1 + $0x704] ss:$8 sps:$4 sm:$0xff]  }
  0xc8   : > { %1874 = vmatpush1.bf16.msra.mxu1 %v4100_v47  ;;  %1822 = vmatprep.subr.bf16.mxu0 %v4105_v48  ;;  %v4170_v47 = vld [vmem:[%s5692_s1 + $0x770] ss:$8 sps:$4 sm:$0xff]   ;;  %v1480_v48 = vrot.slane %v3487_v39, 2  ;;  %v4221_v39 = vld [vmem:[%s5692_s1 + $0x6f4] ss:$8 sps:$4 sm:$0xff]  }
  0xc9   : > { %1875 = vmatprep.subr.bf16.mxu1 %v4108_v49  ;;  %v1470_v49 = vsel %vm1461_vm1, %v1468_v41, %v1469_v38  ;;  %v4222_v41 = vld [vmem:[%s5692_s1 + $0x7f0] ss:$8 sps:$4 sm:$0xff]  }
  0xcb   : > { %1823 = vmatpush1.bf16.msra.mxu0 %v4103_v50  ;;  %v3484_v50 = vcombine.low %v1374_v18, %v1374_v18  ;;  %v4204_v18 = vld [vmem:[%s5692_s1 + $0x720] ss:$8 sps:$4 sm:$0xff]  }
  0xcc   : > { %1876 = vmatpush1.bf16.msra.mxu1 %v4106_v51  ;;  %1824 = vmatprep.subr.bf16.mxu0 %v4111_v52  ;;  %v3486_v51 = vcombine.low %v1375_v12, %v1375_v12  ;;  %v5173_v52 = vld [vmem:[%s4475_s7] sm:$0x88] }
  0xcd   : > { %1877 = vmatprep.subr.bf16.mxu1 %v4114_v53  ;;  %v5176_v53 = vld [vmem:[%s4475_s7 + $0x8] sm:$0x88] }
  0xce   : > { %v4207_v12 = vld [vmem:[%s5692_s1 + $0x610] ss:$8 sps:$4 sm:$0xff]  }
  0xcf   : > { %1825 = vmatpush1.bf16.msra.mxu0 %v4109_v54  ;;  %v4175_v54 = vld [vmem:[%s5692_s1 + $0x664] ss:$8 sps:$4 sm:$0xff]  }
  0xd0   : > { %1878 = vmatpush1.bf16.msra.mxu1 %v4112_v55  ;;  %1826 = vmatprep.subr.bf16.mxu0 %v4117_v56  ;;  %v4178_v55 = vld [vmem:[%s5692_s1 + $0x764] ss:$8 sps:$4 sm:$0xff]   ;;  %v1477_v56 = vsel %vm1461_vm1, %v1466_v29, %v1476_v45  ;;  %v4176_v29 = vld [vmem:[%s5692_s1 + $0x760] ss:$8 sps:$4 sm:$0xff]  }
  0xd1   : > { %1879 = vmatprep.subr.bf16.mxu1 %v4120_v57  ;;  %v4173_v57 = vld [vmem:[%s5692_s1 + $0x660] ss:$8 sps:$4 sm:$0xff]  }
  0xd2   : > { %v4228_v45 = vld [vmem:[%s5692_s1 + $0x7e0] ss:$8 sps:$4 sm:$0xff]  }
  0xd3   : > { %1827 = vmatpush2.bf16.msra.mxu0 %v4115_v58  ;;  %v1481_v58 = vsel %vm1461_vm1, %v1472_v31, %v1480_v48  ;;  %v4185_v31 = vld [vmem:[%s5692_s1 + $0x654] ss:$8 sps:$4 sm:$0xff]   ;;  %v4231_v48 = vld [vmem:[%s5692_s1 + $0x6d0] ss:$8 sps:$4 sm:$0xff]  }
  0xd4   : > { %1880 = vmatpush2.bf16.msra.mxu1 %v4118_v59  ;;  %1828 = vmatprep.subr.bf16.mxu0 %v4123_v60  ;;  %v3617_v59 = vcombine.high %v5173_v52, %v5133_v27  ;;  %v3619_v60 = vcombine.high %v5176_v53, %v5142_v4 }
  0xd5   : > { %1881 = vmatprep.subr.bf16.mxu1 %v4126_v61  ;;  %v1474_v61 = vrot.slane %v3484_v50, 2  ;;  %v4239_v50 = vld [vmem:[%s5692_s1 + $0x6c4] ss:$8 sps:$4 sm:$0xff]  }
  0xd7   : > { %1829 = vmatpush2.bf16.msra.mxu0 %v4121_v62  ;;  %v1478_v62 = vrot.slane %v3486_v51, 2  ;;  %v4242_v51 = vld [vmem:[%s5692_s1 + $0x7c4] ss:$8 sps:$4 sm:$0xff]  }
  0xd8   : > { %1882 = vmatpush2.bf16.msra.mxu1 %v4124_v63  ;;  %1830 = vmatprep.subr.bf16.mxu0 %v4129_v0  ;;  %v4188_v63 = vld [vmem:[%s5692_s1 + $0x754] ss:$8 sps:$4 sm:$0xff]   ;;  %v2017_v0 = vrot.slane %v3617_v59, 3  ;;  %v4246_v59 = vld [vmem:[%s5692_s1 + $0x7b0] ss:$8 sps:$4 sm:$0xff]  }
  0xd9   : > { %1883 = vmatprep.subr.bf16.mxu1 %v4132_v1  ;;  %v2018_v1 = vrot.slane %v4635_v11, 3 }
  0xdb   : > { %1831 = vmatpush2.bf16.msra.mxu0 %v4127_v2  ;;  %v2023_v2 = vrot.slane %v3619_v60, 3  ;;  %v4251_v60 = vld [vmem:[%s5692_s1 + $0x6a4] ss:$8 sps:$4 sm:$0xff]  }
  0xdc   : > { %1884 = vmatpush2.bf16.msra.mxu1 %v4130_v3  ;;  %1832 = vmatprep.subr.bf16.mxu0 %v4135_v5  ;;  %v2024_v3 = vrot.slane %v4643_v16, 3  ;;  %v1475_v5 = vsel %vm1461_vm1, %v1463_v36, %v1474_v61  ;;  %v4213_v36 = vld [vmem:[%s5692_s1 + $0x600] ss:$8 sps:$4 sm:$0xff]   ;;  %v4289_v16 = vld [vmem:[%s5692_s1 + $0x854] ss:$8 sps:$4 sm:$0xff]  }
  0xdd   : > { %1885 = vmatprep.subr.bf16.mxu1 %v4138_v6  ;;  %v1479_v6 = vsel %vm1461_vm1, %v1469_v38, %v1478_v62  ;;  %v4216_v38 = vld [vmem:[%s5692_s1 + $0x700] ss:$8 sps:$4 sm:$0xff]  }
  0xde   : > { %v4249_v61 = vld [vmem:[%s5692_s1 + $0x6a0] ss:$8 sps:$4 sm:$0xff]  }
  0xdf   : > { %1833 = vmatpush2.bf16.msra.mxu0 %v4133_v7  ;;  %v4183_v7 = vld [vmem:[%s5692_s1 + $0x650] ss:$8 sps:$4 sm:$0xff]   ;;  %v4252_v62 = vld [vmem:[%s5692_s1 + $0x7a0] ss:$8 sps:$4 sm:$0xff]  }
  0xe0   : > { %1886 = vmatpush2.bf16.msra.mxu1 %v4136_v8  ;;  %1834 = vmatprep.subr.bf16.mxu0 %v4141_v9  ;;  %v4186_v8 = vld [vmem:[%s5692_s1 + $0x750] ss:$8 sps:$4 sm:$0xff]   ;;  %v4191_v9 = vld [vmem:[%s5692_s1 + $0x644] ss:$8 sps:$4 sm:$0xff]  }
  0xe1   : > { %1887 = vmatprep.subr.bf16.mxu1 %v4144_v10  ;;  %v4194_v10 = vld [vmem:[%s5692_s1 + $0x744] ss:$8 sps:$4 sm:$0xff]  }
  0xe3   : > { %1835 = vmatpush2.bf16.msra.mxu0 %v4139_v13  ;;  %v2019_v13 = vsel %vm2013_vm2, %v2017_v0, %v2018_v1  ;;  %v4255_v0 = vld [vmem:[%s5692_s1 + $0x690] ss:$8 sps:$4 sm:$0xff]  }
  0xe4   : > { %1888 = vmatpush2.bf16.msra.mxu1 %v4142_v14  ;;  %1836 = vmatprep.subr.bf16.mxu0 %v4147_v15  ;;  %v2025_v14 = vsel %vm2013_vm2, %v2023_v2, %v2024_v3  ;;  %v4189_v15 = vld [vmem:[%s5692_s1 + $0x640] ss:$8 sps:$4 sm:$0xff]   ;;  %v3616_v2 = vcombine.low %v5173_v52, %v5133_v27  ;;  %v4266_v52 = vld [vmem:[%s5692_s1 + $0x784] ss:$8 sps:$4 sm:$0xff]  }
  0xe5   : > { %1889 = vmatprep.subr.bf16.mxu1 %v4150_v17  ;;  %v4192_v17 = vld [vmem:[%s5692_s1 + $0x740] ss:$8 sps:$4 sm:$0xff]  }
  0xe7   : > { %1837 = vmatpush2.bf16.msra.mxu0 %v4145_v19  ;;  %v4197_v19 = vld [vmem:[%s5692_s1 + $0x634] ss:$8 sps:$4 sm:$0xff]  }
  0xe8   : > { %1890 = vmatpush2.bf16.msra.mxu1 %v4148_v21  ;;  %1838 = vmatprep.subr.bf16.mxu0 %v4153_v22  ;;  %v4200_v21 = vld [vmem:[%s5692_s1 + $0x734] ss:$8 sps:$4 sm:$0xff]   ;;  %v4195_v22 = vld [vmem:[%s5692_s1 + $0x630] ss:$8 sps:$4 sm:$0xff]  }
  0xe9   : > { %1891 = vmatprep.subr.bf16.mxu1 %v4156_v23  ;;  %v4198_v23 = vld [vmem:[%s5692_s1 + $0x730] ss:$8 sps:$4 sm:$0xff]  }
  0xeb   : > { %1839 = vmatpush2.bf16.msra.mxu0 %v4151_v24  ;;  %v4203_v24 = vld [vmem:[%s5692_s1 + $0x624] ss:$8 sps:$4 sm:$0xff]  }
  0xec   : > { %1892 = vmatpush2.bf16.msra.mxu1 %v4154_v25  ;;  %1840 = vmatprep.subr.bf16.mxu0 %v4159_v20  ;;  %v4206_v25 = vld [vmem:[%s5692_s1 + $0x724] ss:$8 sps:$4 sm:$0xff]   ;;  %v4209_v20 = vld [vmem:[%s5692_s1 + $0x614] ss:$8 sps:$4 sm:$0xff]  }
  0xed   : > { %1893 = vmatprep.subr.bf16.mxu1 %v4162_v33  ;;  %v4210_v33 = vld [vmem:[%s5692_s1 + $0x710] ss:$8 sps:$4 sm:$0xff]  }
  0xef   : > { %1841 = vmatpush2.bf16.msra.mxu0 %v4157_v28  ;;  %v4224_v28 = vld [vmem:[%s5692_s1 + $0x7f4] ss:$8 sps:$4 sm:$0xff]  }
  0xf0   : > { %1894 = vmatpush2.bf16.msra.mxu1 %v4160_v40  ;;  %2362 = vmatprep.subr.bf16.mxu0 %v4169_v42  ;;  %v4219_v40 = vld [vmem:[%s5692_s1 + $0x6f0] ss:$8 sps:$4 sm:$0xff]   ;;  %v4227_v42 = vld [vmem:[%s5692_s1 + $0x6e4] ss:$8 sps:$4 sm:$0xff]  }
  0xf1   : > { %2415 = vmatprep.subr.bf16.mxu1 %v4172_v43  ;;  %v4230_v43 = vld [vmem:[%s5692_s1 + $0x7e4] ss:$8 sps:$4 sm:$0xff]  }
  0xf2   : > { %1843 = vmatmul.mubr.bf16.vlgmr.msra.gmra.mxu0 %v1464_v46  ;;  %v4233_v46 = vld [vmem:[%s5692_s1 + $0x6d4] ss:$8 sps:$4 sm:$0xff]  }
  0xf3   : > { %1896 = vmatmul.mubr.bf16.vlgmr.msra.gmra.mxu1 %v1470_v49  ;;  %2363 = vmatpush1.bf16.msra.mxu0 %v4167_v44  ;;  %v4225_v44 = vld [vmem:[%s5692_s1 + $0x6e0] ss:$8 sps:$4 sm:$0xff]   ;;  %v4234_v49 = vld [vmem:[%s5692_s1 + $0x7d0] ss:$8 sps:$4 sm:$0xff]  }
  0xf4   : > { %2416 = vmatpush1.bf16.msra.mxu1 %v4170_v47  ;;  %2364 = vmatprep.subr.bf16.mxu0 %v4175_v54  ;;  %v4236_v47 = vld [vmem:[%s5692_s1 + $0x7d4] ss:$8 sps:$4 sm:$0xff]   ;;  %v4237_v54 = vld [vmem:[%s5692_s1 + $0x6c0] ss:$8 sps:$4 sm:$0xff]  }
  0xf5   : > { %2417 = vmatprep.subr.bf16.mxu1 %v4178_v55  ;;  %1852 = vmatprep.mubr.bf16.mxu0 %v1477_v56  ;;  %v4240_v55 = vld [vmem:[%s5692_s1 + $0x7c0] ss:$8 sps:$4 sm:$0xff]   ;;  %v4245_v56 = vld [vmem:[%s5692_s1 + $0x6b4] ss:$8 sps:$4 sm:$0xff]  }
  0xf6   : > { %1905 = vmatprep.mubr.bf16.mxu1 %v1481_v58  ;;  %v4243_v58 = vld [vmem:[%s5692_s1 + $0x6b0] ss:$8 sps:$4 sm:$0xff]  }
  0xf7   : > { %2365 = vmatpush1.bf16.msra.mxu0 %v4173_v57  ;;  %v4248_v57 = vld [vmem:[%s5692_s1 + $0x7b4] ss:$8 sps:$4 sm:$0xff]  }
  0xf8   : > { %2418 = vmatpush1.bf16.msra.mxu1 %v4176_v29  ;;  %2366 = vmatprep.subr.bf16.mxu0 %v4185_v31  ;;  %v4254_v29 = vld [vmem:[%s5692_s1 + $0x7a4] ss:$8 sps:$4 sm:$0xff]   ;;  %v4257_v31 = vld [vmem:[%s5692_s1 + $0x694] ss:$8 sps:$4 sm:$0xff]  }
  0xf9   : > { %2419 = vmatprep.subr.bf16.mxu1 %v4188_v63  ;;  %v4260_v63 = vld [vmem:[%s5692_s1 + $0x794] ss:$8 sps:$4 sm:$0xff]  }
  0xfa   : > { %1853 = vmatmul.mubr.bf16.gmra.mxu0 %v1475_v5  ;;  %v4258_v5 = vld [vmem:[%s5692_s1 + $0x790] ss:$8 sps:$4 sm:$0xff]  }
  0xfb   : > { %1906 = vmatmul.mubr.bf16.gmra.mxu1 %v1479_v6  ;;  %2367 = vmatpush1.bf16.msra.mxu0 %v4183_v7  ;;  %v3618_v6 = vcombine.low %v5176_v53, %v5142_v4  ;;  %v1926_v7 = vld [vmem:[%s4475_s7 + $0x40] sm:$0x77] }
  0xfc   : > { %2420 = vmatpush1.bf16.msra.mxu1 %v4186_v8  ;;  %2368 = vmatprep.subr.bf16.mxu0 %v4191_v9  ;;  %v1927_v8 = vld [vmem:[%s4475_s7 + $0x48] sm:$0x77] }
  0xfd   : > { %2421 = vmatprep.subr.bf16.mxu1 %v4194_v10  ;;  %2394 = vmatprep.mubr.bf16.mxu0 %v2019_v13  ;;  %v4263_v9 = vld [vmem:[%s5692_s1 + $0x684] ss:$8 sps:$4 sm:$0xff]   ;;  %v2014_v10 = vrot.slane %v3616_v2, 3  ;;  %v2015_v13 = vrot.slane %v4685_v35, 3  ;;  %v4261_v53 = vld [vmem:[%s5692_s1 + $0x680] ss:$8 sps:$4 sm:$0xff]  }
  0xfe   : > { %2447 = vmatprep.mubr.bf16.mxu1 %v2025_v14  ;;  %v3621_v14 = vcombine.high %v1926_v7, %v1926_v7  ;;  %v4273_v35 = vld [vmem:[%s5692_s1 + $0x874] ss:$8 sps:$4 sm:$0xff]   ;;  %v4302_v2 = vld [vmem:[%s5692_s1 + $0x930] ss:$8 sps:$4 sm:$0xff]  }
  0xff   : > { %2369 = vmatpush1.bf16.msra.mxu0 %v4189_v15  ;;  %v3623_v15 = vcombine.high %v1927_v8, %v1927_v8 }
 0x100   : > { %2422 = vmatpush1.bf16.msra.mxu1 %v4192_v17  ;;  %2370 = vmatprep.subr.bf16.mxu0 %v4197_v19  ;;  %v4264_v17 = vld [vmem:[%s5692_s1 + $0x780] ss:$8 sps:$4 sm:$0xff]   ;;  %v2020_v19 = vrot.slane %v3618_v6, 3  ;;  %v4310_v6 = vld [vmem:[%s5692_s1 + $0x924] ss:$8 sps:$4 sm:$0xff]  }
 0x101   : > { %2423 = vmatprep.subr.bf16.mxu1 %v4200_v21  ;;  %v2021_v21 = vrot.slane %v4688_v37, 3  ;;  %v4271_v37 = vld [vmem:[%s5692_s1 + $0x870] ss:$8 sps:$4 sm:$0xff]  }
 0x103   : > { %2371 = vmatpush1.bf16.msra.mxu0 %v4195_v22  ;;  %v4276_v22 = vld [vmem:[%s5692_s1 + $0x974] ss:$8 sps:$4 sm:$0xff]  }
 0x104   : > { %2424 = vmatpush1.bf16.msra.mxu1 %v4198_v23  ;;  %2372 = vmatprep.subr.bf16.mxu0 %v4203_v24  ;;  %v2016_v23 = vsel %vm2013_vm2, %v2014_v10, %v2015_v13  ;;  %v2028_v24 = vrot.slane %v3621_v14, 3  ;;  %v4311_v10 = vld [vmem:[%s5692_s1 + $0x810] ss:$8 sps:$4 sm:$0xff]   ;;  %v4319_v14 = vld [vmem:[%s5692_s1 + $0x804] ss:$8 sps:$4 sm:$0xff]  }
 0x105   : > { %2425 = vmatprep.subr.bf16.mxu1 %v4206_v25  ;;  %v2032_v25 = vrot.slane %v3623_v15, 3  ;;  %v4322_v15 = vld [vmem:[%s5692_s1 + $0x904] ss:$8 sps:$4 sm:$0xff]  }
 0x107   : > { %2373 = vmatpush1.bf16.msra.mxu0 %v4201_v30  ;;  %v2022_v30 = vsel %vm2013_vm2, %v2020_v19, %v2021_v21  ;;  %v4325_v19 = vld [vmem:[%s5692_s1 + $0x8f4] ss:$8 sps:$4 sm:$0xff]  }
 0x108   : > { %2426 = vmatpush1.bf16.msra.mxu1 %v4204_v18  ;;  %2374 = vmatprep.subr.bf16.mxu0 %v4209_v20  ;;  %v4274_v18 = vld [vmem:[%s5692_s1 + $0x970] ss:$8 sps:$4 sm:$0xff]   ;;  %v3620_v20 = vcombine.low %v1926_v7, %v1926_v7  ;;  %v4305_v7 = vld [vmem:[%s5692_s1 + $0x820] ss:$8 sps:$4 sm:$0xff]  }
 0x109   : > { %2427 = vmatprep.subr.bf16.mxu1 %v4212_v32  ;;  %v3622_v32 = vcombine.low %v1927_v8, %v1927_v8  ;;  %v4308_v8 = vld [vmem:[%s5692_s1 + $0x920] ss:$8 sps:$4 sm:$0xff]  }
 0x10b   : > { %2375 = vmatpush1.bf16.msra.mxu0 %v4207_v12  ;;  %v4279_v12 = vld [vmem:[%s5692_s1 + $0x864] ss:$8 sps:$4 sm:$0xff]   ;;  %v2030_v11 = vrot.slane %v3622_v32, 3  ;;  %v4338_v32 = vld [vmem:[%s5692_s1 + $0x9d0] ss:$8 sps:$4 sm:$0xff]  }
 0x10c   : > { %2428 = vmatpush1.bf16.msra.mxu1 %v4210_v33  ;;  %2376 = vmatprep.subr.bf16.mxu0 %v4215_v26  ;;  %v4282_v33 = vld [vmem:[%s5692_s1 + $0x964] ss:$8 sps:$4 sm:$0xff]  }
 0x10d   : > { %2429 = vmatprep.subr.bf16.mxu1 %v4218_v34 }
 0x10f   : > { %2377 = vmatpush1.bf16.msra.mxu0 %v4213_v36  ;;  %v2029_v36 = vsel %vm2013_vm2, %v2018_v1, %v2028_v24  ;;  %v4334_v24 = vld [vmem:[%s5692_s1 + $0x9e4] ss:$8 sps:$4 sm:$0xff]  }
 0x110   : > { %2430 = vmatpush1.bf16.msra.mxu1 %v4216_v38  ;;  %2378 = vmatprep.subr.bf16.mxu0 %v4221_v39  ;;  %v2033_v38 = vsel %vm2013_vm2, %v2024_v3, %v2032_v25  ;;  %v4292_v3 = vld [vmem:[%s5692_s1 + $0x954] ss:$8 sps:$4 sm:$0xff]   ;;  %v4329_v25 = vld [vmem:[%s5692_s1 + $0x8e0] ss:$8 sps:$4 sm:$0xff]  }
 0x111   : > { %2431 = vmatprep.subr.bf16.mxu1 %v4224_v28  ;;  %v4277_v28 = vld [vmem:[%s5692_s1 + $0x860] ss:$8 sps:$4 sm:$0xff]  }
 0x113   : > { %2379 = vmatpush2.bf16.msra.mxu0 %v4219_v40  ;;  %v4280_v40 = vld [vmem:[%s5692_s1 + $0x960] ss:$8 sps:$4 sm:$0xff]  }
 0x114   : > { %2432 = vmatpush2.bf16.msra.mxu1 %v4222_v41  ;;  %2380 = vmatprep.subr.bf16.mxu0 %v4227_v42  ;;  %v2026_v41 = vrot.slane %v3620_v20, 3  ;;  %v4335_v20 = vld [vmem:[%s5692_s1 + $0x8d0] ss:$8 sps:$4 sm:$0xff]  }
 0x115   : > { %2433 = vmatprep.subr.bf16.mxu1 %v4230_v43 }
 0x117   : > { %2381 = vmatpush2.bf16.msra.mxu0 %v4225_v44 }
 0x118   : > { %2434 = vmatpush2.bf16.msra.mxu1 %v4228_v45  ;;  %2382 = vmatprep.subr.bf16.mxu0 %v4233_v46 }
 0x119   : > { %2435 = vmatprep.subr.bf16.mxu1 %v4236_v47  ;;  %v2027_v47 = vsel %vm2013_vm2, %v2015_v13, %v2026_v41  ;;  %v4314_v13 = vld [vmem:[%s5692_s1 + $0x910] ss:$8 sps:$4 sm:$0xff]   ;;  %v4355_v41 = vld [vmem:[%s5692_s1 + $0x8a4] ss:$8 sps:$4 sm:$0xff]  }
 0x11b   : > { %2383 = vmatpush2.bf16.msra.mxu0 %v4231_v48  ;;  %v2031_v48 = vsel %vm2013_vm2, %v2021_v21, %v2030_v11  ;;  %v4328_v21 = vld [vmem:[%s5692_s1 + $0x9f4] ss:$8 sps:$4 sm:$0xff]   ;;  %v4358_v11 = vld [vmem:[%s5692_s1 + $0x9a4] ss:$8 sps:$4 sm:$0xff]  }
 0x11c   : > { %2436 = vmatpush2.bf16.msra.mxu1 %v4234_v49  ;;  %2384 = vmatprep.subr.bf16.mxu0 %v4239_v50  ;;  %v4287_v49 = vld [vmem:[%s5692_s1 + $0x850] ss:$8 sps:$4 sm:$0xff]  }
 0x11d   : > { %2437 = vmatprep.subr.bf16.mxu1 %v4242_v51  ;;  %v4290_v50 = vld [vmem:[%s5692_s1 + $0x950] ss:$8 sps:$4 sm:$0xff]  }
 0x11f   : > { %2385 = vmatpush2.bf16.msra.mxu0 %v4237_v54 }
 0x120   : > { %2438 = vmatpush2.bf16.msra.mxu1 %v4240_v55  ;;  %2386 = vmatprep.subr.bf16.mxu0 %v4245_v56  ;;  %v4295_v55 = vld [vmem:[%s5692_s1 + $0x844] ss:$8 sps:$4 sm:$0xff]  }
 0x121   : > { %2439 = vmatprep.subr.bf16.mxu1 %v4248_v57  ;;  %v4298_v56 = vld [vmem:[%s5692_s1 + $0x944] ss:$8 sps:$4 sm:$0xff]  }
 0x123   : > { %2387 = vmatpush2.bf16.msra.mxu0 %v4243_v58  ;;  %v5447_v58 = vld [vmem:[%s4475_s7 + $0x20] sm:$0xff] }
 0x124   : > { %2440 = vmatpush2.bf16.msra.mxu1 %v4246_v59  ;;  %2388 = vmatprep.subr.bf16.mxu0 %v4251_v60  ;;  %v3753_v59 = vcombine.high %v5133_v27, %v5447_v58  ;;  %v5452_v60 = vld [vmem:[%s4475_s7 + $0x28] sm:$0xff] }
 0x125   : > { %2441 = vmatprep.subr.bf16.mxu1 %v4254_v29  ;;  %v3755_v29 = vcombine.high %v5142_v4, %v5452_v60 }
 0x127   : > { %2389 = vmatpush2.bf16.msra.mxu0 %v4249_v61  ;;  %v4293_v61 = vld [vmem:[%s5692_s1 + $0x840] ss:$8 sps:$4 sm:$0xff]  }
 0x128   : > { %2442 = vmatpush2.bf16.msra.mxu1 %v4252_v62  ;;  %2390 = vmatprep.subr.bf16.mxu0 %v4257_v31  ;;  %v4296_v62 = vld [vmem:[%s5692_s1 + $0x940] ss:$8 sps:$4 sm:$0xff]   ;;  %v4301_v31 = vld [vmem:[%s5692_s1 + $0x834] ss:$8 sps:$4 sm:$0xff]  }
 0x129   : > { %2443 = vmatprep.subr.bf16.mxu1 %v4260_v63  ;;  %v4304_v63 = vld [vmem:[%s5692_s1 + $0x934] ss:$8 sps:$4 sm:$0xff]  }
 0x12b   : > { %2391 = vmatpush2.bf16.msra.mxu0 %v4255_v0  ;;  %v4299_v0 = vld [vmem:[%s5692_s1 + $0x830] ss:$8 sps:$4 sm:$0xff]  }
 0x12c   : > { %2444 = vmatpush2.bf16.msra.mxu1 %v4258_v5  ;;  %2392 = vmatprep.subr.bf16.mxu0 %v4263_v9  ;;  %v4307_v5 = vld [vmem:[%s5692_s1 + $0x824] ss:$8 sps:$4 sm:$0xff]   ;;  %v4313_v9 = vld [vmem:[%s5692_s1 + $0x814] ss:$8 sps:$4 sm:$0xff]  }
 0x12d   : > { %2445 = vmatprep.subr.bf16.mxu1 %v4266_v52  ;;  %v4316_v52 = vld [vmem:[%s5692_s1 + $0x914] ss:$8 sps:$4 sm:$0xff]  }
 0x12f   : > { %2393 = vmatpush2.bf16.msra.mxu0 %v4261_v53  ;;  %v4317_v53 = vld [vmem:[%s5692_s1 + $0x800] ss:$8 sps:$4 sm:$0xff]  }
 0x130   : > { %2446 = vmatpush2.bf16.msra.mxu1 %v4264_v17  ;;  %2885 = vmatprep.subr.bf16.mxu0 %v4273_v35  ;;  %v4320_v17 = vld [vmem:[%s5692_s1 + $0x900] ss:$8 sps:$4 sm:$0xff]   ;;  %v4323_v35 = vld [vmem:[%s5692_s1 + $0x8f0] ss:$8 sps:$4 sm:$0xff]  }
 0x131   : > { %2938 = vmatprep.subr.bf16.mxu1 %v4276_v22  ;;  %v4326_v22 = vld [vmem:[%s5692_s1 + $0x9f0] ss:$8 sps:$4 sm:$0xff]  }
 0x132   : > { %v856_v26 = vpop.f32.mrf.mxu0  ;;  %2395 = vmatmul.mubr.bf16.vlgmr.msra.gmra.mxu0 %v2016_v23  ;;  %v4331_v23 = vld [vmem:[%s5692_s1 + $0x8e4] ss:$8 sps:$4 sm:$0xff]  }
 0x133   : > { %v909_v34 = vpop.f32.mrf.mxu1  ;;  %2448 = vmatmul.mubr.bf16.vlgmr.msra.gmra.mxu1 %v2022_v30  ;;  %2886 = vmatpush1.bf16.msra.mxu0 %v4271_v37  ;;  %v4332_v30 = vld [vmem:[%s5692_s1 + $0x9e0] ss:$8 sps:$4 sm:$0xff]   ;;  %v4337_v37 = vld [vmem:[%s5692_s1 + $0x8d4] ss:$8 sps:$4 sm:$0xff]  }
 0x134   : > { %v5412_v39 = vadd.f32 %v909_v34, %v856_v26  ;;  %2939 = vmatpush1.bf16.msra.mxu1 %v4274_v18  ;;  %v858_v42 = vpop.f32.mrf.mxu0  ;;  %2887 = vmatprep.subr.bf16.mxu0 %v4279_v12  ;;  %v4340_v18 = vld [vmem:[%s5692_s1 + $0x9d4] ss:$8 sps:$4 sm:$0xff]   ;;  %v4343_v12 = vld [vmem:[%s5692_s1 + $0x8c4] ss:$8 sps:$4 sm:$0xff]   ;;  %v4341_v26 = vld [vmem:[%s5692_s1 + $0x8c0] ss:$8 sps:$4 sm:$0xff]  }
 0x135   : > { %v911_v1 = vpop.f32.mrf.mxu1  ;;  %2940 = vmatprep.subr.bf16.mxu1 %v4282_v33  ;;  %2404 = vmatprep.mubr.bf16.mxu0 %v2029_v36  ;;  %v4346_v33 = vld [vmem:[%s5692_s1 + $0x9c4] ss:$8 sps:$4 sm:$0xff]   ;;  %v4344_v34 = vld [vmem:[%s5692_s1 + $0x9c0] ss:$8 sps:$4 sm:$0xff]   ;;  %v4349_v36 = vld [vmem:[%s5692_s1 + $0x8b4] ss:$8 sps:$4 sm:$0xff]  }
 0x136   : > { %v5426_v43 = vadd.f32 %v911_v1, %v858_v42  ;;  %2457 = vmatprep.mubr.bf16.mxu1 %v2033_v38  ;;  %v860_v44 = vpop.f32.mrf.mxu0  ;;  %v4352_v38 = vld [vmem:[%s5692_s1 + $0x9b4] ss:$8 sps:$4 sm:$0xff]   ;;  %v4353_v42 = vld [vmem:[%s5692_s1 + $0x8a0] ss:$8 sps:$4 sm:$0xff]  }
 0x137   : > { %v913_v45 = vpop.f32.mrf.mxu1  ;;  %2888 = vmatpush1.bf16.msra.mxu0 %v4277_v28  ;;  %v4347_v28 = vld [vmem:[%s5692_s1 + $0x8b0] ss:$8 sps:$4 sm:$0xff]   ;;  %v4356_v1 = vld [vmem:[%s5692_s1 + $0x9a0] ss:$8 sps:$4 sm:$0xff]  }
 0x138   : > { %v5428_v46 = vadd.f32 %v913_v45, %v860_v44  ;;  %2941 = vmatpush1.bf16.msra.mxu1 %v4280_v40  ;;  %v862_v51 = vpop.f32.mrf.mxu0  ;;  %2889 = vmatprep.subr.bf16.mxu0 %v4289_v16  ;;  %v4350_v40 = vld [vmem:[%s5692_s1 + $0x9b0] ss:$8 sps:$4 sm:$0xff]   ;;  %v4361_v16 = vld [vmem:[%s5692_s1 + $0x894] ss:$8 sps:$4 sm:$0xff]  }
 0x139   : > { %v915_v54 = vpop.f32.mrf.mxu1  ;;  %2942 = vmatprep.subr.bf16.mxu1 %v4292_v3  ;;  %v4364_v3 = vld [vmem:[%s5692_s1 + $0x994] ss:$8 sps:$4 sm:$0xff]   ;;  %v4359_v44 = vld [vmem:[%s5692_s1 + $0x890] ss:$8 sps:$4 sm:$0xff]  }
 0x13a   : > { %v5444_v57 = vadd.f32 %v915_v54, %v862_v51  ;;  %2405 = vmatmul.mubr.bf16.gmra.mxu0 %v2027_v47  ;;  %v4362_v45 = vld [vmem:[%s5692_s1 + $0x990] ss:$8 sps:$4 sm:$0xff]   ;;  %v4367_v47 = vld [vmem:[%s5692_s1 + $0x884] ss:$8 sps:$4 sm:$0xff]  }
 0x13b   : > { %2458 = vmatmul.mubr.bf16.gmra.mxu1 %v2031_v48  ;;  %2890 = vmatpush1.bf16.msra.mxu0 %v4287_v49  ;;  %v4370_v48 = vld [vmem:[%s5692_s1 + $0x984] ss:$8 sps:$4 sm:$0xff]   ;;  %v4365_v49 = vld [vmem:[%s5692_s1 + $0x880] ss:$8 sps:$4 sm:$0xff]  }
 0x13c   : > { %2943 = vmatpush1.bf16.msra.mxu1 %v4290_v50  ;;  %2891 = vmatprep.subr.bf16.mxu0 %v4295_v55  ;;  %v4368_v50 = vld [vmem:[%s5692_s1 + $0x980] ss:$8 sps:$4 sm:$0xff]   ;;  %v3752_v55 = vcombine.low %v5133_v27, %v5447_v58 }
 0x13d   : > { %2944 = vmatprep.subr.bf16.mxu1 %v4298_v56  ;;  %2917 = vmatprep.mubr.bf16.mxu0 %v3753_v59  ;;  %v2476_v51 = vld [vmem:[%s4475_s7 + $0x40] sm:$0xff]  ;;  %v2477_v54 = vld [vmem:[%s4475_s7 + $0x48] sm:$0xff]  ;;  %v3754_v56 = vcombine.low %v5142_v4, %v5452_v60  ;;  %v4383_v59 = vld [vmem:[%s4475_s7 + $0x30] sm:$0xff] }
 0x13e   : > { %2970 = vmatprep.mubr.bf16.mxu1 %v3755_v29  ;;  %v3757_v29 = vcombine.high %v4383_v59, %v2476_v51 }
 0x13f   : > { %2892 = vmatpush1.bf16.msra.mxu0 %v4293_v61  ;;  %v4384_v61 = vld [vmem:[%s4475_s7 + $0x38] sm:$0xff] }
 0x140   : > { %2945 = vmatpush1.bf16.msra.mxu1 %v4296_v62  ;;  %2893 = vmatprep.subr.bf16.mxu0 %v4301_v31  ;;  %v3759_v62 = vcombine.high %v4384_v61, %v2477_v54  ;;  %v3756_v31 = vcombine.low %v4383_v59, %v2476_v51  ;;  %v3001_v51 = vlaneseq }
 0x141   : > { %2946 = vmatprep.subr.bf16.mxu1 %v4304_v63  ;;  %v3758_v63 = vcombine.low %v4384_v61, %v2477_v54 }
 0x143   : > { %2894 = vmatpush1.bf16.msra.mxu0 %v4299_v0  ;;  %v866_v0 = vpop.f32.mrf.mxu0 }
 0x144   : > { %2947 = vmatpush1.bf16.msra.mxu1 %v4302_v2  ;;  %2895 = vmatprep.subr.bf16.mxu0 %v4307_v5  ;;  %v919_v2 = vpop.f32.mrf.mxu1 }
 0x145   : > { %2948 = vmatprep.subr.bf16.mxu1 %v4310_v6  ;;  %v868_v27 = vpop.f32.mrf.mxu0  ;;  %v920_v59 = vadd.f32 %v919_v2, %v866_v0 }
 0x146   : > { %v921_v58 = vpop.f32.mrf.mxu1 }
 0x147   : > { %2896 = vmatpush1.bf16.msra.mxu0 %v4305_v7  ;;  %v870_v5 = vpop.f32.mrf.mxu0  ;;  %v922_v61 = vadd.f32 %v921_v58, %v868_v27 }
 0x148   : > { %2949 = vmatpush1.bf16.msra.mxu1 %v4308_v8  ;;  %2897 = vmatprep.subr.bf16.mxu0 %v4313_v9  ;;  %v923_v4 = vpop.f32.mrf.mxu1 }
 0x149   : > { %2950 = vmatprep.subr.bf16.mxu1 %v4316_v52  ;;  %v872_v60 = vpop.f32.mrf.mxu0 }
 0x14a   : > { %v925_v6 = vpop.f32.mrf.mxu1 }
 0x14b   : > { %2898 = vmatpush1.bf16.msra.mxu0 %v4311_v10 }
 0x14c   : > { %2951 = vmatpush1.bf16.msra.mxu1 %v4314_v13  ;;  %2899 = vmatprep.subr.bf16.mxu0 %v4319_v14 }
 0x14d   : > { %2952 = vmatprep.subr.bf16.mxu1 %v4322_v15 }
 0x14f   : > { %2900 = vmatpush1.bf16.msra.mxu0 %v4317_v53 }
 0x150   : > { %2953 = vmatpush1.bf16.msra.mxu1 %v4320_v17  ;;  %2901 = vmatprep.subr.bf16.mxu0 %v4325_v19 }
 0x151   : > { %2954 = vmatprep.subr.bf16.mxu1 %v4328_v21 }
 0x153   : > { %2902 = vmatpush2.bf16.msra.mxu0 %v4323_v35 }
 0x154   : > { %2955 = vmatpush2.bf16.msra.mxu1 %v4326_v22  ;;  %2903 = vmatprep.subr.bf16.mxu0 %v4331_v23 }
 0x155   : > { %2956 = vmatprep.subr.bf16.mxu1 %v4334_v24 }
 0x157   : > { %2904 = vmatpush2.bf16.msra.mxu0 %v4329_v25 }
 0x158   : > { %2957 = vmatpush2.bf16.msra.mxu1 %v4332_v30  ;;  %2905 = vmatprep.subr.bf16.mxu0 %v4337_v37 }
 0x159   : > { %2958 = vmatprep.subr.bf16.mxu1 %v4340_v18 }
 0x15b   : > { %2906 = vmatpush2.bf16.msra.mxu0 %v4335_v20 }
 0x15c   : > { %2959 = vmatpush2.bf16.msra.mxu1 %v4338_v32  ;;  %2907 = vmatprep.subr.bf16.mxu0 %v4343_v12 }
 0x15d   : > { %2960 = vmatprep.subr.bf16.mxu1 %v4346_v33 }
 0x15f   : > { %2908 = vmatpush2.bf16.msra.mxu0 %v4341_v26 }
 0x160   : > { %2961 = vmatpush2.bf16.msra.mxu1 %v4344_v34  ;;  %2909 = vmatprep.subr.bf16.mxu0 %v4349_v36 }
 0x161   : > { %2962 = vmatprep.subr.bf16.mxu1 %v4352_v38 }
 0x163   : > { %2910 = vmatpush2.bf16.msra.mxu0 %v4347_v28 }
 0x164   : > { %2963 = vmatpush2.bf16.msra.mxu1 %v4350_v40  ;;  %2911 = vmatprep.subr.bf16.mxu0 %v4355_v41 }
 0x165   : > { %2964 = vmatprep.subr.bf16.mxu1 %v4358_v11 }
 0x167   : > { %2912 = vmatpush2.bf16.msra.mxu0 %v4353_v42 }
 0x168   : > { %2965 = vmatpush2.bf16.msra.mxu1 %v4356_v1  ;;  %2913 = vmatprep.subr.bf16.mxu0 %v4361_v16 }
 0x169   : > { %2966 = vmatprep.subr.bf16.mxu1 %v4364_v3 }
 0x16b   : > { %2914 = vmatpush2.bf16.msra.mxu0 %v4359_v44 }
 0x16c   : > { %2967 = vmatpush2.bf16.msra.mxu1 %v4362_v45  ;;  %2915 = vmatprep.subr.bf16.mxu0 %v4367_v47 }
 0x16d   : > { %2968 = vmatprep.subr.bf16.mxu1 %v4370_v48 }
 0x16f   : > { %2916 = vmatpush2.bf16.msra.mxu0 %v4365_v49 }
 0x170   : > { %2969 = vmatpush2.bf16.msra.mxu1 %v4368_v50 }
 0x172   : > { %2918 = vmatmul.mubr.bf16.vlgmr.msra.gmra.mxu0 %v3752_v55  ;;  %v1300_v7 = vpop.f32.mrf.mxu0 }
 0x173   : > { %2971 = vmatmul.mubr.bf16.vlgmr.msra.gmra.mxu1 %v3754_v56  ;;  %2927 = vmatprep.mubr.bf16.mxu0 %v3757_v29  ;;  %v1353_v8 = vpop.f32.mrf.mxu1  ;;  %v3002_v56 = vshrl.u32 %v3001_v51, 7  ;;  %v1301_v29 = vadd.f32 %v1300_v7, %v5412_v39  ;;  %v926_v51 = vadd.f32 %v925_v6, %v872_v60 }
 0x174   : > { %2980 = vmatprep.mubr.bf16.mxu1 %v3759_v62  ;;  %v1302_v9 = vpop.f32.mrf.mxu0 }
 0x175   : > { %v1355_v52 = vpop.f32.mrf.mxu1  ;;  %v1303_v62 = vadd.f32 %v1302_v9, %v5426_v43  ;;  %v1354_v0 = vadd.f32 %v1353_v8, %v1301_v29  ;;  %v2999_v43 = vld [vmem:[%s5693_s2] sm:$0x3]  ;;  %v3007_v9 = vsub.s32 1, %v3002_v56 }
 0x176   : > { %v1304_v10 = vpop.f32.mrf.mxu0 }
 0x177   : > { %v1357_v13 = vpop.f32.mrf.mxu1 }
 0x178   : > { %v1306_v14 = vpop.f32.mrf.mxu0 }
 0x179   : > { %v1359_v15 = vpop.f32.mrf.mxu1 }
 0x17a   : > { %2928 = vmatmul.mubr.bf16.gmra.mxu0 %v3756_v31  ;;  %v1310_v53 = vpop.f32.mrf.mxu0  ;;  %v1305_v31 = vadd.f32 %v1304_v10, %v5428_v46  ;;  %v1356_v46 = vadd.f32 %v1355_v52, %v1303_v62 }
 0x17b   : > { %2981 = vmatmul.mubr.bf16.gmra.mxu1 %v3758_v63  ;;  %v1363_v17 = vpop.f32.mrf.mxu1  ;;  %v1307_v63 = vadd.f32 %v1306_v14, %v5444_v57 }
 0x17c   : > { %v1312_v19 = vpop.f32.mrf.mxu0  ;;  %v1358_v27 = vadd.f32 %v1357_v13, %v1305_v31 }
 0x17d   : > { %v5614_v21 = vpop.f32.mrf.mxu1  ;;  %v1360_v57 = vadd.f32 %v1359_v15, %v1307_v63 }
 0x17e   : > { %v1314_v35 = vpop.f32.mrf.mxu0 }
 0x17f   : > { %v5616_v22 = vpop.f32.mrf.mxu1 }
 0x180   : > { %v5618_v23 = vpop.f32.mrf.mxu0 }
 0x181   : > { %v5620_v24 = vpop.f32.mrf.mxu1  ;;  %v1317_v15 = vadd.f32 %v5618_v23, %v926_v51 }
 0x182   : > { %5695 = vst [vmem:[#allocation7_spill] sm:$0xff] %v5620_v24 }
 0x1b2   : > { %v1844_v25 = vpop.f32.mrf.mxu0 }
 0x1b3   : > { %v1897_v30 = vpop.f32.mrf.mxu1 }
 0x1b4   : > { %v1846_v37 = vpop.f32.mrf.mxu0 }
 0x1b5   : > { %v1899_v18 = vpop.f32.mrf.mxu1 }
 0x1b6   : > { %v1848_v20 = vpop.f32.mrf.mxu0  ;;  %v1900_v2 = vadd.f32 %v1899_v18, %v1846_v37 }
 0x1b7   : > { %v1901_v32 = vpop.f32.mrf.mxu1 }
 0x1b8   : > { %v1850_v12 = vpop.f32.mrf.mxu0 }
 0x1b9   : > { %v1903_v33 = vpop.f32.mrf.mxu1 }
 0x1ba   : > { %v1854_v26 = vpop.f32.mrf.mxu0  ;;  %v1904_v6 = vadd.f32 %v1903_v33, %v1850_v12 }
 0x1bb   : > { %v1907_v34 = vpop.f32.mrf.mxu1 }
 0x1bc   : > { %v5622_v36 = vpop.f32.mrf.mxu0  ;;  %v1908_v18 = vadd.f32 %v1907_v34, %v1854_v26 }
 0x1bd   : > { %v5624_v38 = vpop.f32.mrf.mxu1 }
 0x1be   : > { %v5626_v28 = vpop.f32.mrf.mxu0 }
 0x1bf   : > { %5696 = vst [vmem:[#allocation8_spill] sm:$0xff] %v5626_v28  ;;  %v5628_v40 = vpop.f32.mrf.mxu1  ;;  %v1313_v28 = vadd.f32 %v1312_v19, %v922_v61 }
 0x1c0   : > { %5697 = vst [vmem:[#allocation9_spill] sm:$0xff] %v5628_v40  ;;  %v5630_v41 = vpop.f32.mrf.mxu0  ;;  %v1898_v40 = vadd.f32 %v1897_v30, %v1844_v25  ;;  %v1917_v30 = vadd.f32 %v1900_v2, %v1356_v46 }
 0x1c1   : > { %5698 = vst [vmem:[#allocation10_spill] sm:$0xff] %v5630_v41  ;;  %v5632_v11 = vpop.f32.mrf.mxu1  ;;  %v1311_v41 = vadd.f32 %v1310_v53, %v920_v59  ;;  %v1902_v53 = vadd.f32 %v1901_v32, %v1848_v20  ;;  %v1366_v60 = vadd.f32 %v5614_v21, %v1313_v28  ;;  %v5653_v20 = vrot.slane %v2999_v43, %v3007_v9 }
 0x1c2   : > { %5699 = vst [vmem:[#allocation11_spill] sm:$0xff] %v5632_v11  ;;  %v1916_v14 = vadd.f32 %v1898_v40, %v1354_v0  ;;  %v1919_v28 = vadd.f32 %v1904_v6, %v1360_v57 }
 0x1c3   : > { %v1364_v10 = vadd.f32 %v1363_v17, %v1311_v41  ;;  %v1910_v41 = vadd.f32 %v5624_v38, %v5622_v36 }
 0x1c5   : > { %v1921_v62 = vadd.f32 %v1910_v41, %v1366_v60 }
 0x1c8   : > { %v5706_v31 = vld [vmem:[#allocation10_spill] sm:$0xff] }
 0x1c9   : > { %v5707_v63 = vld [vmem:[#allocation11_spill] sm:$0xff] }
 0x1ca   : > { %v1914_v51 = vadd.f32 %v5707_v63, %v5706_v31 }
 0x1f2   : > { %v2396_v42 = vpop.f32.mrf.mxu0 }
 0x1f3   : > { %v2449_v1 = vpop.f32.mrf.mxu1 }
 0x1f4   : > { %v2398_v16 = vpop.f32.mrf.mxu0  ;;  %v2450_v39 = vadd.f32 %v2449_v1, %v2396_v42 }
 0x1f5   : > { %v2451_v3 = vpop.f32.mrf.mxu1 }
 0x1f6   : > { %v2400_v44 = vpop.f32.mrf.mxu0  ;;  %v2468_v37 = vadd.f32 %v2450_v39, %v1916_v14 }
 0x1f7   : > { %v2453_v45 = vpop.f32.mrf.mxu1 }
 0x1f8   : > { %v2402_v47 = vpop.f32.mrf.mxu0  ;;  %v2454_v52 = vadd.f32 %v2453_v45, %v2400_v44  ;;  %v1920_v45 = vadd.f32 %v1908_v18, %v1364_v10  ;;  %v5708_v10 = vld [vmem:[#allocation7_spill] sm:$0xff] }
 0x1f9   : > { %v2455_v48 = vpop.f32.mrf.mxu1  ;;  %v1370_v14 = vadd.f32 %v5708_v10, %v1317_v15 }
 0x1fa   : > { %v2406_v49 = vpop.f32.mrf.mxu0  ;;  %v2456_v42 = vadd.f32 %v2455_v48, %v2402_v47  ;;  %v5702_v47 = vld [vmem:[#allocation8_spill] sm:$0xff]  ;;  %v5703_v48 = vld [vmem:[#allocation9_spill] sm:$0xff] }
 0x1fb   : > { %v2459_v50 = vpop.f32.mrf.mxu1 }
 0x1fc   : > { %v5634_v54 = vpop.f32.mrf.mxu0  ;;  %v2460_v1 = vadd.f32 %v2459_v50, %v2406_v49 }
 0x1fd   : > { %5700 = vst [vmem:[#allocation12_spill] sm:$0xff] %v5634_v54  ;;  %v5636_v55 = vpop.f32.mrf.mxu1  ;;  %v924_v54 = vadd.f32 %v923_v4, %v870_v5  ;;  %v2452_v5 = vadd.f32 %v2451_v3, %v2398_v16 }
 0x1fe   : > { %5701 = vst [vmem:[#allocation13_spill] sm:$0xff] %v5636_v55  ;;  %v5642_v24 = vpop.f32.mrf.mxu0  ;;  %v3003_v55 = vsub.s32 0, %v3002_v56  ;;  %v2472_v0 = vadd.f32 %v2460_v1, %v1920_v45 }
 0x1ff   : > { %v5644_v11 = vpop.f32.mrf.mxu1  ;;  %v1315_v4 = vadd.f32 %v1314_v35, %v924_v54  ;;  %v1918_v35 = vadd.f32 %v1902_v53, %v1358_v27  ;;  %v2469_v32 = vadd.f32 %v2452_v5, %v1917_v30  ;;  %v1912_v54 = vadd.f32 %v5703_v48, %v5702_v47 }
 0x200   : > { %v2412_v58 = vpop.f32.mrf.mxu0  ;;  %v5650_v25 = vrot.slane %v2999_v43, %v3003_v55  ;;  %v2471_v55 = vadd.f32 %v2456_v42, %v1919_v28  ;;  %v2464_v2 = vadd.f32 %v5644_v11, %v5642_v24  ;;  %v1923_v24 = vadd.f32 %v1914_v51, %v1370_v14 }
 0x201   : > { %v2465_v7 = vpop.f32.mrf.mxu1  ;;  %v1368_v33 = vadd.f32 %v5616_v22, %v1315_v4  ;;  %v2470_v23 = vadd.f32 %v2454_v52, %v1918_v35 }
 0x202   : > { %v2466_v4 = vadd.f32 %v2465_v7, %v2412_v58 }
 0x203   : > { %v1922_v53 = vadd.f32 %v1912_v54, %v1368_v33 }
 0x204   : > { %v5704_v56 = vld [vmem:[#allocation12_spill] sm:$0xff]  ;;  %v2475_v15 = vadd.f32 %v2466_v4, %v1923_v24 }
 0x205   : > { %v5705_v22 = vld [vmem:[#allocation13_spill] sm:$0xff]  ;;  %v2474_v11 = vadd.f32 %v2464_v2, %v1922_v53 }
 0x206   : > { %v2462_v59 = vadd.f32 %v5705_v22, %v5704_v56 }
 0x208   : > { %v2473_v5 = vadd.f32 %v2462_v59, %v1921_v62 }
 0x232   : > { %v2919_v8 = vpop.f32.mrf.mxu0 }
 0x233   : > { %v2972_v19 = vpop.f32.mrf.mxu1 }
 0x234   : > { %v2973_v13 = vadd.f32 %v2972_v19, %v2919_v8  ;;  %v2921_v17 = vpop.f32.mrf.mxu0 }
 0x235   : > { %v2974_v40 = vpop.f32.mrf.mxu1 }
 0x236   : > { %v2991_v21 = vadd.f32 %v2973_v13, %v2468_v37  ;;  %v2975_v12 = vadd.f32 %v2974_v40, %v2921_v17  ;;  %v2923_v16 = vpop.f32.mrf.mxu0 }
 0x237   : > { %v2976_v3 = vpop.f32.mrf.mxu1 }
 0x238   : > { %v5659_v26 = vadd.f32 %v5650_v25, %v2991_v21  ;;  %v2992_v34 = vadd.f32 %v2975_v12, %v2469_v32  ;;  %v2977_v44 = vadd.f32 %v2976_v3, %v2923_v16  ;;  %v2925_v29 = vpop.f32.mrf.mxu0 }
 0x239   : > { %v2978_v61 = vpop.f32.mrf.mxu1 }
 0x23a   : > { %v3019_v36 = vmax.f32 %v5659_v26, 0.0  ;;  %v3012_v38 = vadd.f32 %v5653_v20, %v2992_v34  ;;  %v2993_v49 = vadd.f32 %v2977_v44, %v2470_v23  ;;  %v2979_v50 = vadd.f32 %v2978_v61, %v2925_v29  ;;  %v2929_v39 = vpop.f32.mrf.mxu0 }
 0x23b   : > { %v2982_v43 = vpop.f32.mrf.mxu1 }
 0x23c   : > { %v3020_v46 = vmax.f32 %v3012_v38, 0.0  ;;  %v3013_v27 = vadd.f32 %v5650_v25, %v2993_v49  ;;  %v2994_v57 = vadd.f32 %v2979_v50, %v2471_v55  ;;  %v2983_v9 = vadd.f32 %v2982_v43, %v2929_v39  ;;  %v2931_v60 = vpop.f32.mrf.mxu0 }
 0x23d   : > { %v2984_v6 = vpop.f32.mrf.mxu1 }
 0x23e   : > { %v3021_v8 = vmax.f32 %v3013_v27, 0.0  ;;  %v3014_v19 = vadd.f32 %v5653_v20, %v2994_v57  ;;  %v2995_v30 = vadd.f32 %v2983_v9, %v2472_v0  ;;  %v2985_v37 = vadd.f32 %v2984_v6, %v2931_v60  ;;  %v2933_v52 = vpop.f32.mrf.mxu0 }
 0x23f   : > { %v2986_v13 = vpop.f32.mrf.mxu1 }
 0x240   : > { %v3022_v18 = vmax.f32 %v3014_v19, 0.0  ;;  %v3015_v42 = vadd.f32 %v5650_v25, %v2995_v30  ;;  %v2996_v17 = vadd.f32 %v2985_v37, %v2473_v5  ;;  %v2987_v40 = vadd.f32 %v2986_v13, %v2933_v52  ;;  %v2935_v35 = vpop.f32.mrf.mxu0 }
 0x241   : > { %v2988_v32 = vpop.f32.mrf.mxu1 }
 0x242   : > { %v3023_v58 = vmax.f32 %v3015_v42, 0.0  ;;  %v3016_v7 = vadd.f32 %v5653_v20, %v2996_v17  ;;  %v2997_v21 = vadd.f32 %v2987_v40, %v2474_v11  ;;  %v2989_v12 = vadd.f32 %v2988_v32, %v2935_v35 }
 0x244   : > { %v3024_v33 = vmax.f32 %v3016_v7, 0.0  ;;  %v3017_v28 = vadd.f32 %v5650_v25, %v2997_v21  ;;  %v2998_v41 = vadd.f32 %v2989_v12, %v2475_v15  ;;  %3030 = sbr.rel (%p3824_p8) target bundleno = 589 (0x24d), region = 108 }
 0x246   : > { %v3025_v1 = vmax.f32 %v3017_v28, 0.0  ;;  %v3018_v16 = vadd.f32 %v5653_v20, %v2998_v41 }
 0x248   : > { %v3026_v3 = vmax.f32 %v3018_v16, 0.0 }
 0x249   : > { %v3844_v23 = vpack.c.bf16 %v3020_v46, %v3019_v36  ;;  %v3845_v26 = vpack.c.bf16 %v3022_v18, %v3021_v8  ;;  %v4395_v34 = vmov 0.0|0.0  }
 0x24a   : > { %v3827_v44 = vcombine.low %v4395_v34, %v4395_v34  ;;  %v3828_v45 = vcombine.high %v4395_v34, %v4395_v34 }
 0x24b   : > { %3072 = vst [vmem:[%s4433_s22] sm:$0xff] %v3844_v23  ;;  %3073 = vst [vmem:[%s4433_s22 + $0x8] sm:$0xff] %v3845_v26 }
 0x24c   : > { %3074 = vst [vmem:[%s4433_s22 + $0x10] sm:$0xff] %v3827_v44  ;;  %3075 = vst [vmem:[%s4433_s22 + $0x18] sm:$0xff] %v3828_v45 }
 0x24d PF: > { %p3829_p9 = scmp.eq.s32.totalorder %s4422_s13, 2 }
 0x24f   : > { %3079 = sbr.rel (%p3829_p9) target bundleno = 600 (0x258), region = 112 }
 0x254   : > { %v3846_v25 = vpack.c.bf16 %v3020_v46, %v3019_v36  ;;  %v3847_v20 = vpack.c.bf16 %v3022_v18, %v3021_v8  ;;  %v3848_v47 = vpack.c.bf16 %v3024_v33, %v3023_v58  ;;  %v3849_v48 = vpack.c.bf16 %v3026_v3, %v3025_v1 }
 0x256   : > { %3104 = vst [vmem:[%s4433_s22] sm:$0xff] %v3846_v25  ;;  %3105 = vst [vmem:[%s4433_s22 + $0x8] sm:$0xff] %v3847_v20 }
 0x257   : > { %3106 = vst [vmem:[%s4433_s22 + $0x10] sm:$0xff] %v3848_v47  ;;  %3107 = vst [vmem:[%s4433_s22 + $0x18] sm:$0xff] %v3849_v48 }
 0x258 PF: > { %s13_s12 = sadd.s32 1, %s4393_s12  }
 0x259   : > { %p10_p10 = scmp.ge.s32.totalorder %s13_s12, 5  }
 0x25b   :  { %12 = sbr.rel (!%p10_p10) target bundleno = 1 (0x1), region = 165 }
 0x260   :  { %3132 = vsyncmov [#allocation3] }
 0x263   :  { %s3133_s13 = vpop.sfrf %3132 }
 0x264   :  { %p3836_p11 = scmp.ne.s32.totalorder %s3133_s13, 0 }
 0x266   :  { %3137 = shalt.err (%p3836_p11)  }
 0x267   :  { %3139 = vsyncmov [#allocation3 + $0x1] }
 0x26a   :  { %s3140_s5 = vpop.sfrf %3139 }
 0x26b   :  { %p3837_p12 = scmp.ne.s32.totalorder %s3140_s5, 0 }
 0x26d   :  { %3144 = shalt.err (%p3837_p12)  }

// kernel: encoder_forward.6
= control target key start
LH: loop header
LB: loop body
LE: loop exit
PB: predicated region body
PF: predicated region fallthrough
CT: control target
= control target key end

     0   :  { %s1589_s12 = smov 0   ;;  %s2210_s0 = inlined_call_operand.vmem [shape: bf16[96,256], index: 0, kind: input, shape index: {}]   ;;  %s2211_s1 = inlined_call_operand.vmem [shape: bf16[256,1024], index: 1, kind: input, shape index: {}]   ;;  %s2212_s2 = inlined_call_operand.vmem [shape: f32[1,1024], index: 2, kind: input, shape index: {}]   ;;  %s2213_s3 = inlined_call_operand.vmem [shape: f32[96,1024], index: 3, kind: output, shape index: {}]  }
   0x1 LB: > { %s1595_s13 = sadd.s32 4294967295, %s1566_s12   ;;  %p1400_p0 = scmp.ge.s32.totalorder %s1566_s12, 1  ;;  %s1566_s12 = sphi %s1589_s12, %s13_s12  }
   0x2   : > { %p139_p1 = scmp.lt.s32.totalorder %s1566_s12, 4 }
   0x4   : > { %p140_p2 = pnand %p1400_p0, %p139_p1 }
   0x5   : > { %s1401_s20 = sshll.u32 (!%p140_p2), %s1595_s13, 2  ;;  %p1539_p4 = scmp.ne.s32.totalorder (!%p140_p2), %s1595_s13, 2 }
   0x6   : > { %143 = sbr.rel (%p140_p2) target bundleno = 390 (0x186), region = 32  ;;  %p166_p3 = scmp.lt.s32.totalorder (!%p140_p2), %s1401_s20, 11 }
   0xb   : > { %v239_v0 = vld [vmem:[%s2211_s1 + $0x1c0] sm:$0xff]  ;;  %v240_v2 = vld [vmem:[%s2211_s1 + $0x1c8] sm:$0xff]  ;;  %s2215_s20 = smov (!%p166_p3, %s1401_s20), 11 }
   0xc   : > { %v243_v1 = vld [vmem:[%s2211_s1 + $0x1e0] sm:$0xff]  ;;  %v244_v4 = vld [vmem:[%s2211_s1 + $0x1e8] sm:$0xff]  ;;  %s1544_s14 = sshll.u32 %s2215_s20, 6  ;;  %s1543_s18 = sshll.u32 %s2215_s20, 3 }
   0xd   : > { %v1468_v3 = vcombine.high %v239_v0, %v243_v1  ;;  %v1467_v5 = vcombine.low %v239_v0, %v243_v1  ;;  %v231_v6 = vld [vmem:[%s2211_s1 + $0x180] sm:$0xff]  ;;  %v1470_v8 = vcombine.high %v240_v2, %v244_v4  ;;  %v1469_v9 = vcombine.low %v240_v2, %v244_v4  ;;  %v232_v11 = vld [vmem:[%s2211_s1 + $0x188] sm:$0xff]  ;;  %s1648_s22 = scalar_lea.vmem %s2213_s3, %s1544_s14  ;;  %s1696_s30 = scalar_lea.vmem %s2210_s0, %s1543_s18 }
   0xe   : > { %v235_v7 = vld [vmem:[%s2211_s1 + $0x1a0] sm:$0xff]  ;;  %v236_v12 = vld [vmem:[%s2211_s1 + $0x1a8] sm:$0xff] }
   0xf   : > { %v1460_v10 = vcombine.high %v231_v6, %v235_v7  ;;  %v223_v13 = vld [vmem:[%s2211_s1 + $0x140] sm:$0xff]  ;;  %1013 = vmatprep.subr.bf16.mxu0 %v1468_v3  ;;  %v1462_v14 = vcombine.high %v232_v11, %v236_v12  ;;  %v224_v16 = vld [vmem:[%s2211_s1 + $0x148] sm:$0xff]  ;;  %1066 = vmatprep.subr.bf16.mxu1 %v1470_v8  ;;  %v1459_v18 = vcombine.low %v231_v6, %v235_v7 }
  0x10   : > { %v227_v15 = vld [vmem:[%s2211_s1 + $0x160] sm:$0xff]  ;;  %v228_v17 = vld [vmem:[%s2211_s1 + $0x168] sm:$0xff]  ;;  %1014 = vmatpush1.bf16.msra.mxu0 %v1467_v5  ;;  %1067 = vmatpush1.bf16.msra.mxu1 %v1469_v9  ;;  %v1461_v19 = vcombine.low %v232_v11, %v236_v12 }
  0x11   : > { %1015 = vmatprep.subr.bf16.mxu0 %v1460_v10  ;;  %v1452_v20 = vcombine.high %v223_v13, %v227_v15  ;;  %1068 = vmatprep.subr.bf16.mxu1 %v1462_v14  ;;  %v1454_v21 = vcombine.high %v224_v16, %v228_v17  ;;  %v215_v22 = vld [vmem:[%s2211_s1 + $0x100] sm:$0xff]  ;;  %v216_v24 = vld [vmem:[%s2211_s1 + $0x108] sm:$0xff]  ;;  %v1451_v26 = vcombine.low %v223_v13, %v227_v15 }
  0x12   : > { %v219_v23 = vld [vmem:[%s2211_s1 + $0x120] sm:$0xff]  ;;  %v220_v25 = vld [vmem:[%s2211_s1 + $0x128] sm:$0xff]  ;;  %v1453_v27 = vcombine.low %v224_v16, %v228_v17 }
  0x13   : > { %v1444_v28 = vcombine.high %v215_v22, %v219_v23  ;;  %v1446_v29 = vcombine.high %v216_v24, %v220_v25  ;;  %v207_v30 = vld [vmem:[%s2211_s1 + $0xc0] sm:$0xff]  ;;  %v208_v32 = vld [vmem:[%s2211_s1 + $0xc8] sm:$0xff]  ;;  %v1443_v34 = vcombine.low %v215_v22, %v219_v23  ;;  %v1445_v35 = vcombine.low %v216_v24, %v220_v25 }
  0x14   : > { %1016 = vmatpush1.bf16.msra.mxu0 %v1459_v18  ;;  %1069 = vmatpush1.bf16.msra.mxu1 %v1461_v19  ;;  %v211_v31 = vld [vmem:[%s2211_s1 + $0xe0] sm:$0xff]  ;;  %v212_v33 = vld [vmem:[%s2211_s1 + $0xe8] sm:$0xff] }
  0x15   : > { %1017 = vmatprep.subr.bf16.mxu0 %v1452_v20  ;;  %1070 = vmatprep.subr.bf16.mxu1 %v1454_v21  ;;  %v1436_v36 = vcombine.high %v207_v30, %v211_v31  ;;  %v1438_v37 = vcombine.high %v208_v32, %v212_v33  ;;  %v199_v38 = vld [vmem:[%s2211_s1 + $0x80] sm:$0xff]  ;;  %v200_v40 = vld [vmem:[%s2211_s1 + $0x88] sm:$0xff]  ;;  %v1435_v42 = vcombine.low %v207_v30, %v211_v31 }
  0x16   : > { %v203_v39 = vld [vmem:[%s2211_s1 + $0xa0] sm:$0xff]  ;;  %v204_v41 = vld [vmem:[%s2211_s1 + $0xa8] sm:$0xff]  ;;  %v1437_v43 = vcombine.low %v208_v32, %v212_v33 }
  0x17   : > { %v1428_v44 = vcombine.high %v199_v38, %v203_v39  ;;  %v1430_v45 = vcombine.high %v200_v40, %v204_v41  ;;  %v191_v46 = vld [vmem:[%s2211_s1 + $0x40] sm:$0xff]  ;;  %v192_v48 = vld [vmem:[%s2211_s1 + $0x48] sm:$0xff]  ;;  %v1427_v50 = vcombine.low %v199_v38, %v203_v39  ;;  %v1429_v51 = vcombine.low %v200_v40, %v204_v41 }
  0x18   : > { %1018 = vmatpush1.bf16.msra.mxu0 %v1451_v26  ;;  %1071 = vmatpush1.bf16.msra.mxu1 %v1453_v27  ;;  %v195_v47 = vld [vmem:[%s2211_s1 + $0x60] sm:$0xff]  ;;  %v196_v49 = vld [vmem:[%s2211_s1 + $0x68] sm:$0xff] }
  0x19   : > { %1019 = vmatprep.subr.bf16.mxu0 %v1444_v28  ;;  %1072 = vmatprep.subr.bf16.mxu1 %v1446_v29  ;;  %v1420_v52 = vcombine.high %v191_v46, %v195_v47  ;;  %v1422_v53 = vcombine.high %v192_v48, %v196_v49  ;;  %v183_v54 = vld [vmem:[%s2211_s1] sm:$0xff]  ;;  %v184_v57 = vld [vmem:[%s2211_s1 + $0x8] sm:$0xff]  ;;  %v1419_v59 = vcombine.low %v191_v46, %v195_v47 }
  0x1a   : > { %v187_v55 = vld [vmem:[%s2211_s1 + $0x20] sm:$0xff]  ;;  %v188_v58 = vld [vmem:[%s2211_s1 + $0x28] sm:$0xff]  ;;  %v1421_v60 = vcombine.low %v192_v48, %v196_v49 }
  0x1b   : > { %v1705_v56 = vld [vmem:[%s1696_s30 + $0x4] ss:$8 sps:$4 sm:$0xff]   ;;  %v1412_v61 = vcombine.high %v183_v54, %v187_v55  ;;  %v1414_v62 = vcombine.high %v184_v57, %v188_v58  ;;  %v1411_v3 = vcombine.low %v183_v54, %v187_v55  ;;  %v1413_v4 = vcombine.low %v184_v57, %v188_v58 }
  0x1c   : > { %1020 = vmatpush1.bf16.msra.mxu0 %v1443_v34  ;;  %1073 = vmatpush1.bf16.msra.mxu1 %v1445_v35  ;;  %v303_v63 = vld [vmem:[%s2211_s1 + $0x3c0] sm:$0xff]  ;;  %v304_v1 = vld [vmem:[%s2211_s1 + $0x3c8] sm:$0xff] }
  0x1d   : > { %1021 = vmatprep.subr.bf16.mxu0 %v1436_v36  ;;  %1074 = vmatprep.subr.bf16.mxu1 %v1438_v37  ;;  %v307_v0 = vld [vmem:[%s2211_s1 + $0x3e0] sm:$0xff]  ;;  %v308_v2 = vld [vmem:[%s2211_s1 + $0x3e8] sm:$0xff] }
  0x1e   : > { %1045 = vmatprep.mubr.bf16.mxu0 %v1705_v56  ;;  %1098 = vmatprep.mubr.bf16.mxu1 %v1705_v56  ;;  %v1532_v5 = vcombine.high %v303_v63, %v307_v0  ;;  %v1534_v6 = vcombine.high %v304_v1, %v308_v2  ;;  %v295_v7 = vld [vmem:[%s2211_s1 + $0x380] sm:$0xff]  ;;  %v296_v9 = vld [vmem:[%s2211_s1 + $0x388] sm:$0xff]  ;;  %v1531_v11 = vcombine.low %v303_v63, %v307_v0  ;;  %v241_v0 = vld [vmem:[%s2211_s1 + $0x1d0] sm:$0xff] }
  0x1f   : > { %v299_v8 = vld [vmem:[%s2211_s1 + $0x3a0] sm:$0xff]  ;;  %v300_v10 = vld [vmem:[%s2211_s1 + $0x3a8] sm:$0xff]  ;;  %v1533_v12 = vcombine.low %v304_v1, %v308_v2  ;;  %v245_v1 = vld [vmem:[%s2211_s1 + $0x1f0] sm:$0xff] }
  0x20   : > { %1022 = vmatpush1.bf16.msra.mxu0 %v1435_v42  ;;  %1075 = vmatpush1.bf16.msra.mxu1 %v1437_v43  ;;  %v1524_v13 = vcombine.high %v295_v7, %v299_v8  ;;  %v1526_v14 = vcombine.high %v296_v9, %v300_v10  ;;  %v287_v15 = vld [vmem:[%s2211_s1 + $0x340] sm:$0xff]  ;;  %v288_v17 = vld [vmem:[%s2211_s1 + $0x348] sm:$0xff]  ;;  %v1523_v19 = vcombine.low %v295_v7, %v299_v8  ;;  %v242_v2 = vld [vmem:[%s2211_s1 + $0x1d8] sm:$0xff] }
  0x21   : > { %1023 = vmatprep.subr.bf16.mxu0 %v1428_v44  ;;  %1076 = vmatprep.subr.bf16.mxu1 %v1430_v45  ;;  %v291_v16 = vld [vmem:[%s2211_s1 + $0x360] sm:$0xff]  ;;  %v292_v18 = vld [vmem:[%s2211_s1 + $0x368] sm:$0xff]  ;;  %v1525_v20 = vcombine.low %v296_v9, %v300_v10  ;;  %v233_v8 = vld [vmem:[%s2211_s1 + $0x190] sm:$0xff] }
  0x22   : > { %v1516_v21 = vcombine.high %v287_v15, %v291_v16  ;;  %v1518_v22 = vcombine.high %v288_v17, %v292_v18  ;;  %v279_v23 = vld [vmem:[%s2211_s1 + $0x300] sm:$0xff]  ;;  %v280_v25 = vld [vmem:[%s2211_s1 + $0x308] sm:$0xff]  ;;  %v1515_v27 = vcombine.low %v287_v15, %v291_v16  ;;  %v1517_v28 = vcombine.low %v288_v17, %v292_v18  ;;  %v237_v9 = vld [vmem:[%s2211_s1 + $0x1b0] sm:$0xff] }
  0x23   : > { %v283_v24 = vld [vmem:[%s2211_s1 + $0x320] sm:$0xff]  ;;  %v284_v26 = vld [vmem:[%s2211_s1 + $0x328] sm:$0xff]  ;;  %v1464_v15 = vcombine.high %v233_v8, %v237_v9  ;;  %v225_v17 = vld [vmem:[%s2211_s1 + $0x150] sm:$0xff] }
  0x24   : > { %1024 = vmatpush1.bf16.msra.mxu0 %v1427_v50  ;;  %1077 = vmatpush1.bf16.msra.mxu1 %v1429_v51  ;;  %v1508_v29 = vcombine.high %v279_v23, %v283_v24  ;;  %v1510_v30 = vcombine.high %v280_v25, %v284_v26  ;;  %v271_v31 = vld [vmem:[%s2211_s1 + $0x2c0] sm:$0xff]  ;;  %v272_v33 = vld [vmem:[%s2211_s1 + $0x2c8] sm:$0xff]  ;;  %v1507_v35 = vcombine.low %v279_v23, %v283_v24  ;;  %v229_v18 = vld [vmem:[%s2211_s1 + $0x170] sm:$0xff] }
  0x25   : > { %1025 = vmatprep.subr.bf16.mxu0 %v1420_v52  ;;  %1078 = vmatprep.subr.bf16.mxu1 %v1422_v53  ;;  %v275_v32 = vld [vmem:[%s2211_s1 + $0x2e0] sm:$0xff]  ;;  %v276_v34 = vld [vmem:[%s2211_s1 + $0x2e8] sm:$0xff]  ;;  %v1509_v36 = vcombine.low %v280_v25, %v284_v26  ;;  %v1456_v24 = vcombine.high %v225_v17, %v229_v18  ;;  %v217_v26 = vld [vmem:[%s2211_s1 + $0x110] sm:$0xff] }
  0x26   : > { %v1500_v37 = vcombine.high %v271_v31, %v275_v32  ;;  %v1502_v38 = vcombine.high %v272_v33, %v276_v34  ;;  %v263_v39 = vld [vmem:[%s2211_s1 + $0x280] sm:$0xff]  ;;  %v264_v41 = vld [vmem:[%s2211_s1 + $0x288] sm:$0xff]  ;;  %v1499_v43 = vcombine.low %v271_v31, %v275_v32  ;;  %v1501_v44 = vcombine.low %v272_v33, %v276_v34 }
  0x27   : > { %v267_v40 = vld [vmem:[%s2211_s1 + $0x2a0] sm:$0xff]  ;;  %v268_v42 = vld [vmem:[%s2211_s1 + $0x2a8] sm:$0xff]  ;;  %v1455_v31 = vcombine.low %v225_v17, %v229_v18 }
  0x28   : > { %1026 = vmatpush1.bf16.msra.mxu0 %v1419_v59  ;;  %1079 = vmatpush1.bf16.msra.mxu1 %v1421_v60  ;;  %v1492_v45 = vcombine.high %v263_v39, %v267_v40  ;;  %v1494_v46 = vcombine.high %v264_v41, %v268_v42  ;;  %v255_v47 = vld [vmem:[%s2211_s1 + $0x240] sm:$0xff]  ;;  %v256_v49 = vld [vmem:[%s2211_s1 + $0x248] sm:$0xff]  ;;  %v1491_v51 = vcombine.low %v263_v39, %v267_v40 }
  0x29   : > { %1027 = vmatprep.subr.bf16.mxu0 %v1412_v61  ;;  %1080 = vmatprep.subr.bf16.mxu1 %v1414_v62  ;;  %v259_v48 = vld [vmem:[%s2211_s1 + $0x260] sm:$0xff]  ;;  %v260_v50 = vld [vmem:[%s2211_s1 + $0x268] sm:$0xff]  ;;  %v1493_v52 = vcombine.low %v264_v41, %v268_v42 }
  0x2a   : > { %v1484_v53 = vcombine.high %v255_v47, %v259_v48  ;;  %v1486_v54 = vcombine.high %v256_v49, %v260_v50  ;;  %v247_v55 = vld [vmem:[%s2211_s1 + $0x200] sm:$0xff]  ;;  %v248_v58 = vld [vmem:[%s2211_s1 + $0x208] sm:$0xff]  ;;  %v1483_v60 = vcombine.low %v255_v47, %v259_v48  ;;  %v1485_v61 = vcombine.low %v256_v49, %v260_v50 }
  0x2b   : > { %v251_v57 = vld [vmem:[%s2211_s1 + $0x220] sm:$0xff]  ;;  %v252_v59 = vld [vmem:[%s2211_s1 + $0x228] sm:$0xff] }
  0x2c   : > { %1028 = vmatpush1.bf16.msra.mxu0 %v1411_v3  ;;  %1081 = vmatpush1.bf16.msra.mxu1 %v1413_v4  ;;  %v1476_v62 = vcombine.high %v247_v55, %v251_v57  ;;  %v1478_v63 = vcombine.high %v248_v58, %v252_v59  ;;  %v246_v3 = vld [vmem:[%s2211_s1 + $0x1f8] sm:$0xff]  ;;  %v1475_v4 = vcombine.low %v247_v55, %v251_v57  ;;  %v1830_v10 = vld [vmem:[%s1696_s30] ss:$8 sps:$4 sm:$0xff]  }
  0x2d   : > { %1029 = vmatprep.subr.bf16.mxu0 %v1532_v5  ;;  %1082 = vmatprep.subr.bf16.mxu1 %v1534_v6  ;;  %v1477_v5 = vcombine.low %v248_v58, %v252_v59  ;;  %v1472_v6 = vcombine.high %v241_v0, %v245_v1  ;;  %v1474_v7 = vcombine.high %v242_v2, %v246_v3  ;;  %v185_v59 = vld [vmem:[%s2211_s1 + $0x10] sm:$0xff] }
  0x30   : > { %1030 = vmatpush2.bf16.msra.mxu0 %v1531_v11  ;;  %1083 = vmatpush2.bf16.msra.mxu1 %v1533_v12  ;;  %v234_v11 = vld [vmem:[%s2211_s1 + $0x198] sm:$0xff] }
  0x31   : > { %1031 = vmatprep.subr.bf16.mxu0 %v1524_v13  ;;  %1084 = vmatprep.subr.bf16.mxu1 %v1526_v14  ;;  %v238_v12 = vld [vmem:[%s2211_s1 + $0x1b8] sm:$0xff]  ;;  %v1471_v13 = vcombine.low %v241_v0, %v245_v1  ;;  %v1473_v14 = vcombine.low %v242_v2, %v246_v3  ;;  %v305_v3 = vld [vmem:[%s2211_s1 + $0x3d0] sm:$0xff] }
  0x32   : > { %v1466_v16 = vcombine.high %v234_v11, %v238_v12  ;;  %v1465_v23 = vcombine.low %v234_v11, %v238_v12  ;;  %v297_v12 = vld [vmem:[%s2211_s1 + $0x390] sm:$0xff] }
  0x34   : > { %1032 = vmatpush2.bf16.msra.mxu0 %v1523_v19  ;;  %1085 = vmatpush2.bf16.msra.mxu1 %v1525_v20  ;;  %v1845_v19 = vld [vmem:[%s1696_s30 + $0x14] ss:$8 sps:$4 sm:$0xff]  }
  0x35   : > { %1033 = vmatprep.subr.bf16.mxu0 %v1516_v21  ;;  %1086 = vmatprep.subr.bf16.mxu1 %v1518_v22  ;;  %v226_v20 = vld [vmem:[%s2211_s1 + $0x158] sm:$0xff]  ;;  %v1463_v22 = vcombine.low %v233_v8, %v237_v9 }
  0x36   : > { %v230_v21 = vld [vmem:[%s2211_s1 + $0x178] sm:$0xff] }
  0x37   : > { %v1458_v25 = vcombine.high %v226_v20, %v230_v21  ;;  %v1457_v32 = vcombine.low %v226_v20, %v230_v21  ;;  %v289_v21 = vld [vmem:[%s2211_s1 + $0x350] sm:$0xff] }
  0x38   : > { %1034 = vmatpush2.bf16.msra.mxu0 %v1515_v27  ;;  %1087 = vmatpush2.bf16.msra.mxu1 %v1517_v28  ;;  %v221_v27 = vld [vmem:[%s2211_s1 + $0x130] sm:$0xff]  ;;  %v218_v28 = vld [vmem:[%s2211_s1 + $0x118] sm:$0xff] }
  0x39   : > { %1035 = vmatprep.subr.bf16.mxu0 %v1508_v29  ;;  %1088 = vmatprep.subr.bf16.mxu1 %v1510_v30  ;;  %v222_v29 = vld [vmem:[%s2211_s1 + $0x138] sm:$0xff]  ;;  %v1448_v33 = vcombine.high %v217_v26, %v221_v27  ;;  %v1447_v39 = vcombine.low %v217_v26, %v221_v27 }
  0x3a   : > { %v1870_v30 = vld [vmem:[%s1696_s30 + $0x10] ss:$8 sps:$4 sm:$0xff]   ;;  %v1450_v34 = vcombine.high %v218_v28, %v222_v29  ;;  %v1449_v40 = vcombine.low %v218_v28, %v222_v29 }
  0x3b   : > { %v281_v29 = vld [vmem:[%s2211_s1 + $0x310] sm:$0xff] }
  0x3c   : > { %1036 = vmatpush2.bf16.msra.mxu0 %v1507_v35  ;;  %1089 = vmatpush2.bf16.msra.mxu1 %v1509_v36  ;;  %v209_v35 = vld [vmem:[%s2211_s1 + $0xd0] sm:$0xff] }
  0x3d   : > { %1037 = vmatprep.subr.bf16.mxu0 %v1500_v37  ;;  %1090 = vmatprep.subr.bf16.mxu1 %v1502_v38  ;;  %v213_v36 = vld [vmem:[%s2211_s1 + $0xf0] sm:$0xff]  ;;  %v210_v37 = vld [vmem:[%s2211_s1 + $0xd8] sm:$0xff] }
  0x3e   : > { %v214_v38 = vld [vmem:[%s2211_s1 + $0xf8] sm:$0xff]  ;;  %v1440_v41 = vcombine.high %v209_v35, %v213_v36  ;;  %v1439_v47 = vcombine.low %v209_v35, %v213_v36 }
  0x3f   : > { %v1442_v42 = vcombine.high %v210_v37, %v214_v38  ;;  %v1441_v48 = vcombine.low %v210_v37, %v214_v38  ;;  %v273_v38 = vld [vmem:[%s2211_s1 + $0x2d0] sm:$0xff] }
  0x40   : > { %1038 = vmatpush2.bf16.msra.mxu0 %v1499_v43  ;;  %1091 = vmatpush2.bf16.msra.mxu1 %v1501_v44  ;;  %v201_v43 = vld [vmem:[%s2211_s1 + $0x90] sm:$0xff] }
  0x41   : > { %1039 = vmatprep.subr.bf16.mxu0 %v1492_v45  ;;  %1092 = vmatprep.subr.bf16.mxu1 %v1494_v46  ;;  %v205_v44 = vld [vmem:[%s2211_s1 + $0xb0] sm:$0xff]  ;;  %v202_v45 = vld [vmem:[%s2211_s1 + $0x98] sm:$0xff] }
  0x42   : > { %v206_v46 = vld [vmem:[%s2211_s1 + $0xb8] sm:$0xff]  ;;  %v1432_v49 = vcombine.high %v201_v43, %v205_v44 }
  0x43   : > { %v1434_v50 = vcombine.high %v202_v45, %v206_v46  ;;  %v1433_v55 = vcombine.low %v202_v45, %v206_v46  ;;  %v265_v46 = vld [vmem:[%s2211_s1 + $0x290] sm:$0xff] }
  0x44   : > { %1040 = vmatpush2.bf16.msra.mxu0 %v1491_v51  ;;  %1093 = vmatpush2.bf16.msra.mxu1 %v1493_v52  ;;  %v193_v51 = vld [vmem:[%s2211_s1 + $0x50] sm:$0xff] }
  0x45   : > { %1041 = vmatprep.subr.bf16.mxu0 %v1484_v53  ;;  %1094 = vmatprep.subr.bf16.mxu1 %v1486_v54  ;;  %v197_v52 = vld [vmem:[%s2211_s1 + $0x70] sm:$0xff]  ;;  %v198_v53 = vld [vmem:[%s2211_s1 + $0x78] sm:$0xff]  ;;  %v1431_v54 = vcombine.low %v201_v43, %v205_v44 }
  0x46   : > { %v1424_v57 = vcombine.high %v193_v51, %v197_v52 }
  0x48   : > { %1042 = vmatpush2.bf16.msra.mxu0 %v1483_v60  ;;  %1095 = vmatpush2.bf16.msra.mxu1 %v1485_v61  ;;  %v189_v60 = vld [vmem:[%s2211_s1 + $0x30] sm:$0xff]  ;;  %v186_v61 = vld [vmem:[%s2211_s1 + $0x18] sm:$0xff] }
  0x49   : > { %1043 = vmatprep.subr.bf16.mxu0 %v1476_v62  ;;  %1096 = vmatprep.subr.bf16.mxu1 %v1478_v63  ;;  %v190_v62 = vld [vmem:[%s2211_s1 + $0x38] sm:$0xff]  ;;  %v1423_v63 = vcombine.low %v193_v51, %v197_v52  ;;  %v1416_v1 = vcombine.high %v185_v59, %v189_v60 }
  0x4a   : > { %v1418_v2 = vcombine.high %v186_v61, %v190_v62  ;;  %v1417_v8 = vcombine.low %v186_v61, %v190_v62  ;;  %v249_v62 = vld [vmem:[%s2211_s1 + $0x210] sm:$0xff] }
  0x4c   : > { %1044 = vmatpush2.bf16.msra.mxu0 %v1475_v4  ;;  %1097 = vmatpush2.bf16.msra.mxu1 %v1477_v5  ;;  %v309_v4 = vld [vmem:[%s2211_s1 + $0x3f0] sm:$0xff]  ;;  %v306_v5 = vld [vmem:[%s2211_s1 + $0x3d8] sm:$0xff] }
  0x4d   : > { %1119 = vmatprep.subr.bf16.mxu0 %v1472_v6  ;;  %1172 = vmatprep.subr.bf16.mxu1 %v1474_v7  ;;  %v310_v6 = vld [vmem:[%s2211_s1 + $0x3f8] sm:$0xff]  ;;  %v1415_v7 = vcombine.low %v185_v59, %v189_v60  ;;  %v1536_v9 = vcombine.high %v305_v3, %v309_v4 }
  0x4e   : > { %v1538_v11 = vcombine.high %v306_v5, %v310_v6  ;;  %v1537_v17 = vcombine.low %v306_v5, %v310_v6 }
  0x4f   : > { %1046 = vmatmul.mubr.bf16.vlgmr.msra.gmra.mxu0 %v1830_v10  ;;  %1099 = vmatmul.mubr.bf16.vlgmr.msra.gmra.mxu1 %v1830_v10 }
  0x50   : > { %1120 = vmatpush1.bf16.msra.mxu0 %v1471_v13  ;;  %1173 = vmatpush1.bf16.msra.mxu1 %v1473_v14  ;;  %v301_v13 = vld [vmem:[%s2211_s1 + $0x3b0] sm:$0xff]  ;;  %v298_v14 = vld [vmem:[%s2211_s1 + $0x398] sm:$0xff] }
  0x51   : > { %1121 = vmatprep.subr.bf16.mxu0 %v1464_v15  ;;  %1174 = vmatprep.subr.bf16.mxu1 %v1466_v16  ;;  %v302_v15 = vld [vmem:[%s2211_s1 + $0x3b8] sm:$0xff]  ;;  %v1535_v16 = vcombine.low %v305_v3, %v309_v4  ;;  %v1528_v18 = vcombine.high %v297_v12, %v301_v13 }
  0x52   : > { %1055 = vmatprep.mubr.bf16.mxu0 %v1845_v19  ;;  %1108 = vmatprep.mubr.bf16.mxu1 %v1845_v19  ;;  %v1530_v20 = vcombine.high %v298_v14, %v302_v15  ;;  %v1529_v26 = vcombine.low %v298_v14, %v302_v15 }
  0x54   : > { %1122 = vmatpush1.bf16.msra.mxu0 %v1463_v22  ;;  %1175 = vmatpush1.bf16.msra.mxu1 %v1465_v23  ;;  %v293_v22 = vld [vmem:[%s2211_s1 + $0x370] sm:$0xff]  ;;  %v290_v23 = vld [vmem:[%s2211_s1 + $0x358] sm:$0xff] }
  0x55   : > { %1123 = vmatprep.subr.bf16.mxu0 %v1456_v24  ;;  %1176 = vmatprep.subr.bf16.mxu1 %v1458_v25  ;;  %v294_v24 = vld [vmem:[%s2211_s1 + $0x378] sm:$0xff]  ;;  %v1527_v25 = vcombine.low %v297_v12, %v301_v13  ;;  %v1520_v27 = vcombine.high %v289_v21, %v293_v22  ;;  %v311_v12 = vld [vmem:[%s2212_s2] sm:$0xff] }
  0x56   : > { %v1522_v28 = vcombine.high %v290_v23, %v294_v24  ;;  %v1521_v35 = vcombine.low %v290_v23, %v294_v24 }
  0x57   : > { %1056 = vmatmul.mubr.bf16.gmra.mxu0 %v1870_v30  ;;  %1109 = vmatmul.mubr.bf16.gmra.mxu1 %v1870_v30 }
  0x58   : > { %1124 = vmatpush1.bf16.msra.mxu0 %v1455_v31  ;;  %1177 = vmatpush1.bf16.msra.mxu1 %v1457_v32  ;;  %v285_v31 = vld [vmem:[%s2211_s1 + $0x330] sm:$0xff]  ;;  %v282_v32 = vld [vmem:[%s2211_s1 + $0x318] sm:$0xff] }
  0x59   : > { %1125 = vmatprep.subr.bf16.mxu0 %v1448_v33  ;;  %1178 = vmatprep.subr.bf16.mxu1 %v1450_v34  ;;  %v286_v33 = vld [vmem:[%s2211_s1 + $0x338] sm:$0xff]  ;;  %v1519_v34 = vcombine.low %v289_v21, %v293_v22  ;;  %v1512_v36 = vcombine.high %v281_v29, %v285_v31 }
  0x5a   : > { %1151 = vmatprep.mubr.bf16.mxu0 %v1705_v56  ;;  %1204 = vmatprep.mubr.bf16.mxu1 %v1705_v56  ;;  %v194_v56 = vld [vmem:[%s2211_s1 + $0x58] sm:$0xff]  ;;  %v1514_v37 = vcombine.high %v282_v32, %v286_v33  ;;  %v1513_v43 = vcombine.low %v282_v32, %v286_v33 }
  0x5b   : > { %v1426_v58 = vcombine.high %v194_v56, %v198_v53  ;;  %v1425_v0 = vcombine.low %v194_v56, %v198_v53  ;;  %v257_v53 = vld [vmem:[%s2211_s1 + $0x250] sm:$0xff] }
  0x5c   : > { %1126 = vmatpush1.bf16.msra.mxu0 %v1447_v39  ;;  %1179 = vmatpush1.bf16.msra.mxu1 %v1449_v40  ;;  %v277_v39 = vld [vmem:[%s2211_s1 + $0x2f0] sm:$0xff]  ;;  %v274_v40 = vld [vmem:[%s2211_s1 + $0x2d8] sm:$0xff] }
  0x5d   : > { %1127 = vmatprep.subr.bf16.mxu0 %v1440_v41  ;;  %1180 = vmatprep.subr.bf16.mxu1 %v1442_v42  ;;  %v278_v41 = vld [vmem:[%s2211_s1 + $0x2f8] sm:$0xff]  ;;  %v1511_v42 = vcombine.low %v281_v29, %v285_v31  ;;  %v1504_v44 = vcombine.high %v273_v38, %v277_v39 }
  0x5e   : > { %v1506_v45 = vcombine.high %v274_v40, %v278_v41  ;;  %v1505_v51 = vcombine.low %v274_v40, %v278_v41 }
  0x60   : > { %1128 = vmatpush1.bf16.msra.mxu0 %v1439_v47  ;;  %1181 = vmatpush1.bf16.msra.mxu1 %v1441_v48  ;;  %v269_v47 = vld [vmem:[%s2211_s1 + $0x2b0] sm:$0xff]  ;;  %v266_v48 = vld [vmem:[%s2211_s1 + $0x298] sm:$0xff] }
  0x61   : > { %1129 = vmatprep.subr.bf16.mxu0 %v1432_v49  ;;  %1182 = vmatprep.subr.bf16.mxu1 %v1434_v50  ;;  %v270_v49 = vld [vmem:[%s2211_s1 + $0x2b8] sm:$0xff]  ;;  %v1503_v50 = vcombine.low %v273_v38, %v277_v39  ;;  %v1496_v52 = vcombine.high %v265_v46, %v269_v47 }
  0x62   : > { %v1498_v56 = vcombine.high %v266_v48, %v270_v49  ;;  %v1497_v59 = vcombine.low %v266_v48, %v270_v49 }
  0x64   : > { %1130 = vmatpush1.bf16.msra.mxu0 %v1431_v54  ;;  %1183 = vmatpush1.bf16.msra.mxu1 %v1433_v55  ;;  %v261_v54 = vld [vmem:[%s2211_s1 + $0x270] sm:$0xff]  ;;  %v258_v55 = vld [vmem:[%s2211_s1 + $0x258] sm:$0xff] }
  0x65   : > { %1131 = vmatprep.subr.bf16.mxu0 %v1424_v57  ;;  %1184 = vmatprep.subr.bf16.mxu1 %v1426_v58  ;;  %v262_v57 = vld [vmem:[%s2211_s1 + $0x278] sm:$0xff]  ;;  %v1495_v58 = vcombine.low %v265_v46, %v269_v47  ;;  %v1488_v60 = vcombine.high %v257_v53, %v261_v54 }
  0x66   : > { %v1490_v61 = vcombine.high %v258_v55, %v262_v57  ;;  %v1489_v3 = vcombine.low %v258_v55, %v262_v57 }
  0x68   : > { %1132 = vmatpush1.bf16.msra.mxu0 %v1423_v63  ;;  %1185 = vmatpush1.bf16.msra.mxu1 %v1425_v0  ;;  %v253_v63 = vld [vmem:[%s2211_s1 + $0x230] sm:$0xff]  ;;  %v250_v0 = vld [vmem:[%s2211_s1 + $0x218] sm:$0xff] }
  0x69   : > { %1133 = vmatprep.subr.bf16.mxu0 %v1416_v1  ;;  %1186 = vmatprep.subr.bf16.mxu1 %v1418_v2  ;;  %v254_v1 = vld [vmem:[%s2211_s1 + $0x238] sm:$0xff]  ;;  %v1487_v2 = vcombine.low %v257_v53, %v261_v54  ;;  %v1480_v4 = vcombine.high %v249_v62, %v253_v63  ;;  %v1479_v6 = vcombine.low %v249_v62, %v253_v63 }
  0x6a   : > { %v1482_v5 = vcombine.high %v250_v0, %v254_v1 }
  0x6c   : > { %1134 = vmatpush1.bf16.msra.mxu0 %v1415_v7  ;;  %1187 = vmatpush1.bf16.msra.mxu1 %v1417_v8  ;;  %v1481_v7 = vcombine.low %v250_v0, %v254_v1  ;;  %v313_v8 = vlaneseq }
  0x6d   : > { %1135 = vmatprep.subr.bf16.mxu0 %v1536_v9  ;;  %1188 = vmatprep.subr.bf16.mxu1 %v1538_v11 }
  0x6e   : > { %v314_v9 = vshrl.u32 %v313_v8, 7 }
  0x70   : > { %1136 = vmatpush2.bf16.msra.mxu0 %v1535_v16  ;;  %1189 = vmatpush2.bf16.msra.mxu1 %v1537_v17  ;;  %v315_v11 = vsub.s32 0, %v314_v9  ;;  %v323_v13 = vsub.s32 2, %v314_v9  ;;  %v319_v14 = vsub.s32 1, %v314_v9  ;;  %v327_v15 = vsub.s32 3, %v314_v9 }
  0x71   : > { %1137 = vmatprep.subr.bf16.mxu0 %v1528_v18  ;;  %1190 = vmatprep.subr.bf16.mxu1 %v1530_v20  ;;  %v343_v53 = vsub.s32 7, %v314_v9 }
  0x72   : > { %v316_v16 = vrot.slane %v311_v12, %v315_v11  ;;  %v320_v17 = vrot.slane %v311_v12, %v319_v14  ;;  %v328_v20 = vrot.slane %v311_v12, %v327_v15 }
  0x74   : > { %1138 = vmatpush2.bf16.msra.mxu0 %v1527_v25  ;;  %1191 = vmatpush2.bf16.msra.mxu1 %v1529_v26 }
  0x75   : > { %1139 = vmatprep.subr.bf16.mxu0 %v1520_v27  ;;  %1192 = vmatprep.subr.bf16.mxu1 %v1522_v28 }
  0x78   : > { %1140 = vmatpush2.bf16.msra.mxu0 %v1519_v34  ;;  %1193 = vmatpush2.bf16.msra.mxu1 %v1521_v35 }
  0x79   : > { %1141 = vmatprep.subr.bf16.mxu0 %v1512_v36  ;;  %1194 = vmatprep.subr.bf16.mxu1 %v1514_v37 }
  0x7c   : > { %1142 = vmatpush2.bf16.msra.mxu0 %v1511_v42  ;;  %1195 = vmatpush2.bf16.msra.mxu1 %v1513_v43 }
  0x7d   : > { %1143 = vmatprep.subr.bf16.mxu0 %v1504_v44  ;;  %1196 = vmatprep.subr.bf16.mxu1 %v1506_v45 }
  0x80   : > { %1144 = vmatpush2.bf16.msra.mxu0 %v1503_v50  ;;  %1197 = vmatpush2.bf16.msra.mxu1 %v1505_v51  ;;  %v331_v51 = vsub.s32 4, %v314_v9 }
  0x81   : > { %1145 = vmatprep.subr.bf16.mxu0 %v1496_v52  ;;  %1198 = vmatprep.subr.bf16.mxu1 %v1498_v56  ;;  %v339_v52 = vsub.s32 6, %v314_v9  ;;  %v335_v56 = vsub.s32 5, %v314_v9 }
  0x82   : > { %v332_v54 = vrot.slane %v311_v12, %v331_v51 }
  0x83   : > { %v340_v55 = vrot.slane %v311_v12, %v339_v52  ;;  %v336_v57 = vrot.slane %v311_v12, %v335_v56 }
  0x84   : > { %1146 = vmatpush2.bf16.msra.mxu0 %v1495_v58  ;;  %1199 = vmatpush2.bf16.msra.mxu1 %v1497_v59  ;;  %v344_v59 = vrot.slane %v311_v12, %v343_v53 }
  0x85   : > { %1147 = vmatprep.subr.bf16.mxu0 %v1488_v60  ;;  %1200 = vmatprep.subr.bf16.mxu1 %v1490_v61 }
  0x88   : > { %1148 = vmatpush2.bf16.msra.mxu0 %v1487_v2  ;;  %1201 = vmatpush2.bf16.msra.mxu1 %v1489_v3 }
  0x89   : > { %1149 = vmatprep.subr.bf16.mxu0 %v1480_v4  ;;  %1202 = vmatprep.subr.bf16.mxu1 %v1482_v5 }
  0x8c   : > { %1150 = vmatpush2.bf16.msra.mxu0 %v1479_v6  ;;  %1203 = vmatpush2.bf16.msra.mxu1 %v1481_v7 }
  0x8f   : > { %1152 = vmatmul.mubr.bf16.vlgmr.msra.gmra.mxu0 %v1830_v10  ;;  %1205 = vmatmul.mubr.bf16.vlgmr.msra.gmra.mxu1 %v1830_v10  ;;  %v324_v10 = vrot.slane %v311_v12, %v323_v13 }
  0x90   : > { %1161 = vmatprep.mubr.bf16.mxu0 %v1845_v19  ;;  %1214 = vmatprep.mubr.bf16.mxu1 %v1845_v19 }
  0x97   : > { %1162 = vmatmul.mubr.bf16.gmra.mxu0 %v1870_v30  ;;  %1215 = vmatmul.mubr.bf16.gmra.mxu1 %v1870_v30 }
 0x10f   : > { %v1047_v18 = vpop.f32.mrf.mxu0  ;;  %v1100_v21 = vpop.f32.mrf.mxu1 }
 0x110   : > { %v2029_v19 = vadd.f32 %v1047_v18, %v316_v16  ;;  %v2031_v22 = vadd.f32 %v1100_v21, %v324_v10 }
 0x111   : > { %v1049_v30 = vpop.f32.mrf.mxu0  ;;  %v1102_v24 = vpop.f32.mrf.mxu1 }
 0x112   : > { %v2033_v23 = vadd.f32 %v1049_v30, %v320_v17  ;;  %v2035_v25 = vadd.f32 %v1102_v24, %v328_v20 }
 0x113   : > { %v1051_v26 = vpop.f32.mrf.mxu0  ;;  %v1104_v28 = vpop.f32.mrf.mxu1 }
 0x114   : > { %v2037_v27 = vadd.f32 %v1051_v26, %v316_v16  ;;  %v2039_v29 = vadd.f32 %v1104_v28, %v324_v10 }
 0x115   : > { %v1053_v31 = vpop.f32.mrf.mxu0  ;;  %v1106_v33 = vpop.f32.mrf.mxu1 }
 0x116   : > { %v2041_v32 = vadd.f32 %v1053_v31, %v320_v17  ;;  %v2043_v34 = vadd.f32 %v1106_v33, %v328_v20 }
 0x117   : > { %v1057_v35 = vpop.f32.mrf.mxu0  ;;  %v1110_v37 = vpop.f32.mrf.mxu1 }
 0x118   : > { %v2045_v36 = vadd.f32 %v1057_v35, %v316_v16  ;;  %v2047_v38 = vadd.f32 %v1110_v37, %v324_v10 }
 0x119   : > { %v1059_v39 = vpop.f32.mrf.mxu0  ;;  %v1112_v41 = vpop.f32.mrf.mxu1 }
 0x11a   : > { %v2049_v40 = vadd.f32 %v1059_v39, %v320_v17  ;;  %v2051_v42 = vadd.f32 %v1112_v41, %v328_v20 }
 0x11b   : > { %v1061_v43 = vpop.f32.mrf.mxu0  ;;  %v1114_v45 = vpop.f32.mrf.mxu1 }
 0x11c   : > { %v2053_v44 = vadd.f32 %v1061_v43, %v316_v16  ;;  %v2055_v46 = vadd.f32 %v1114_v45, %v324_v10 }
 0x11d   : > { %v1063_v47 = vpop.f32.mrf.mxu0  ;;  %v1116_v49 = vpop.f32.mrf.mxu1 }
 0x11e   : > { %v2057_v48 = vadd.f32 %v1063_v47, %v320_v17  ;;  %v2059_v50 = vadd.f32 %v1116_v49, %v328_v20 }
 0x14f   : > { %v1153_v58 = vpop.f32.mrf.mxu0  ;;  %v1206_v61 = vpop.f32.mrf.mxu1 }
 0x150   : > { %v2061_v60 = vadd.f32 %v1153_v58, %v332_v54  ;;  %v2063_v62 = vadd.f32 %v1206_v61, %v340_v55 }
 0x151   : > { %v1155_v63 = vpop.f32.mrf.mxu0  ;;  %v1208_v1 = vpop.f32.mrf.mxu1 }
 0x152   : > { %v2065_v0 = vadd.f32 %v1155_v63, %v336_v57  ;;  %v2067_v2 = vadd.f32 %v1208_v1, %v344_v59 }
 0x153   : > { %v1157_v3 = vpop.f32.mrf.mxu0  ;;  %v1210_v5 = vpop.f32.mrf.mxu1 }
 0x154   : > { %v2069_v4 = vadd.f32 %v1157_v3, %v332_v54  ;;  %v2071_v6 = vadd.f32 %v1210_v5, %v340_v55 }
 0x155   : > { %v1159_v7 = vpop.f32.mrf.mxu0  ;;  %v1212_v9 = vpop.f32.mrf.mxu1 }
 0x156   : > { %v2073_v8 = vadd.f32 %v1159_v7, %v336_v57  ;;  %v2075_v11 = vadd.f32 %v1212_v9, %v344_v59 }
 0x157   : > { %v1163_v12 = vpop.f32.mrf.mxu0  ;;  %v1216_v14 = vpop.f32.mrf.mxu1 }
 0x158   : > { %v2077_v13 = vadd.f32 %v1163_v12, %v332_v54  ;;  %v2079_v15 = vadd.f32 %v1216_v14, %v340_v55 }
 0x159   : > { %v1165_v16 = vpop.f32.mrf.mxu0  ;;  %v1218_v17 = vpop.f32.mrf.mxu1 }
 0x15a   : > { %v2081_v10 = vadd.f32 %v1165_v16, %v336_v57  ;;  %v2083_v18 = vadd.f32 %v1218_v17, %v344_v59  ;;  %1228 = sbr.rel (%p1539_p4) target bundleno = 367 (0x16f), region = 36 }
 0x15b   : > { %v1167_v20 = vpop.f32.mrf.mxu0  ;;  %v1220_v30 = vpop.f32.mrf.mxu1 }
 0x15c   : > { %v2085_v21 = vadd.f32 %v1167_v20, %v332_v54  ;;  %v2087_v24 = vadd.f32 %v1220_v30, %v340_v55 }
 0x15d   : > { %v1169_v26 = vpop.f32.mrf.mxu0  ;;  %v1222_v31 = vpop.f32.mrf.mxu1 }
 0x15e   : > { %v2089_v28 = vadd.f32 %v1169_v26, %v336_v57  ;;  %v2091_v33 = vadd.f32 %v1222_v31, %v344_v59 }
 0x15f   : > { %1270 = vst [vmem:[%s1648_s22] sm:$0xff] %v2029_v19  ;;  %1271 = vst [vmem:[%s1648_s22 + $0x8] sm:$0xff] %v2033_v23  ;;  %v1568_v35 = vmov 0.0  }
 0x160   : > { %1272 = vst [vmem:[%s1648_s22 + $0x10] sm:$0xff] %v2031_v22  ;;  %1273 = vst [vmem:[%s1648_s22 + $0x18] sm:$0xff] %v2035_v25 }
 0x161   : > { %1274 = vst [vmem:[%s1648_s22 + $0x20] sm:$0xff] %v2061_v60  ;;  %1275 = vst [vmem:[%s1648_s22 + $0x28] sm:$0xff] %v2065_v0 }
 0x162   : > { %1276 = vst [vmem:[%s1648_s22 + $0x30] sm:$0xff] %v2063_v62  ;;  %1277 = vst [vmem:[%s1648_s22 + $0x38] sm:$0xff] %v2067_v2 }
 0x163   : > { %1278 = vst [vmem:[%s1648_s22 + $0x40] sm:$0xff] %v2037_v27  ;;  %1279 = vst [vmem:[%s1648_s22 + $0x48] sm:$0xff] %v2041_v32 }
 0x164   : > { %1280 = vst [vmem:[%s1648_s22 + $0x50] sm:$0xff] %v2039_v29  ;;  %1281 = vst [vmem:[%s1648_s22 + $0x58] sm:$0xff] %v2043_v34 }
 0x165   : > { %1282 = vst [vmem:[%s1648_s22 + $0x60] sm:$0xff] %v2069_v4  ;;  %1283 = vst [vmem:[%s1648_s22 + $0x68] sm:$0xff] %v2073_v8 }
 0x166   : > { %1284 = vst [vmem:[%s1648_s22 + $0x70] sm:$0xff] %v2071_v6  ;;  %1285 = vst [vmem:[%s1648_s22 + $0x78] sm:$0xff] %v2075_v11 }
 0x167   : > { %1286 = vst [vmem:[%s1648_s22 + $0x80] sm:$0xff] %v1568_v35  ;;  %1287 = vst [vmem:[%s1648_s22 + $0x88] sm:$0xff] %v1568_v35 }
 0x168   : > { %1288 = vst [vmem:[%s1648_s22 + $0x90] sm:$0xff] %v1568_v35  ;;  %1289 = vst [vmem:[%s1648_s22 + $0x98] sm:$0xff] %v1568_v35 }
 0x169   : > { %1290 = vst [vmem:[%s1648_s22 + $0xa0] sm:$0xff] %v1568_v35  ;;  %1291 = vst [vmem:[%s1648_s22 + $0xa8] sm:$0xff] %v1568_v35 }
 0x16a   : > { %1292 = vst [vmem:[%s1648_s22 + $0xb0] sm:$0xff] %v1568_v35  ;;  %1293 = vst [vmem:[%s1648_s22 + $0xb8] sm:$0xff] %v1568_v35 }
 0x16b   : > { %1294 = vst [vmem:[%s1648_s22 + $0xc0] sm:$0xff] %v1568_v35  ;;  %1295 = vst [vmem:[%s1648_s22 + $0xc8] sm:$0xff] %v1568_v35 }
 0x16c   : > { %1296 = vst [vmem:[%s1648_s22 + $0xd0] sm:$0xff] %v1568_v35  ;;  %1297 = vst [vmem:[%s1648_s22 + $0xd8] sm:$0xff] %v1568_v35 }
 0x16d   : > { %1298 = vst [vmem:[%s1648_s22 + $0xe0] sm:$0xff] %v1568_v35  ;;  %1299 = vst [vmem:[%s1648_s22 + $0xe8] sm:$0xff] %v1568_v35 }
 0x16e   : > { %1300 = vst [vmem:[%s1648_s22 + $0xf0] sm:$0xff] %v1568_v35  ;;  %1301 = vst [vmem:[%s1648_s22 + $0xf8] sm:$0xff] %v1568_v35 }
 0x16f PF: > { %p1540_p5 = scmp.eq.s32.totalorder %s1595_s13, 2 }
 0x171   : > { %1305 = sbr.rel (%p1540_p5) target bundleno = 390 (0x186), region = 40 }
 0x176   : > { %1306 = vst [vmem:[%s1648_s22] sm:$0xff] %v2029_v19  ;;  %1307 = vst [vmem:[%s1648_s22 + $0x8] sm:$0xff] %v2033_v23 }
 0x177   : > { %1308 = vst [vmem:[%s1648_s22 + $0x10] sm:$0xff] %v2031_v22  ;;  %1309 = vst [vmem:[%s1648_s22 + $0x18] sm:$0xff] %v2035_v25 }
 0x178   : > { %1310 = vst [vmem:[%s1648_s22 + $0x20] sm:$0xff] %v2061_v60  ;;  %1311 = vst [vmem:[%s1648_s22 + $0x28] sm:$0xff] %v2065_v0 }
 0x179   : > { %1312 = vst [vmem:[%s1648_s22 + $0x30] sm:$0xff] %v2063_v62  ;;  %1313 = vst [vmem:[%s1648_s22 + $0x38] sm:$0xff] %v2067_v2 }
 0x17a   : > { %1314 = vst [vmem:[%s1648_s22 + $0x40] sm:$0xff] %v2037_v27  ;;  %1315 = vst [vmem:[%s1648_s22 + $0x48] sm:$0xff] %v2041_v32 }
 0x17b   : > { %1316 = vst [vmem:[%s1648_s22 + $0x50] sm:$0xff] %v2039_v29  ;;  %1317 = vst [vmem:[%s1648_s22 + $0x58] sm:$0xff] %v2043_v34 }
 0x17c   : > { %1318 = vst [vmem:[%s1648_s22 + $0x60] sm:$0xff] %v2069_v4  ;;  %1319 = vst [vmem:[%s1648_s22 + $0x68] sm:$0xff] %v2073_v8 }
 0x17d   : > { %1320 = vst [vmem:[%s1648_s22 + $0x70] sm:$0xff] %v2071_v6  ;;  %1321 = vst [vmem:[%s1648_s22 + $0x78] sm:$0xff] %v2075_v11 }
 0x17e   : > { %1322 = vst [vmem:[%s1648_s22 + $0x80] sm:$0xff] %v2045_v36  ;;  %1323 = vst [vmem:[%s1648_s22 + $0x88] sm:$0xff] %v2049_v40 }
 0x17f   : > { %1324 = vst [vmem:[%s1648_s22 + $0x90] sm:$0xff] %v2047_v38  ;;  %1325 = vst [vmem:[%s1648_s22 + $0x98] sm:$0xff] %v2051_v42 }
 0x180   : > { %1326 = vst [vmem:[%s1648_s22 + $0xa0] sm:$0xff] %v2077_v13  ;;  %1327 = vst [vmem:[%s1648_s22 + $0xa8] sm:$0xff] %v2081_v10 }
 0x181   : > { %1328 = vst [vmem:[%s1648_s22 + $0xb0] sm:$0xff] %v2079_v15  ;;  %1329 = vst [vmem:[%s1648_s22 + $0xb8] sm:$0xff] %v2083_v18 }
 0x182   : > { %1330 = vst [vmem:[%s1648_s22 + $0xc0] sm:$0xff] %v2053_v44  ;;  %1331 = vst [vmem:[%s1648_s22 + $0xc8] sm:$0xff] %v2057_v48 }
 0x183   : > { %1332 = vst [vmem:[%s1648_s22 + $0xd0] sm:$0xff] %v2055_v46  ;;  %1333 = vst [vmem:[%s1648_s22 + $0xd8] sm:$0xff] %v2059_v50 }
 0x184   : > { %1334 = vst [vmem:[%s1648_s22 + $0xe0] sm:$0xff] %v2085_v21  ;;  %1335 = vst [vmem:[%s1648_s22 + $0xe8] sm:$0xff] %v2089_v28 }
 0x185   : > { %1336 = vst [vmem:[%s1648_s22 + $0xf0] sm:$0xff] %v2087_v24  ;;  %1337 = vst [vmem:[%s1648_s22 + $0xf8] sm:$0xff] %v2091_v33 }
 0x186 PF: > { %s13_s12 = sadd.s32 1, %s1566_s12  }
 0x187   : > { %p10_p6 = scmp.ge.s32.totalorder %s13_s12, 5  }
 0x189   :  { %12 = sbr.rel (!%p10_p6) target bundleno = 1 (0x1), region = 70 }

// kernel: encoder_forward.7
= control target key start
LH: loop header
LB: loop body
LE: loop exit
PB: predicated region body
PF: predicated region fallthrough
CT: control target
= control target key end

     0   :  { %s2067_s15 = smov 0   ;;  %s2069_s16 = smov 0   ;;  %s2662_s0 = inlined_call_operand.vmem [shape: f32[48,2,1024], index: 0, kind: input, shape index: {}, may-alias: {0,1}]   ;;  %s2663_s1 = inlined_call_operand.vmem [shape: f32[48,2,1024], index: 1, kind: input, shape index: {}, may-alias: {0,1}]   ;;  %s2664_s2 = inlined_call_operand.vmem [shape: bf16[256,1024], index: 2, kind: input, shape index: {}]   ;;  %s2665_s3 = inlined_call_operand.vmem [shape: f32[48,2,128], index: 3, kind: output, shape index: {0}]   ;;  %s2666_s4 = inlined_call_operand.vmem [shape: f32[48,2,128], index: 4, kind: output, shape index: {1}]  }
   0x1   :  { %s2071_s17 = smov 0   ;;  %s2073_s18 = smov 0  }
   0x2   :  { %s2075_s19 = smov 0  }
   0x3 LB: > { %s2093_s20 = sadd.s32 4294967295, %s2018_s19   ;;  %s2096_s21 = sadd.s32 1, %s2018_s19   ;;  %s2018_s19 = sphi %s2075_s19, %s2677_s19   ;;  %s2014_s18 = sphi %s2073_s18, %s2676_s18   ;;  %s2010_s17 = sphi %s2071_s17, %s2675_s17   ;;  %s2006_s16 = sphi %s2069_s16, %s2674_s16   ;;  %s2002_s15 = sphi %s2067_s15, %s2673_s15  }
   0x4   : > { %s19_s22 = ssub.s32 %s2018_s19, %s2096_s21  ;;  %s22_s23 = sadd.s32 1, %s2014_s18 }
   0x5   : > { %p20_p0 = scmp.eq.s32.totalorder %s19_s22, 0  ;;  %p29_p1 = scmp.ne.s32.totalorder %s2014_s18, %s2010_s17 }
   0x6   : > { %p30_p2 = scmp.eq.s32.totalorder %s2018_s19, 0  ;;  %s45_s24 = ssub.s32 2, %s2018_s19 }
   0x7   : > { %s2106_s25 = scalar_select %p20_p0, %s2014_s18, %s22_s23  }
   0x8   : > { %p31_p3 = por %p30_p2, %p29_p1  ;;  %s46_s26 = ssub.s32 2, %s2096_s21 }
   0x9   : > { %s47_s27 = ssub.s32 %s45_s24, %s46_s26  ;;  %s50_s28 = sadd.s32 1, %s2006_s16 }
   0xa   : > { %p48_p4 = scmp.eq.s32.totalorder %s47_s27, 0  ;;  %p57_p5 = scmp.ne.s32.totalorder %s2006_s16, %s2002_s15 }
   0xb   : > { %p1667_p7 = scmp.ge.s32.totalorder %s2018_s19, 3 }
   0xc   : > { %s2115_s29 = scalar_select %p48_p4, %s2006_s16, %s50_s28  }
   0xd   : > { %p2117_p6 = por %p57_p5, %p30_p2  ;;  %161 = sbr.rel (%p1667_p7) target bundleno = 42 (0x2a), region = 20 }
  0x12   : > { %164 = sbr.rel (!%p31_p3) target bundleno = 30 (0x1e), region = 24  ;;  %s166_s5 = sand.u32 (%p31_p3), 1, %s2014_s18  }
  0x13   : > { %s1842_s6 = sshll.u32 (%p31_p3), %s2018_s19, 8  ;;  %s1668_s7 = sshll.u32 (%p31_p3), %s166_s5, 7 }
  0x14   : > { %s2127_s10 = scalar_lea.vmem (%p31_p3), %s2662_s0, %s1842_s6  ;;  %s168_s11 = scalar_lea.vmem (%p31_p3), [#allocation4], %s1668_s7 }
  0x15   : > { %v231_v0 = vld [vmem:[%s2127_s10] sm:$0xff] (%p31_p3)  ;;  %v233_v1 = vld [vmem:[%s2127_s10 + $0x10] sm:$0xff] (%p31_p3) }
  0x16   : > { %v235_v2 = vld [vmem:[%s2127_s10 + $0x20] sm:$0xff] (%p31_p3)  ;;  %232 = vst [vmem:[%s168_s11] sm:$0xff] (%p31_p3), %v231_v0  ;;  %234 = vst [vmem:[%s168_s11 + $0x8] sm:$0xff] (%p31_p3), %v233_v1  ;;  %v237_v3 = vld [vmem:[%s2127_s10 + $0x30] sm:$0xff] (%p31_p3) }
  0x17   : > { %236 = vst [vmem:[%s168_s11 + $0x10] sm:$0xff] %v235_v2  ;;  %v239_v4 = vld [vmem:[%s2127_s10 + $0x40] sm:$0xff]  ;;  %v241_v5 = vld [vmem:[%s2127_s10 + $0x50] sm:$0xff]  ;;  %238 = vst [vmem:[%s168_s11 + $0x18] sm:$0xff] %v237_v3 }
  0x18   : > { %240 = vst [vmem:[%s168_s11 + $0x20] sm:$0xff] %v239_v4  ;;  %242 = vst [vmem:[%s168_s11 + $0x28] sm:$0xff] %v241_v5  ;;  %v243_v6 = vld [vmem:[%s2127_s10 + $0x60] sm:$0xff]  ;;  %v245_v7 = vld [vmem:[%s2127_s10 + $0x70] sm:$0xff] }
  0x19   : > { %v247_v8 = vld [vmem:[%s2127_s10 + $0x80] sm:$0xff]  ;;  %244 = vst [vmem:[%s168_s11 + $0x30] sm:$0xff] %v243_v6  ;;  %246 = vst [vmem:[%s168_s11 + $0x38] sm:$0xff] %v245_v7  ;;  %v249_v9 = vld [vmem:[%s2127_s10 + $0x90] sm:$0xff] }
  0x1a   : > { %248 = vst [vmem:[%s168_s11 + $0x40] sm:$0xff] %v247_v8  ;;  %v251_v10 = vld [vmem:[%s2127_s10 + $0xa0] sm:$0xff]  ;;  %v253_v11 = vld [vmem:[%s2127_s10 + $0xb0] sm:$0xff]  ;;  %250 = vst [vmem:[%s168_s11 + $0x48] sm:$0xff] %v249_v9 }
  0x1b   : > { %252 = vst [vmem:[%s168_s11 + $0x50] sm:$0xff] %v251_v10  ;;  %254 = vst [vmem:[%s168_s11 + $0x58] sm:$0xff] %v253_v11  ;;  %v255_v12 = vld [vmem:[%s2127_s10 + $0xc0] sm:$0xff]  ;;  %v257_v13 = vld [vmem:[%s2127_s10 + $0xd0] sm:$0xff] }
  0x1c   : > { %v259_v14 = vld [vmem:[%s2127_s10 + $0xe0] sm:$0xff]  ;;  %256 = vst [vmem:[%s168_s11 + $0x60] sm:$0xff] %v255_v12  ;;  %258 = vst [vmem:[%s168_s11 + $0x68] sm:$0xff] %v257_v13  ;;  %v261_v15 = vld [vmem:[%s2127_s10 + $0xf0] sm:$0xff] }
  0x1d   : > { %260 = vst [vmem:[%s168_s11 + $0x70] sm:$0xff] %v259_v14  ;;  %262 = vst [vmem:[%s168_s11 + $0x78] sm:$0xff] %v261_v15 }
  0x1e PF: > { %268 = sbr.rel (!%p2117_p6) target bundleno = 42 (0x2a), region = 62  ;;  %s270_s12 = sand.u32 (%p2117_p6), 1, %s2006_s16  }
  0x1f   : > { %s1843_s13 = sshll.u32 (%p2117_p6), %s45_s24, 8  ;;  %s1672_s14 = sshll.u32 (%p2117_p6), %s270_s12, 7 }
  0x20   : > { %s2153_s26 = scalar_lea.vmem (%p2117_p6), %s2663_s1, %s1843_s13  ;;  %s272_s27 = scalar_lea.vmem (%p2117_p6), [#allocation5], %s1672_s14 }
  0x21   : > { %v1675_v16 = vld [vmem:[%s2153_s26 + $0x8] sm:$0xff] (%p2117_p6)  ;;  %v1676_v17 = vld [vmem:[%s2153_s26 + $0x18] sm:$0xff] (%p2117_p6) }
  0x22   : > { %v1677_v18 = vld [vmem:[%s2153_s26 + $0x28] sm:$0xff] (%p2117_p6)  ;;  %338 = vst [vmem:[%s272_s27] sm:$0xff] (%p2117_p6), %v1675_v16  ;;  %340 = vst [vmem:[%s272_s27 + $0x8] sm:$0xff] (%p2117_p6), %v1676_v17  ;;  %v1678_v19 = vld [vmem:[%s2153_s26 + $0x38] sm:$0xff] (%p2117_p6) }
  0x23   : > { %342 = vst [vmem:[%s272_s27 + $0x10] sm:$0xff] %v1677_v18  ;;  %v1679_v20 = vld [vmem:[%s2153_s26 + $0x48] sm:$0xff]  ;;  %v1680_v21 = vld [vmem:[%s2153_s26 + $0x58] sm:$0xff]  ;;  %344 = vst [vmem:[%s272_s27 + $0x18] sm:$0xff] %v1678_v19 }
  0x24   : > { %346 = vst [vmem:[%s272_s27 + $0x20] sm:$0xff] %v1679_v20  ;;  %348 = vst [vmem:[%s272_s27 + $0x28] sm:$0xff] %v1680_v21  ;;  %v1681_v22 = vld [vmem:[%s2153_s26 + $0x68] sm:$0xff]  ;;  %v1682_v23 = vld [vmem:[%s2153_s26 + $0x78] sm:$0xff] }
  0x25   : > { %v1683_v24 = vld [vmem:[%s2153_s26 + $0x88] sm:$0xff]  ;;  %350 = vst [vmem:[%s272_s27 + $0x30] sm:$0xff] %v1681_v22  ;;  %352 = vst [vmem:[%s272_s27 + $0x38] sm:$0xff] %v1682_v23  ;;  %v1684_v25 = vld [vmem:[%s2153_s26 + $0x98] sm:$0xff] }
  0x26   : > { %354 = vst [vmem:[%s272_s27 + $0x40] sm:$0xff] %v1683_v24  ;;  %v1685_v26 = vld [vmem:[%s2153_s26 + $0xa8] sm:$0xff]  ;;  %v1686_v27 = vld [vmem:[%s2153_s26 + $0xb8] sm:$0xff]  ;;  %356 = vst [vmem:[%s272_s27 + $0x48] sm:$0xff] %v1684_v25 }
  0x27   : > { %358 = vst [vmem:[%s272_s27 + $0x50] sm:$0xff] %v1685_v26  ;;  %360 = vst [vmem:[%s272_s27 + $0x58] sm:$0xff] %v1686_v27  ;;  %v1687_v28 = vld [vmem:[%s2153_s26 + $0xc8] sm:$0xff]  ;;  %v1688_v29 = vld [vmem:[%s2153_s26 + $0xd8] sm:$0xff] }
  0x28   : > { %v1689_v30 = vld [vmem:[%s2153_s26 + $0xe8] sm:$0xff]  ;;  %362 = vst [vmem:[%s272_s27 + $0x60] sm:$0xff] %v1687_v28  ;;  %364 = vst [vmem:[%s272_s27 + $0x68] sm:$0xff] %v1688_v29  ;;  %v1690_v31 = vld [vmem:[%s2153_s26 + $0xf8] sm:$0xff] }
  0x29   : > { %366 = vst [vmem:[%s272_s27 + $0x70] sm:$0xff] %v1689_v30  ;;  %368 = vst [vmem:[%s272_s27 + $0x78] sm:$0xff] %v1690_v31 }
  0x2a PF: > { %p1691_p8 = scmp.ge.s32.totalorder %s2018_s19, 1  ;;  %p373_p9 = scmp.lt.s32.totalorder %s2018_s19, 4 }
  0x2c   : > { %p374_p10 = pnand %p1691_p8, %p373_p9 }
  0x2d   : > { %s380_s24 = sand.u32 (!%p374_p10), 1, %s2010_s17   ;;  %s387_s28 = sand.u32 (!%p374_p10), 1, %s2002_s15  }
  0x2e   : > { %377 = sbr.rel (%p374_p10) target bundleno = 459 (0x1cb), region = 100  ;;  %s2175_s30 = sshll.u32 (!%p374_p10), %s380_s24, 7 }
  0x2f   : > { %s2177_s5 = sshll.u32 (!%p374_p10), %s387_s28, 7  ;;  %s1694_s6 = sshll.u32 (!%p374_p10), %s2093_s20, 4 }
  0x30   : > { %s431_s7 = ssub.s32 (!%p374_p10), 2, %s2093_s20  ;;  %p426_p11 = scmp.lt.s32.totalorder (!%p374_p10), %s1694_s6, 47 }
  0x31   : > { %s1696_s8 = sshll.u32 (!%p374_p10), %s431_s7, 4  ;;  %s382_s14 = scalar_lea.vmem (!%p374_p10), [#allocation4], %s2175_s30 }
  0x32   : > { %p433_p12 = scmp.lt.s32.totalorder (!%p374_p10), %s1696_s8, 47  ;;  %s389_s22 = scalar_lea.vmem (!%p374_p10), [#allocation5], %s2177_s5 }
  0x33   : > { %s2679_s6 = smov (!%p426_p11, %s1694_s6), 47  ;;  %p1698_p13 = scmp.ne.s32.totalorder %s2093_s20, 0 }
  0x34   : > { %s2681_s8 = smov (!%p433_p12, %s1696_s8), 47  ;;  %s1695_s19 = sshll.u32 %s2679_s6, 1 }
  0x35   : > { %s2184_s11 = scalar_lea.vmem %s2665_s3, %s1695_s19  ;;  %s1697_s15 = sshll.u32 %s2681_s8, 1 }
  0x36   : > { %s2189_s13 = scalar_lea.vmem %s2666_s4, %s1697_s15  ;;  %442 = sbr.rel (%p1698_p13) target bundleno = 61 (0x3d), region = 112 }
  0x3b   : > { %v2040_v32 = vmov 0.0  }
  0x3c   : > { %443 = vst [vmem:[#allocation2] sm:$0xf] %v2040_v32  ;;  %444 = vst [vmem:[#allocation3] sm:$0xf] %v2040_v32 }
  0x3d PF: > { %s2202_s23 = smov 0  }
  0x43   : > { %v445_v33 = vld [vmem:[#allocation2] sm:$0x3]   ;;  %v446_v34 = vld [vmem:[#allocation3] sm:$0x3]   ;;  %v447_v35 = vld [vmem:[#allocation2 + $0x2] sm:$0x3]  }
  0x44   : > { %v448_v36 = vld [vmem:[#allocation3 + $0x2] sm:$0x3]  }
  0x45 LB: >> { %v518_v37 = vld [vmem:[%s2664_s2 + $0x1c0] sm:$0xff]  ;;  %v519_v39 = vld [vmem:[%s2664_s2 + $0x1c8] sm:$0xff]  ;;  %v2253_v55 = vpack.c.bf16 %v2026_v35, %v2026_v35  ;;  %s1844_s28 = sshll.u32 %s2038_s23, 3  ;;  %s1837_s7 = sshll.u32 %s2038_s23, 1  ;;  %s2038_s23 = sphi %s2202_s23, %s454_s23   ;;  %v2034_v33 = vphi %v445_v33, %v2672_v33   ;;  %v2030_v34 = vphi %v446_v34, %v2671_v34   ;;  %v2026_v35 = vphi %v447_v35, %v2670_v35   ;;  %v2022_v36 = vphi %v448_v36, %v2669_v36  }
  0x46   : >> { %v522_v38 = vld [vmem:[%s2664_s2 + $0x1e0] sm:$0xff]  ;;  %v523_v41 = vld [vmem:[%s2664_s2 + $0x1e8] sm:$0xff]  ;;  %s1396_s6 = scalar_lea.vmem %s382_s14, %s1844_s28 [#allocation4]  ;;  %s459_s8 = ssub.s32 15, %s2038_s23 }
  0x47   : >> { %v1756_v40 = vcombine.high %v518_v37, %v522_v38  ;;  %v1755_v42 = vcombine.low %v518_v37, %v522_v38  ;;  %v510_v43 = vld [vmem:[%s2664_s2 + $0x180] sm:$0xff]  ;;  %v1758_v45 = vcombine.high %v519_v39, %v523_v41  ;;  %v1757_v46 = vcombine.low %v519_v39, %v523_v41  ;;  %v511_v48 = vld [vmem:[%s2664_s2 + $0x188] sm:$0xff]  ;;  %1262 = vmatprep.mubr.bf16.mxu0 %v2253_v55  ;;  %s1511_s19 = scalar_lea.vmem %s2184_s11, %s1837_s7  ;;  %s1845_s9 = sshll.u32 %s459_s8, 3 }
  0x48   : >> { %v514_v44 = vld [vmem:[%s2664_s2 + $0x1a0] sm:$0xff]  ;;  %v515_v49 = vld [vmem:[%s2664_s2 + $0x1a8] sm:$0xff]  ;;  %1303 = vmatprep.mubr.bf16.mxu1 %v2253_v55  ;;  %s1454_s10 = scalar_lea.vmem %s389_s22, %s1845_s9 [#allocation5]  ;;  %s1838_s15 = sshll.u32 %s459_s8, 1 }
  0x49   : >> { %v1748_v47 = vcombine.high %v510_v43, %v514_v44  ;;  %v502_v50 = vld [vmem:[%s2664_s2 + $0x140] sm:$0xff]  ;;  %1230 = vmatprep.subr.bf16.mxu0 %v1756_v40  ;;  %v1750_v51 = vcombine.high %v511_v48, %v515_v49  ;;  %v503_v53 = vld [vmem:[%s2664_s2 + $0x148] sm:$0xff]  ;;  %1271 = vmatprep.subr.bf16.mxu1 %v1758_v45  ;;  %v1747_v56 = vcombine.low %v510_v43, %v514_v44  ;;  %s1514_s17 = scalar_lea.vmem %s2189_s13, %s1838_s15  ;;  %s454_s23 = sadd.s32 1, %s2038_s23  }
  0x4a   : >> { %v506_v52 = vld [vmem:[%s2664_s2 + $0x160] sm:$0xff]  ;;  %v507_v54 = vld [vmem:[%s2664_s2 + $0x168] sm:$0xff]  ;;  %1231 = vmatpush1.bf16.msra.mxu0 %v1755_v42  ;;  %1272 = vmatpush1.bf16.msra.mxu1 %v1757_v46  ;;  %v1749_v57 = vcombine.low %v511_v48, %v515_v49  ;;  %p451_p0 = scmp.ge.s32.totalorder %s454_s23, 16  }
  0x4b   : >> { %1232 = vmatprep.subr.bf16.mxu0 %v1748_v47  ;;  %v1740_v58 = vcombine.high %v502_v50, %v506_v52  ;;  %1273 = vmatprep.subr.bf16.mxu1 %v1750_v51  ;;  %v1742_v59 = vcombine.high %v503_v53, %v507_v54  ;;  %v494_v60 = vld [vmem:[%s2664_s2 + $0x100] sm:$0xff]  ;;  %v495_v62 = vld [vmem:[%s2664_s2 + $0x108] sm:$0xff]  ;;  %v1739_v0 = vcombine.low %v502_v50, %v506_v52 }
  0x4c   : >> { %v498_v61 = vld [vmem:[%s2664_s2 + $0x120] sm:$0xff]  ;;  %v499_v63 = vld [vmem:[%s2664_s2 + $0x128] sm:$0xff]  ;;  %v1741_v1 = vcombine.low %v503_v53, %v507_v54 }
  0x4d   : >> { %v1732_v2 = vcombine.high %v494_v60, %v498_v61  ;;  %v1734_v3 = vcombine.high %v495_v62, %v499_v63  ;;  %v486_v4 = vld [vmem:[%s2664_s2 + $0xc0] sm:$0xff]  ;;  %v487_v6 = vld [vmem:[%s2664_s2 + $0xc8] sm:$0xff]  ;;  %v1731_v8 = vcombine.low %v494_v60, %v498_v61  ;;  %v1733_v9 = vcombine.low %v495_v62, %v499_v63 }
  0x4e   : >> { %1233 = vmatpush1.bf16.msra.mxu0 %v1747_v56  ;;  %1274 = vmatpush1.bf16.msra.mxu1 %v1749_v57  ;;  %v490_v5 = vld [vmem:[%s2664_s2 + $0xe0] sm:$0xff]  ;;  %v491_v7 = vld [vmem:[%s2664_s2 + $0xe8] sm:$0xff] }
  0x4f   : >> { %1234 = vmatprep.subr.bf16.mxu0 %v1740_v58  ;;  %1275 = vmatprep.subr.bf16.mxu1 %v1742_v59  ;;  %v1724_v10 = vcombine.high %v486_v4, %v490_v5  ;;  %v1726_v11 = vcombine.high %v487_v6, %v491_v7  ;;  %v478_v12 = vld [vmem:[%s2664_s2 + $0x80] sm:$0xff]  ;;  %v479_v14 = vld [vmem:[%s2664_s2 + $0x88] sm:$0xff]  ;;  %v1723_v16 = vcombine.low %v486_v4, %v490_v5 }
  0x50   : >> { %v482_v13 = vld [vmem:[%s2664_s2 + $0xa0] sm:$0xff]  ;;  %v483_v15 = vld [vmem:[%s2664_s2 + $0xa8] sm:$0xff]  ;;  %v1725_v17 = vcombine.low %v487_v6, %v491_v7 }
  0x51   : >> { %v1716_v18 = vcombine.high %v478_v12, %v482_v13  ;;  %v1718_v19 = vcombine.high %v479_v14, %v483_v15  ;;  %v470_v20 = vld [vmem:[%s2664_s2 + $0x40] sm:$0xff]  ;;  %v471_v22 = vld [vmem:[%s2664_s2 + $0x48] sm:$0xff]  ;;  %v1715_v24 = vcombine.low %v478_v12, %v482_v13  ;;  %v1717_v25 = vcombine.low %v479_v14, %v483_v15 }
  0x52   : >> { %1235 = vmatpush1.bf16.msra.mxu0 %v1739_v0  ;;  %1276 = vmatpush1.bf16.msra.mxu1 %v1741_v1  ;;  %v474_v21 = vld [vmem:[%s2664_s2 + $0x60] sm:$0xff]  ;;  %v475_v23 = vld [vmem:[%s2664_s2 + $0x68] sm:$0xff] }
  0x53   : >> { %1236 = vmatprep.subr.bf16.mxu0 %v1732_v2  ;;  %1277 = vmatprep.subr.bf16.mxu1 %v1734_v3  ;;  %v1708_v26 = vcombine.high %v470_v20, %v474_v21  ;;  %v1710_v27 = vcombine.high %v471_v22, %v475_v23  ;;  %v462_v28 = vld [vmem:[%s2664_s2] sm:$0xff]  ;;  %v463_v30 = vld [vmem:[%s2664_s2 + $0x8] sm:$0xff]  ;;  %v1707_v32 = vcombine.low %v470_v20, %v474_v21 }
  0x54   : >> { %v466_v29 = vld [vmem:[%s2664_s2 + $0x20] sm:$0xff]  ;;  %v467_v31 = vld [vmem:[%s2664_s2 + $0x28] sm:$0xff]  ;;  %v1709_v35 = vcombine.low %v471_v22, %v475_v23 }
  0x55   : >> { %v1700_v37 = vcombine.high %v462_v28, %v466_v29  ;;  %v1702_v38 = vcombine.high %v463_v30, %v467_v31  ;;  %v582_v39 = vld [vmem:[%s2664_s2 + $0x3c0] sm:$0xff]  ;;  %v583_v41 = vld [vmem:[%s2664_s2 + $0x3c8] sm:$0xff]  ;;  %v1699_v43 = vcombine.low %v462_v28, %v466_v29  ;;  %v1701_v44 = vcombine.low %v463_v30, %v467_v31 }
  0x56   : >> { %1237 = vmatpush1.bf16.msra.mxu0 %v1731_v8  ;;  %1278 = vmatpush1.bf16.msra.mxu1 %v1733_v9  ;;  %v586_v40 = vld [vmem:[%s2664_s2 + $0x3e0] sm:$0xff]  ;;  %v587_v42 = vld [vmem:[%s2664_s2 + $0x3e8] sm:$0xff] }
  0x57   : >> { %1238 = vmatprep.subr.bf16.mxu0 %v1724_v10  ;;  %1279 = vmatprep.subr.bf16.mxu1 %v1726_v11  ;;  %v1820_v45 = vcombine.high %v582_v39, %v586_v40  ;;  %v1822_v46 = vcombine.high %v583_v41, %v587_v42  ;;  %v574_v47 = vld [vmem:[%s2664_s2 + $0x380] sm:$0xff]  ;;  %v575_v49 = vld [vmem:[%s2664_s2 + $0x388] sm:$0xff]  ;;  %v1819_v51 = vcombine.low %v582_v39, %v586_v40 }
  0x58   : >> { %v578_v48 = vld [vmem:[%s2664_s2 + $0x3a0] sm:$0xff]  ;;  %v579_v50 = vld [vmem:[%s2664_s2 + $0x3a8] sm:$0xff]  ;;  %v1821_v52 = vcombine.low %v583_v41, %v587_v42 }
  0x59   : >> { %v1812_v53 = vcombine.high %v574_v47, %v578_v48  ;;  %v1814_v54 = vcombine.high %v575_v49, %v579_v50  ;;  %v566_v56 = vld [vmem:[%s2664_s2 + $0x340] sm:$0xff]  ;;  %v567_v58 = vld [vmem:[%s2664_s2 + $0x348] sm:$0xff]  ;;  %v1811_v60 = vcombine.low %v574_v47, %v578_v48  ;;  %v1813_v61 = vcombine.low %v575_v49, %v579_v50 }
  0x5a   : >> { %1239 = vmatpush1.bf16.msra.mxu0 %v1723_v16  ;;  %1280 = vmatpush1.bf16.msra.mxu1 %v1725_v17  ;;  %v570_v57 = vld [vmem:[%s2664_s2 + $0x360] sm:$0xff]  ;;  %v571_v59 = vld [vmem:[%s2664_s2 + $0x368] sm:$0xff] }
  0x5b   : >> { %1240 = vmatprep.subr.bf16.mxu0 %v1716_v18  ;;  %1281 = vmatprep.subr.bf16.mxu1 %v1718_v19  ;;  %v1804_v62 = vcombine.high %v566_v56, %v570_v57  ;;  %v1806_v63 = vcombine.high %v567_v58, %v571_v59  ;;  %v558_v0 = vld [vmem:[%s2664_s2 + $0x300] sm:$0xff]  ;;  %v559_v2 = vld [vmem:[%s2664_s2 + $0x308] sm:$0xff]  ;;  %v1803_v4 = vcombine.low %v566_v56, %v570_v57  ;;  %v517_v56 = vld [vmem:[%s2664_s2 + $0x1b8] sm:$0xff] }
  0x5c   : >> { %v562_v1 = vld [vmem:[%s2664_s2 + $0x320] sm:$0xff]  ;;  %v563_v3 = vld [vmem:[%s2664_s2 + $0x328] sm:$0xff]  ;;  %v1805_v5 = vcombine.low %v567_v58, %v571_v59 }
  0x5d   : >> { %v1796_v6 = vcombine.high %v558_v0, %v562_v1  ;;  %v1798_v7 = vcombine.high %v559_v2, %v563_v3  ;;  %v550_v8 = vld [vmem:[%s2664_s2 + $0x2c0] sm:$0xff]  ;;  %v551_v10 = vld [vmem:[%s2664_s2 + $0x2c8] sm:$0xff]  ;;  %v1795_v12 = vcombine.low %v558_v0, %v562_v1  ;;  %v1797_v13 = vcombine.low %v559_v2, %v563_v3 }
  0x5e   : >> { %1241 = vmatpush1.bf16.msra.mxu0 %v1715_v24  ;;  %1282 = vmatpush1.bf16.msra.mxu1 %v1717_v25  ;;  %v554_v9 = vld [vmem:[%s2664_s2 + $0x2e0] sm:$0xff]  ;;  %v555_v11 = vld [vmem:[%s2664_s2 + $0x2e8] sm:$0xff] }
  0x5f   : >> { %1242 = vmatprep.subr.bf16.mxu0 %v1708_v26  ;;  %1283 = vmatprep.subr.bf16.mxu1 %v1710_v27  ;;  %v1788_v14 = vcombine.high %v550_v8, %v554_v9  ;;  %v1790_v15 = vcombine.high %v551_v10, %v555_v11  ;;  %v542_v16 = vld [vmem:[%s2664_s2 + $0x280] sm:$0xff]  ;;  %v543_v18 = vld [vmem:[%s2664_s2 + $0x288] sm:$0xff]  ;;  %v1787_v20 = vcombine.low %v550_v8, %v554_v9 }
  0x60   : >> { %v546_v17 = vld [vmem:[%s2664_s2 + $0x2a0] sm:$0xff]  ;;  %v547_v19 = vld [vmem:[%s2664_s2 + $0x2a8] sm:$0xff]  ;;  %v1789_v21 = vcombine.low %v551_v10, %v555_v11 }
  0x61   : >> { %v1780_v22 = vcombine.high %v542_v16, %v546_v17  ;;  %v1782_v23 = vcombine.high %v543_v18, %v547_v19  ;;  %v534_v24 = vld [vmem:[%s2664_s2 + $0x240] sm:$0xff]  ;;  %v535_v26 = vld [vmem:[%s2664_s2 + $0x248] sm:$0xff]  ;;  %v1779_v28 = vcombine.low %v542_v16, %v546_v17  ;;  %v1781_v29 = vcombine.low %v543_v18, %v547_v19  ;;  %v480_v19 = vld [vmem:[%s2664_s2 + $0x90] sm:$0xff] }
  0x62   : >> { %1243 = vmatpush1.bf16.msra.mxu0 %v1707_v32  ;;  %1284 = vmatpush1.bf16.msra.mxu1 %v1709_v35  ;;  %v538_v25 = vld [vmem:[%s2664_s2 + $0x260] sm:$0xff]  ;;  %v539_v27 = vld [vmem:[%s2664_s2 + $0x268] sm:$0xff] }
  0x63   : >> { %1244 = vmatprep.subr.bf16.mxu0 %v1700_v37  ;;  %1285 = vmatprep.subr.bf16.mxu1 %v1702_v38  ;;  %v1772_v30 = vcombine.high %v534_v24, %v538_v25  ;;  %v1774_v31 = vcombine.high %v535_v26, %v539_v27  ;;  %v526_v32 = vld [vmem:[%s2664_s2 + $0x200] sm:$0xff]  ;;  %v527_v37 = vld [vmem:[%s2664_s2 + $0x208] sm:$0xff]  ;;  %v1771_v39 = vcombine.low %v534_v24, %v538_v25 }
  0x64   : >> { %v530_v35 = vld [vmem:[%s2664_s2 + $0x220] sm:$0xff]  ;;  %v531_v38 = vld [vmem:[%s2664_s2 + $0x228] sm:$0xff]  ;;  %v1773_v40 = vcombine.low %v535_v26, %v539_v27  ;;  %v472_v27 = vld [vmem:[%s2664_s2 + $0x50] sm:$0xff] }
  0x65   : >> { %v1764_v41 = vcombine.high %v526_v32, %v530_v35  ;;  %v1766_v42 = vcombine.high %v527_v37, %v531_v38  ;;  %v1763_v47 = vcombine.low %v526_v32, %v530_v35  ;;  %v1765_v48 = vcombine.low %v527_v37, %v531_v38  ;;  %v464_v38 = vld [vmem:[%s2664_s2 + $0x10] sm:$0xff] }
  0x66   : >> { %1245 = vmatpush1.bf16.msra.mxu0 %v1699_v43  ;;  %1286 = vmatpush1.bf16.msra.mxu1 %v1701_v44  ;;  %v520_v43 = vld [vmem:[%s2664_s2 + $0x1d0] sm:$0xff] }
  0x67   : >> { %1246 = vmatprep.subr.bf16.mxu0 %v1820_v45  ;;  %1287 = vmatprep.subr.bf16.mxu1 %v1822_v46  ;;  %v524_v44 = vld [vmem:[%s2664_s2 + $0x1f0] sm:$0xff]  ;;  %v521_v45 = vld [vmem:[%s2664_s2 + $0x1d8] sm:$0xff] }
  0x68   : >> { %v525_v46 = vld [vmem:[%s2664_s2 + $0x1f8] sm:$0xff]  ;;  %v1760_v49 = vcombine.high %v520_v43, %v524_v44  ;;  %v1759_v57 = vcombine.low %v520_v43, %v524_v44 }
  0x69   : >> { %v1762_v50 = vcombine.high %v521_v45, %v525_v46  ;;  %v1761_v58 = vcombine.low %v521_v45, %v525_v46  ;;  %v584_v46 = vld [vmem:[%s2664_s2 + $0x3d0] sm:$0xff] }
  0x6a   : >> { %1247 = vmatpush2.bf16.msra.mxu0 %v1819_v51  ;;  %1288 = vmatpush2.bf16.msra.mxu1 %v1821_v52  ;;  %v512_v51 = vld [vmem:[%s2664_s2 + $0x190] sm:$0xff] }
  0x6b   : >> { %1248 = vmatprep.subr.bf16.mxu0 %v1812_v53  ;;  %1289 = vmatprep.subr.bf16.mxu1 %v1814_v54  ;;  %v516_v52 = vld [vmem:[%s2664_s2 + $0x1b0] sm:$0xff]  ;;  %v2433_v53 = vpack.c.bf16 %v2034_v33, %v2034_v33  ;;  %v513_v54 = vld [vmem:[%s2664_s2 + $0x198] sm:$0xff] }
  0x6c   : >> { %v1752_v59 = vcombine.high %v512_v51, %v516_v52  ;;  %v504_v33 = vld [vmem:[%s2664_s2 + $0x150] sm:$0xff]  ;;  %v1751_v0 = vcombine.low %v512_v51, %v516_v52  ;;  %v1753_v1 = vcombine.low %v513_v54, %v517_v56 }
  0x6e   : >> { %1249 = vmatpush2.bf16.msra.mxu0 %v1811_v60  ;;  %1290 = vmatpush2.bf16.msra.mxu1 %v1813_v61  ;;  %v1754_v60 = vcombine.high %v513_v54, %v517_v56  ;;  %v508_v61 = vld [vmem:[%s2664_s2 + $0x170] sm:$0xff] }
  0x6f   : >> { %1250 = vmatprep.subr.bf16.mxu0 %v1804_v62  ;;  %1291 = vmatprep.subr.bf16.mxu1 %v1806_v63  ;;  %v505_v62 = vld [vmem:[%s2664_s2 + $0x158] sm:$0xff]  ;;  %v1744_v2 = vcombine.high %v504_v33, %v508_v61  ;;  %v1743_v8 = vcombine.low %v504_v33, %v508_v61  ;;  %v576_v56 = vld [vmem:[%s2664_s2 + $0x390] sm:$0xff] }
  0x70   : >> { %v509_v63 = vld [vmem:[%s2664_s2 + $0x178] sm:$0xff] }
  0x71   : >> { %v1746_v3 = vcombine.high %v505_v62, %v509_v63  ;;  %v1745_v9 = vcombine.low %v505_v62, %v509_v63  ;;  %v568_v63 = vld [vmem:[%s2664_s2 + $0x350] sm:$0xff] }
  0x72   : >> { %1251 = vmatpush2.bf16.msra.mxu0 %v1803_v4  ;;  %1292 = vmatpush2.bf16.msra.mxu1 %v1805_v5  ;;  %v496_v4 = vld [vmem:[%s2664_s2 + $0x110] sm:$0xff] }
  0x73   : >> { %1252 = vmatprep.subr.bf16.mxu0 %v1796_v6  ;;  %1293 = vmatprep.subr.bf16.mxu1 %v1798_v7  ;;  %v500_v5 = vld [vmem:[%s2664_s2 + $0x130] sm:$0xff]  ;;  %v497_v6 = vld [vmem:[%s2664_s2 + $0x118] sm:$0xff] }
  0x74   : >> { %v501_v7 = vld [vmem:[%s2664_s2 + $0x138] sm:$0xff]  ;;  %v1736_v10 = vcombine.high %v496_v4, %v500_v5 }
  0x75   : >> { %v1738_v11 = vcombine.high %v497_v6, %v501_v7  ;;  %v1737_v16 = vcombine.low %v497_v6, %v501_v7  ;;  %v560_v7 = vld [vmem:[%s2664_s2 + $0x310] sm:$0xff] }
  0x76   : >> { %1253 = vmatpush2.bf16.msra.mxu0 %v1795_v12  ;;  %1294 = vmatpush2.bf16.msra.mxu1 %v1797_v13  ;;  %v488_v12 = vld [vmem:[%s2664_s2 + $0xd0] sm:$0xff] }
  0x77   : >> { %1254 = vmatprep.subr.bf16.mxu0 %v1788_v14  ;;  %1295 = vmatprep.subr.bf16.mxu1 %v1790_v15  ;;  %v492_v13 = vld [vmem:[%s2664_s2 + $0xf0] sm:$0xff]  ;;  %v493_v14 = vld [vmem:[%s2664_s2 + $0xf8] sm:$0xff]  ;;  %v1735_v15 = vcombine.low %v496_v4, %v500_v5 }
  0x78   : >> { %v1728_v17 = vcombine.high %v488_v12, %v492_v13 }
  0x7a   : >> { %1255 = vmatpush2.bf16.msra.mxu0 %v1787_v20  ;;  %1296 = vmatpush2.bf16.msra.mxu1 %v1789_v21  ;;  %v484_v20 = vld [vmem:[%s2664_s2 + $0xb0] sm:$0xff]  ;;  %v481_v21 = vld [vmem:[%s2664_s2 + $0x98] sm:$0xff] }
  0x7b   : >> { %1256 = vmatprep.subr.bf16.mxu0 %v1780_v22  ;;  %1297 = vmatprep.subr.bf16.mxu1 %v1782_v23  ;;  %v485_v22 = vld [vmem:[%s2664_s2 + $0xb8] sm:$0xff]  ;;  %v1727_v23 = vcombine.low %v488_v12, %v492_v13  ;;  %v1720_v25 = vcombine.high %v480_v19, %v484_v20 }
  0x7c   : >> { %v1722_v26 = vcombine.high %v481_v21, %v485_v22  ;;  %v1721_v32 = vcombine.low %v481_v21, %v485_v22  ;;  %v544_v22 = vld [vmem:[%s2664_s2 + $0x290] sm:$0xff] }
  0x7e   : >> { %1257 = vmatpush2.bf16.msra.mxu0 %v1779_v28  ;;  %1298 = vmatpush2.bf16.msra.mxu1 %v1781_v29  ;;  %v476_v28 = vld [vmem:[%s2664_s2 + $0x70] sm:$0xff]  ;;  %v473_v29 = vld [vmem:[%s2664_s2 + $0x58] sm:$0xff] }
  0x7f   : >> { %1258 = vmatprep.subr.bf16.mxu0 %v1772_v30  ;;  %1299 = vmatprep.subr.bf16.mxu1 %v1774_v31  ;;  %v477_v30 = vld [vmem:[%s2664_s2 + $0x78] sm:$0xff]  ;;  %v1719_v31 = vcombine.low %v480_v19, %v484_v20  ;;  %v1712_v35 = vcombine.high %v472_v27, %v476_v28 }
  0x80   : >> { %v1714_v37 = vcombine.high %v473_v29, %v477_v30  ;;  %v1713_v43 = vcombine.low %v473_v29, %v477_v30  ;;  %v536_v30 = vld [vmem:[%s2664_s2 + $0x250] sm:$0xff] }
  0x82   : >> { %1259 = vmatpush2.bf16.msra.mxu0 %v1771_v39  ;;  %1300 = vmatpush2.bf16.msra.mxu1 %v1773_v40  ;;  %v468_v39 = vld [vmem:[%s2664_s2 + $0x30] sm:$0xff]  ;;  %v465_v40 = vld [vmem:[%s2664_s2 + $0x18] sm:$0xff] }
  0x83   : >> { %1260 = vmatprep.subr.bf16.mxu0 %v1764_v41  ;;  %1301 = vmatprep.subr.bf16.mxu1 %v1766_v42  ;;  %v469_v41 = vld [vmem:[%s2664_s2 + $0x38] sm:$0xff]  ;;  %v1711_v42 = vcombine.low %v472_v27, %v476_v28  ;;  %v1704_v44 = vcombine.high %v464_v38, %v468_v39 }
  0x84   : >> { %v1706_v45 = vcombine.high %v465_v40, %v469_v41  ;;  %v1705_v51 = vcombine.low %v465_v40, %v469_v41  ;;  %v528_v41 = vld [vmem:[%s2664_s2 + $0x210] sm:$0xff] }
  0x86   : >> { %1261 = vmatpush2.bf16.msra.mxu0 %v1763_v47  ;;  %1302 = vmatpush2.bf16.msra.mxu1 %v1765_v48  ;;  %v588_v47 = vld [vmem:[%s2664_s2 + $0x3f0] sm:$0xff]  ;;  %v585_v48 = vld [vmem:[%s2664_s2 + $0x3d8] sm:$0xff] }
  0x87   : >> { %1312 = vmatprep.subr.bf16.mxu0 %v1760_v49  ;;  %1353 = vmatprep.subr.bf16.mxu1 %v1762_v50  ;;  %v589_v49 = vld [vmem:[%s2664_s2 + $0x3f8] sm:$0xff]  ;;  %v1703_v50 = vcombine.low %v464_v38, %v468_v39  ;;  %v1824_v52 = vcombine.high %v584_v46, %v588_v47 }
  0x88   : >> { %v1826_v54 = vcombine.high %v585_v48, %v589_v49  ;;  %v1825_v33 = vcombine.low %v585_v48, %v589_v49 }
  0x89   : >> { %1263 = vmatmul.mubr.bf16.vlgmr.msra.gmra.mxu0 %v2433_v53  ;;  %1304 = vmatmul.mubr.bf16.vlgmr.msra.gmra.mxu1 %v2433_v53 }
  0x8a   : >> { %1313 = vmatpush1.bf16.msra.mxu0 %v1759_v57  ;;  %1354 = vmatpush1.bf16.msra.mxu1 %v1761_v58  ;;  %v580_v57 = vld [vmem:[%s2664_s2 + $0x3b0] sm:$0xff]  ;;  %v577_v58 = vld [vmem:[%s2664_s2 + $0x398] sm:$0xff] }
  0x8b   : >> { %1314 = vmatprep.subr.bf16.mxu0 %v1752_v59  ;;  %1355 = vmatprep.subr.bf16.mxu1 %v1754_v60  ;;  %v581_v59 = vld [vmem:[%s2664_s2 + $0x3b8] sm:$0xff]  ;;  %v1823_v60 = vcombine.low %v584_v46, %v588_v47  ;;  %v1816_v61 = vcombine.high %v576_v56, %v580_v57 }
  0x8c   : >> { %1344 = vmatprep.mubr.bf16.mxu0 %v2253_v55  ;;  %1385 = vmatprep.mubr.bf16.mxu1 %v2253_v55  ;;  %v489_v55 = vld [vmem:[%s2664_s2 + $0xd8] sm:$0xff]  ;;  %v1818_v62 = vcombine.high %v577_v58, %v581_v59  ;;  %v1817_v4 = vcombine.low %v577_v58, %v581_v59 }
  0x8d   : >> { %v1730_v18 = vcombine.high %v489_v55, %v493_v14  ;;  %v1729_v24 = vcombine.low %v489_v55, %v493_v14  ;;  %v552_v14 = vld [vmem:[%s2664_s2 + $0x2d0] sm:$0xff] }
  0x8e   : >> { %1315 = vmatpush1.bf16.msra.mxu0 %v1751_v0  ;;  %1356 = vmatpush1.bf16.msra.mxu1 %v1753_v1  ;;  %v572_v0 = vld [vmem:[%s2664_s2 + $0x370] sm:$0xff]  ;;  %v569_v1 = vld [vmem:[%s2664_s2 + $0x358] sm:$0xff] }
  0x8f   : >> { %1316 = vmatprep.subr.bf16.mxu0 %v1744_v2  ;;  %1357 = vmatprep.subr.bf16.mxu1 %v1746_v3  ;;  %v573_v2 = vld [vmem:[%s2664_s2 + $0x378] sm:$0xff]  ;;  %v1815_v3 = vcombine.low %v576_v56, %v580_v57  ;;  %v1808_v5 = vcombine.high %v568_v63, %v572_v0 }
  0x90   : >> { %v1810_v6 = vcombine.high %v569_v1, %v573_v2  ;;  %v1809_v12 = vcombine.low %v569_v1, %v573_v2 }
  0x92   : >> { %1317 = vmatpush1.bf16.msra.mxu0 %v1743_v8  ;;  %1358 = vmatpush1.bf16.msra.mxu1 %v1745_v9  ;;  %v564_v8 = vld [vmem:[%s2664_s2 + $0x330] sm:$0xff]  ;;  %v561_v9 = vld [vmem:[%s2664_s2 + $0x318] sm:$0xff] }
  0x93   : >> { %1318 = vmatprep.subr.bf16.mxu0 %v1736_v10  ;;  %1359 = vmatprep.subr.bf16.mxu1 %v1738_v11  ;;  %v565_v10 = vld [vmem:[%s2664_s2 + $0x338] sm:$0xff]  ;;  %v1807_v11 = vcombine.low %v568_v63, %v572_v0  ;;  %v1800_v13 = vcombine.high %v560_v7, %v564_v8 }
  0x94   : >> { %v1802_v55 = vcombine.high %v561_v9, %v565_v10  ;;  %v1801_v19 = vcombine.low %v561_v9, %v565_v10 }
  0x96   : >> { %1319 = vmatpush1.bf16.msra.mxu0 %v1735_v15  ;;  %1360 = vmatpush1.bf16.msra.mxu1 %v1737_v16  ;;  %v556_v15 = vld [vmem:[%s2664_s2 + $0x2f0] sm:$0xff]  ;;  %v553_v16 = vld [vmem:[%s2664_s2 + $0x2d8] sm:$0xff] }
  0x97   : >> { %1320 = vmatprep.subr.bf16.mxu0 %v1728_v17  ;;  %1361 = vmatprep.subr.bf16.mxu1 %v1730_v18  ;;  %v557_v17 = vld [vmem:[%s2664_s2 + $0x2f8] sm:$0xff]  ;;  %v1799_v18 = vcombine.low %v560_v7, %v564_v8  ;;  %v1792_v20 = vcombine.high %v552_v14, %v556_v15 }
  0x98   : >> { %v1794_v21 = vcombine.high %v553_v16, %v557_v17  ;;  %v1793_v27 = vcombine.low %v553_v16, %v557_v17 }
  0x9a   : >> { %1321 = vmatpush1.bf16.msra.mxu0 %v1727_v23  ;;  %1362 = vmatpush1.bf16.msra.mxu1 %v1729_v24  ;;  %v548_v23 = vld [vmem:[%s2664_s2 + $0x2b0] sm:$0xff]  ;;  %v545_v24 = vld [vmem:[%s2664_s2 + $0x298] sm:$0xff] }
  0x9b   : >> { %1322 = vmatprep.subr.bf16.mxu0 %v1720_v25  ;;  %1363 = vmatprep.subr.bf16.mxu1 %v1722_v26  ;;  %v549_v25 = vld [vmem:[%s2664_s2 + $0x2b8] sm:$0xff]  ;;  %v1791_v26 = vcombine.low %v552_v14, %v556_v15  ;;  %v1784_v28 = vcombine.high %v544_v22, %v548_v23 }
  0x9c   : >> { %v1786_v29 = vcombine.high %v545_v24, %v549_v25  ;;  %v1785_v38 = vcombine.low %v545_v24, %v549_v25 }
  0x9e   : >> { %1323 = vmatpush1.bf16.msra.mxu0 %v1719_v31  ;;  %1364 = vmatpush1.bf16.msra.mxu1 %v1721_v32  ;;  %v540_v31 = vld [vmem:[%s2664_s2 + $0x270] sm:$0xff]  ;;  %v537_v32 = vld [vmem:[%s2664_s2 + $0x258] sm:$0xff] }
  0x9f   : >> { %1324 = vmatprep.subr.bf16.mxu0 %v1712_v35  ;;  %1365 = vmatprep.subr.bf16.mxu1 %v1714_v37  ;;  %v541_v35 = vld [vmem:[%s2664_s2 + $0x278] sm:$0xff]  ;;  %v1783_v37 = vcombine.low %v544_v22, %v548_v23  ;;  %v1776_v39 = vcombine.high %v536_v30, %v540_v31 }
  0xa0   : >> { %v1778_v40 = vcombine.high %v537_v32, %v541_v35  ;;  %v1777_v46 = vcombine.low %v537_v32, %v541_v35 }
  0xa2   : >> { %1325 = vmatpush1.bf16.msra.mxu0 %v1711_v42  ;;  %1366 = vmatpush1.bf16.msra.mxu1 %v1713_v43  ;;  %v532_v42 = vld [vmem:[%s2664_s2 + $0x230] sm:$0xff]  ;;  %v529_v43 = vld [vmem:[%s2664_s2 + $0x218] sm:$0xff] }
  0xa3   : >> { %1326 = vmatprep.subr.bf16.mxu0 %v1704_v44  ;;  %1367 = vmatprep.subr.bf16.mxu1 %v1706_v45  ;;  %v533_v44 = vld [vmem:[%s2664_s2 + $0x238] sm:$0xff]  ;;  %v1775_v45 = vcombine.low %v536_v30, %v540_v31  ;;  %v1768_v47 = vcombine.high %v528_v41, %v532_v42  ;;  %v1767_v49 = vcombine.low %v528_v41, %v532_v42  ;;  %v1455_v41 = vld [vmem:[%s1454_s10] sm:$0xff] }
  0xa4   : >> { %v1770_v48 = vcombine.high %v529_v43, %v533_v44 }
  0xa6   : >> { %1327 = vmatpush1.bf16.msra.mxu0 %v1703_v50  ;;  %1368 = vmatpush1.bf16.msra.mxu1 %v1705_v51  ;;  %v1769_v50 = vcombine.low %v529_v43, %v533_v44  ;;  %v2041_v51 = vmov 1983009808  }
  0xa7   : >> { %1328 = vmatprep.subr.bf16.mxu0 %v1824_v52  ;;  %1369 = vmatprep.subr.bf16.mxu1 %v1826_v54  ;;  %v1405_v52 = vunpack.c.l.s4 %v2041_v51  ;;  %v1407_v54 = vlaneseq }
  0xa9   : >> { %v1406_v56 = vunpack.c.0.s8 %v1405_v52  ;;  %v1408_v57 = vshrl.u32 %v1407_v54, 7 }
  0xaa   : >> { %1329 = vmatpush2.bf16.msra.mxu0 %v1823_v60  ;;  %1370 = vmatpush2.bf16.msra.mxu1 %v1825_v33 }
  0xab   : >> { %1330 = vmatprep.subr.bf16.mxu0 %v1816_v61  ;;  %1371 = vmatprep.subr.bf16.mxu1 %v1818_v62  ;;  %v1409_v60 = vsub.s32 %v1406_v56, %v1408_v57 }
  0xae   : >> { %1331 = vmatpush2.bf16.msra.mxu0 %v1815_v3  ;;  %1372 = vmatpush2.bf16.msra.mxu1 %v1817_v4  ;;  %v1397_v4 = vld [vmem:[%s1396_s6] sm:$0xff] }
  0xaf   : >> { %1332 = vmatprep.subr.bf16.mxu0 %v1808_v5  ;;  %1373 = vmatprep.subr.bf16.mxu1 %v1810_v6 }
  0xb2   : >> { %1333 = vmatpush2.bf16.msra.mxu0 %v1807_v11  ;;  %1374 = vmatpush2.bf16.msra.mxu1 %v1809_v12 }
  0xb3   : >> { %1334 = vmatprep.subr.bf16.mxu0 %v1800_v13  ;;  %1375 = vmatprep.subr.bf16.mxu1 %v1802_v55 }
  0xb6   : >> { %1335 = vmatpush2.bf16.msra.mxu0 %v1799_v18  ;;  %1376 = vmatpush2.bf16.msra.mxu1 %v1801_v19 }
  0xb7   : >> { %1336 = vmatprep.subr.bf16.mxu0 %v1792_v20  ;;  %1377 = vmatprep.subr.bf16.mxu1 %v1794_v21 }
  0xba   : >> { %1337 = vmatpush2.bf16.msra.mxu0 %v1791_v26  ;;  %1378 = vmatpush2.bf16.msra.mxu1 %v1793_v27 }
  0xbb   : >> { %1338 = vmatprep.subr.bf16.mxu0 %v1784_v28  ;;  %1379 = vmatprep.subr.bf16.mxu1 %v1786_v29 }
  0xbe   : >> { %1339 = vmatpush2.bf16.msra.mxu0 %v1783_v37  ;;  %1380 = vmatpush2.bf16.msra.mxu1 %v1785_v38 }
  0xbf   : >> { %1340 = vmatprep.subr.bf16.mxu0 %v1776_v39  ;;  %1381 = vmatprep.subr.bf16.mxu1 %v1778_v40 }
  0xc2   : >> { %1341 = vmatpush2.bf16.msra.mxu0 %v1775_v45  ;;  %1382 = vmatpush2.bf16.msra.mxu1 %v1777_v46 }
  0xc3   : >> { %1342 = vmatprep.subr.bf16.mxu0 %v1768_v47  ;;  %1383 = vmatprep.subr.bf16.mxu1 %v1770_v48 }
  0xc6   : >> { %1343 = vmatpush2.bf16.msra.mxu0 %v1767_v49  ;;  %1384 = vmatpush2.bf16.msra.mxu1 %v1769_v50 }
  0xc9   : >> { %1345 = vmatmul.mubr.bf16.vlgmr.msra.gmra.mxu0 %v2433_v53  ;;  %1386 = vmatmul.mubr.bf16.vlgmr.msra.gmra.mxu1 %v2433_v53 }
 0x149   : >> { %v1264_v58 = vpop.f32.mrf.mxu0  ;;  %v1305_v59 = vpop.f32.mrf.mxu1 }
 0x14b   : >> { %v1266_v33 = vpop.f32.mrf.mxu0  ;;  %v1307_v62 = vpop.f32.mrf.mxu1 }
 0x14c   : >> { %v1402_v61 = vcombine.low %v1264_v58, %v1266_v33  ;;  %v1403_v63 = vcombine.low %v1305_v59, %v1307_v62 }
 0x14d   : >> { %v1268_v0 = vpop.f32.mrf.mxu0  ;;  %v1309_v2 = vpop.f32.mrf.mxu1 }
 0x14e   : >> { %v1410_v1 = vrot.slane %v1402_v61, %v1409_v60  ;;  %v1417_v3 = vrot.slane %v1403_v63, %v1409_v60 }
 0x14f   : >> { %v1269_v53 = vpop.f32.mrf.mxu0  ;;  %v1310_v5 = vpop.f32.mrf.mxu1 }
 0x150   : >> { %v1418_v6 = vcombine.low %v1410_v1, %v1417_v3 }
 0x152   : >> { %v1420_v7 = vadd.f32 %v1418_v6, %v1397_v4 }
 0x154   : >> { %v1829_v8 = vmul.f32 -1.442695, %v1420_v7  ;;  %v1428_v9 = vrot.slane %v1420_v7, 2  ;;  %v1439_v11 = vrot.slane %v1420_v7, 6  ;;  %v1436_v55 = vrot.slane %v1420_v7, 4 }
 0x156   : >> { %1928 = vpow2.f32 %v1829_v8  ;;  %v1830_v10 = vmul.f32 -1.442695, %v1428_v9  ;;  %v1831_v12 = vmul.f32 -1.442695, %v1439_v11 }
 0x158   : >> { %1930 = vpow2.f32 %v1830_v10 }
 0x159   : >> { %1932 = vpow2.f32 %v1831_v12 }
 0x163   : >> { %v1929_v13 = vpop.eup %1928 }
 0x164   : >> { %v1424_v14 = vadd.f32 1.0, %v1929_v13 }
 0x165   : >> { %v1931_v15 = vpop.eup %1930 }
 0x166   : >> { %1934 = vrcp.f32 %v1424_v14  ;;  %v1433_v16 = vadd.f32 1.0, %v1931_v15  ;;  %v1933_v17 = vpop.eup %1932 }
 0x167   : >> { %1936 = vtanh.f32 %v1436_v55  ;;  %v1444_v21 = vadd.f32 1.0, %v1933_v17 }
 0x168   : >> { %1938 = vrcp.f32 %v1433_v16 }
 0x169   : >> { %1940 = vrcp.f32 %v1444_v21 }
 0x173   : >> { %v1935_v18 = vpop.eup %1934 }
 0x174   : >> { %v1937_v19 = vpop.eup %1936 }
 0x175   : >> { %v1939_v20 = vpop.eup %1938  ;;  %v1448_v23 = vmul.f32 %v1937_v19, %v1935_v18 }
 0x176   : >> { %v1447_v22 = vmul.f32 %v2030_v34, %v1939_v20  ;;  %v1941_v25 = vpop.eup %1940 }
 0x178   : >> { %v2619_v34 = vadd.f32 %v1448_v23, %v1447_v22  }
 0x17a   : >> { %v2668_v24 = vmov %v2619_v34 }
 0x17b   : >> { %1942 = vtanh.f32 %v2668_v24  ;;  %1518 = vst [vmem:[#allocation3] sm:$0x3] (%p451_p0), %v2668_v24 }
 0x188   : >> { %v1943_v26 = vpop.eup %1942 }
 0x189   : >> { %v1451_v27 = vmul.f32 %v1943_v26, %v1941_v25   ;;  %v1346_v28 = vpop.f32.mrf.mxu0  ;;  %v1387_v29 = vpop.f32.mrf.mxu1 }
 0x18b   : >> { %1512 = vst [vmem:[%s1511_s19] sm:$0x3] %v1451_v27  ;;  %v1348_v30 = vpop.f32.mrf.mxu0  ;;  %v1389_v32 = vpop.f32.mrf.mxu1  ;;  %1516 = vst [vmem:[#allocation2] sm:$0x3] (%p451_p0), %v1451_v27 }
 0x18c   : >> { %v1460_v31 = vcombine.low %v1346_v28, %v1348_v30  ;;  %v1461_v34 = vcombine.low %v1387_v29, %v1389_v32 }
 0x18d   : >> { %v1350_v35 = vpop.f32.mrf.mxu0  ;;  %v1391_v38 = vpop.f32.mrf.mxu1 }
 0x18e   : >> { %v1468_v37 = vrot.slane %v1460_v31, %v1409_v60  ;;  %v1475_v39 = vrot.slane %v1461_v34, %v1409_v60  ;;  %v2671_v34 = vmov %v2668_v24 }
 0x18f   : >> { %v1351_v40 = vpop.f32.mrf.mxu0  ;;  %v1392_v42 = vpop.f32.mrf.mxu1 }
 0x190   : >> { %v1476_v43 = vcombine.low %v1468_v37, %v1475_v39 }
 0x192   : >> { %v1478_v44 = vadd.f32 %v1476_v43, %v1455_v41 }
 0x194   : >> { %v1834_v45 = vmul.f32 -1.442695, %v1478_v44  ;;  %v1486_v46 = vrot.slane %v1478_v44, 2  ;;  %v1497_v48 = vrot.slane %v1478_v44, 6  ;;  %v1494_v51 = vrot.slane %v1478_v44, 4 }
 0x196   : >> { %1944 = vpow2.f32 %v1834_v45  ;;  %v1835_v47 = vmul.f32 -1.442695, %v1486_v46  ;;  %v1836_v49 = vmul.f32 -1.442695, %v1497_v48 }
 0x198   : >> { %1946 = vpow2.f32 %v1835_v47 }
 0x199   : >> { %1948 = vpow2.f32 %v1836_v49 }
 0x1a3   : >> { %v1945_v50 = vpop.eup %1944 }
 0x1a4   : >> { %v1482_v52 = vadd.f32 1.0, %v1945_v50 }
 0x1a5   : >> { %v1947_v54 = vpop.eup %1946 }
 0x1a6   : >> { %1950 = vrcp.f32 %v1482_v52  ;;  %v1491_v56 = vadd.f32 1.0, %v1947_v54  ;;  %v1949_v57 = vpop.eup %1948 }
 0x1a7   : >> { %1952 = vtanh.f32 %v1494_v51  ;;  %v1502_v33 = vadd.f32 1.0, %v1949_v57 }
 0x1a8   : >> { %1954 = vrcp.f32 %v1491_v56 }
 0x1a9   : >> { %1956 = vrcp.f32 %v1502_v33  ;;  %v2672_v33 = vmov %v1451_v27 }
 0x1b3   : >> { %v1951_v58 = vpop.eup %1950 }
 0x1b4   : >> { %v1953_v59 = vpop.eup %1952 }
 0x1b5   : >> { %v1955_v60 = vpop.eup %1954  ;;  %v1506_v62 = vmul.f32 %v1953_v59, %v1951_v58 }
 0x1b6   : >> { %v1505_v61 = vmul.f32 %v2022_v36, %v1955_v60  ;;  %v1957_v0 = vpop.eup %1956 }
 0x1b8   : >> { %v1507_v63 = vadd.f32 %v1506_v62, %v1505_v61  }
 0x1ba   : >> { %1958 = vtanh.f32 %v1507_v63  ;;  %v2669_v36 = vmov %v1507_v63  ;;  %1519 = vst [vmem:[#allocation3 + $0x2] sm:$0x3] (%p451_p0), %v1507_v63 }
 0x1c6   : > { %453 = sbr.rel (!%p451_p0) target bundleno = 69 (0x45), region = 178 }
 0x1c7   : >> { %v1959_v1 = vpop.eup %1958 }
 0x1c8   : >> { %v1509_v2 = vmul.f32 %v1959_v1, %v1957_v0  }
 0x1ca   : >> { %1515 = vst [vmem:[%s1514_s17] sm:$0x3] %v1509_v2  ;;  %v2670_v35 = vmov %v1509_v2  ;;  %1517 = vst [vmem:[#allocation2 + $0x2] sm:$0x3] (%p451_p0), %v1509_v2 }
 0x1cb PF: > { %p12_p1 = scmp.ge.s32.totalorder %s2096_s21, 5   ;;  %s2673_s15 = smov %s2006_s16 }
 0x1cc   : > { %s2674_s16 = smov %s2115_s29  ;;  %s2675_s17 = smov %s2014_s18 }
 0x1cd   : > { %s2676_s18 = smov %s2106_s25  ;;  %s2677_s19 = smov %s2096_s21 }
 0x1ce   :  { %14 = sbr.rel (!%p12_p1) target bundleno = 3 (0x3), region = 189 }

</bundles_post_ra>
